<compile_context>
chip_gen: v6e
topology: v6e:2x2x1
jax: 0.10.0
libtpu: 0.0.40
codegen_flags: <defaults>
</compile_context>

<pallas_src>
import functools
import math

import jax
import jax.numpy as jnp
from jax.experimental import pallas as pl
from jax.experimental.pallas import tpu as pltpu


# --------------------------- single fused kernel ------------------------------

def _net_kernel(*refs, aspect, nhid, ks):
    """Whole Net forward for one graph (one grid step).

    refs = [adj, x,
            stage1 pack (w0,b0, wd1,bd1, ..., wdA,bdA),
            stage2/3 pack (same layout),
            pool_w, pool_b,
            k_weight, lin1_w, lin1_b, lin2_w, lin2_b, lin3_w, lin3_b,
            logp_out, readouts_out]
    Weights are bf16; biases / adjacency / activations-at-rest are f32.
    """
    bf16 = jnp.bfloat16
    nsp = 2 + 2 * aspect

    adj_ref, x_ref = refs[0], refs[1]
    i = 2
    s1_refs = refs[i:i + nsp]; i += nsp
    s2_refs = refs[i:i + nsp]; i += nsp
    pw_ref, pb_ref = refs[i], refs[i + 1]; i += 2
    (kw_ref, l1w_ref, l1b_ref, l2w_ref, l2b_ref,
     l3w_ref, l3b_ref) = refs[i:i + 7]; i += 7
    logp_ref, r_ref = refs[i], refs[i + 1]

    def load_pack(pack):
        ws = [pack[2 * j][...] for j in range(len(pack) // 2)]       # bf16
        bs = [pack[2 * j + 1][...] for j in range(len(pack) // 2)]   # f32
        return ws, bs

    ws1, bs1 = load_pack(s1_refs)
    ws2, bs2 = load_pack(s2_refs)
    pool_w = pw_ref[...].astype(bf16)       # [merge, 1]
    pool_b = pb_ref[...]                    # [1, 1]

    def gcn_relu(an_bf, h, w_bf, b):
        xw = jnp.dot(h.astype(bf16), w_bf, preferred_element_type=jnp.float32)
        y = jnp.dot(an_bf, xw.astype(bf16),
                    preferred_element_type=jnp.float32) + b
        return jnp.maximum(y, 0.0)

    def stage(adj, h_in, ws, bs, k, need_adj):
        n = adj.shape[0]

        # Symmetric GCN normalization of A + I, fully in VMEM/registers.
        ii = jax.lax.broadcasted_iota(jnp.int32, (n, n), 0)
        jj = jax.lax.broadcasted_iota(jnp.int32, (n, n), 1)
        a_hat = adj + (ii == jj).astype(jnp.float32)
        dinv = jax.lax.rsqrt(jnp.sum(a_hat, axis=-1, keepdims=True))   # deg >= 1
        an_bf = (a_hat * dinv * jnp.transpose(dinv)).astype(bf16)

        # All `aspect` GCN chains, fused per depth with block-diagonal weights.
        outs = [gcn_relu(an_bf, h_in, ws[0], bs[0])]     # depth 0: [n, aspect*nhid]
        h = outs[0]
        for d in range(1, aspect + 1):
            inp = h if d == 1 else h[:, nhid:]           # drop the finished aspect
            h = gcn_relu(an_bf, inp, ws[d], bs[d])
            outs.append(h)

        # Reassemble xt in the reference's per-aspect concatenation order.
        pieces = []
        for a in range(aspect):
            for d in range(a + 2):
                idx = a if d == 0 else a - (d - 1)
                pieces.append(outs[d][:, idx * nhid:(idx + 1) * nhid])
        xt = jnp.concatenate(pieces, axis=-1)            # [n, merge]

        # SAGPool score GCN (fout = 1).
        v = jnp.dot(xt.astype(bf16), pool_w, preferred_element_type=jnp.float32)
        score = jnp.dot(an_bf, v.astype(bf16),
                        preferred_element_type=jnp.float32) + pool_b   # [n, 1]

        # Top-k as a one-hot permutation matrix (rank = #nodes scoring higher,
        # ties broken by lower node index -- matches lax.top_k ordering).
        s_row = jnp.transpose(score)                                    # [1, n]
        better = (s_row > score) | ((s_row == score) & (jj < ii))       # [n, n]
        rank = jnp.sum(better.astype(jnp.float32), axis=-1, keepdims=True)  # [n,1]
        rk = jax.lax.broadcasted_iota(jnp.int32, (k, n), 0).astype(jnp.float32)
        P = (rk == jnp.transpose(rank)).astype(bf16)                    # [k, n]

        # Gate then select: x[perm] * tanh(score[perm]) == (x * tanh(score))[perm]
        xg = (xt * jnp.tanh(score)).astype(bf16)
        x_new = jnp.dot(P, xg, preferred_element_type=jnp.float32)      # [k, merge]
        readout = jnp.max(x_new, axis=0, keepdims=True)                 # gmp [1, merge]

        if need_adj:
            rkT = jax.lax.broadcasted_iota(jnp.int32, (n, k), 1).astype(jnp.float32)
            PT = (rkT == rank).astype(bf16)                             # [n, k]
            asel = jnp.dot(P, adj.astype(bf16),
                           preferred_element_type=jnp.float32)          # [k, n]
            adj_new = jnp.dot(asel.astype(bf16), PT,
                              preferred_element_type=jnp.float32)       # [k, k]
        else:
            adj_new = None
        return x_new, adj_new, readout

    adj0 = adj_ref[0]                                     # [n0, n0]
    x0 = x_ref[0]                                         # [n0, fin]
    xs1, adj1, r1 = stage(adj0, x0, ws1, bs1, ks[0], True)
    xs2, adj2, r2 = stage(adj1, xs1, ws2, bs2, ks[1], True)
    _, _, r3 = stage(adj2, xs2, ws2, bs2, ks[2], False)

    # MLP head.
    # TODO(synk): F.dropout is identity in eval mode (training=False); bn3 is
    # declared in the reference but never used in forward.
    result = jnp.concatenate([r1, r2, r3], axis=-1)       # [1, 3*merge]
    h = jnp.dot(result.astype(bf16), kw_ref[...],
                preferred_element_type=jnp.float32)
    h = jnp.maximum(jnp.dot(h.astype(bf16), l1w_ref[...],
                            preferred_element_type=jnp.float32) + l1b_ref[...], 0.0)
    h = jnp.maximum(jnp.dot(h.astype(bf16), l2w_ref[...],
                            preferred_element_type=jnp.float32) + l2b_ref[...], 0.0)
    y = jnp.dot(h.astype(bf16), l3w_ref[...],
                preferred_element_type=jnp.float32) + l3b_ref[...]      # [1, C]
    z = y - jnp.max(y, axis=-1, keepdims=True)
    logp_ref[0] = z - jnp.log(jnp.sum(jnp.exp(z), axis=-1, keepdims=True))
    r_ref[0] = jnp.concatenate([r1, r2, r3], axis=0)      # [3, merge]


# --------------------------- weight packing (wrapper) -------------------------

def _block_diag(mats):
    rows = sum(m.shape[0] for m in mats)
    cols = sum(m.shape[1] for m in mats)
    out = jnp.zeros((rows, cols), mats[0].dtype)
    r = c = 0
    for m in mats:
        out = out.at[r:r + m.shape[0], c:c + m.shape[1]].set(m)
        r += m.shape[0]
        c += m.shape[1]
    return out


def _stage_weight_pack(b1, b2, b3, aspect):
    """[w0_cat, b0_cat, Wbd_depth1, b_depth1, ..., Wbd_depthA, b_depthA].

    Depth-d layer of aspect i (1 <= d <= i+1) is block2[i][d-1] if d <= i,
    else block3[i]; active aspects at depth d are i in [d-1, aspect).
    Weights are fused block-diagonally per depth and cast to bf16.
    """
    pack = [
        jnp.concatenate([b1[i][0] for i in range(aspect)], axis=1).astype(jnp.bfloat16),
        jnp.concatenate([b1[i][1] for i in range(aspect)]).reshape(1, -1),
    ]
    for d in range(1, aspect + 1):
        ws, bs = [], []
        for i in range(d - 1, aspect):
            w, b = b2[i][d - 1] if d <= i else b3[i]
            ws.append(w)
            bs.append(b)
        pack.append(_block_diag(ws).astype(jnp.bfloat16))
        pack.append(jnp.concatenate(bs).reshape(1, -1))
    return pack


def net_forward(x, adj, params, pooling_ratio):
    """Fully-fused Net forward for a batch of equal-sized graphs."""
    G, n0, fin = x.shape
    aspect = len(params["block1"])
    nhid = params["block1"][0][0].shape[1]
    merge = sum(nhid * (i + 2) for i in range(aspect))
    num_classes = params["lin3_w"].shape[1]
    n1 = int(math.ceil(pooling_ratio * n0))
    n2 = int(math.ceil(pooling_ratio * n1))
    n3 = int(math.ceil(pooling_ratio * n2))

    # Stages 2 and 3 share block21/22/23 and the same SAGPool, as in the reference.
    pack1 = _stage_weight_pack(params["block1"], params["block2"], params["block3"], aspect)
    pack2 = _stage_weight_pack(params["block21"], params["block22"], params["block23"], aspect)

    bf = jnp.bfloat16
    args = ([adj, x] + pack1 + pack2 + [
        params["pool_w"], params["pool_b"].reshape(1, 1),
        params["k_weight"].astype(bf),
        params["lin1_w"].astype(bf), params["lin1_b"].reshape(1, -1),
        params["lin2_w"].astype(bf), params["lin2_b"].reshape(1, -1),
        params["lin3_w"].astype(bf), params["lin3_b"].reshape(1, -1),
    ])
    in_specs = [
        pl.BlockSpec((1, n0, n0), lambda g: (g, 0, 0)),
        pl.BlockSpec((1, n0, fin), lambda g: (g, 0, 0)),
    ] + [pl.BlockSpec(a.shape, lambda g: (0, 0)) for a in args[2:]]

    kernel = functools.partial(_net_kernel, aspect=aspect, nhid=nhid,
                               ks=(n1, n2, n3))
    logp, readouts = pl.pallas_call(
        kernel,
        out_shape=(
            jax.ShapeDtypeStruct((G, 1, num_classes), jnp.float32),
            jax.ShapeDtypeStruct((G, 3, merge), jnp.float32),
        ),
        grid=(G,),
        in_specs=in_specs,
        out_specs=(
            pl.BlockSpec((1, 1, num_classes), lambda g: (g, 0, 0)),
            pl.BlockSpec((1, 3, merge), lambda g: (g, 0, 0)),
        ),
        compiler_params=pltpu.CompilerParams(
            dimension_semantics=("parallel",)),   # graphs shard across TCs on v7x
    )(*args)
    return logp[:, 0, :], readouts[:, 0, :], readouts[:, 1, :], readouts[:, 2, :]


# --------------------------- parameter construction --------------------------

class KeyGen:
    def __init__(self, key):
        self._key = key

    def __call__(self):
        self._key, sub = jax.random.split(self._key)
        return sub


def glorot(key, fan_in, fan_out):
    lim = math.sqrt(6.0 / (fan_in + fan_out))
    return jax.random.uniform(key, (fan_in, fan_out), jnp.float32, -lim, lim)


def gcn_params(kg, fin, fout):
    return (glorot(kg(), fin, fout), jnp.zeros((fout,), jnp.float32))


def build_block_params(kg, aspect, input_dim, nhid):
    b1 = [gcn_params(kg, input_dim, nhid) for _ in range(aspect)]
    b2 = [[gcn_params(kg, nhid, nhid) for _ in range(i)] for i in range(aspect)]
    b3 = [gcn_params(kg, nhid, nhid) for _ in range(aspect)]
    return b1, b2, b3


def build_params(key, num_features, nhid, num_classes, aspect, max_k):
    kg = KeyGen(key)
    merge_dim = sum(nhid * (i + 2) for i in range(aspect))
    p = {}
    p["block1"], p["block2"], p["block3"] = build_block_params(kg, aspect, num_features, nhid)
    p["pool_w"], p["pool_b"] = gcn_params(kg, merge_dim, 1)
    p["block21"], p["block22"], p["block23"] = build_block_params(kg, aspect, merge_dim, nhid)
    p["k_weight"] = glorot(kg(), merge_dim * max_k, merge_dim)
    p["lin1_w"] = glorot(kg(), merge_dim, nhid)
    p["lin1_b"] = jnp.zeros((nhid,), jnp.float32)
    p["lin2_w"] = glorot(kg(), nhid, nhid // 2)
    p["lin2_b"] = jnp.zeros((nhid // 2,), jnp.float32)
    p["lin3_w"] = glorot(kg(), nhid // 2, num_classes)
    p["lin3_b"] = jnp.zeros((num_classes,), jnp.float32)
    return p, merge_dim


# ------------------------------------ main ------------------------------------

if __name__ == "__main__":
    NUM_FEATURES = 8
    NHID = 16
    NUM_CLASSES = 3
    POOLING_RATIO = 0.5
    ASPECT = 3
    MAX_K = 3          # args.multiblock (forward hardcodes 3 pooling stages)
    G = 2              # graphs in the batch
    N = 16             # nodes per graph

    root = jax.random.PRNGKey(0)
    k_params, k_x, k_adj = jax.random.split(root, 3)

    params, merge_dim = build_params(k_params, NUM_FEATURES, NHID, NUM_CLASSES,
                                     ASPECT, MAX_K)

    x = jax.random.normal(k_x, (G, N, NUM_FEATURES), jnp.float32)
    a = jax.random.bernoulli(k_adj, 0.3, (G, N, N)).astype(jnp.float32)
    a = jnp.triu(a, 1)
    adj = a + jnp.transpose(a, (0, 2, 1))          # symmetric, no self loops

    fwd = jax.jit(functools.partial(net_forward, pooling_ratio=POOLING_RATIO))
    logp, x1, x2, x3 = fwd(x, adj, params)
    jax.block_until_ready((logp, x1, x2, x3))

    assert logp.shape == (G, NUM_CLASSES)
    assert x1.shape == (G, merge_dim) and x2.shape == (G, merge_dim) and x3.shape == (G, merge_dim)
    assert bool(jnp.all(jnp.isfinite(logp)))
    print("KERNEL_OK")
</pallas_src>

<mosaic_0001>
module attributes {stable_mosaic.version = 11 : i64} {
  func.func @_net_kernel(%arg0: i32, %arg1: memref<1x16x16xf32, #tpu.memory_space<vmem>>, %arg2: memref<1x16x8xf32, #tpu.memory_space<vmem>>, %arg3: memref<8x48xbf16, #tpu.memory_space<vmem>>, %arg4: memref<1x48xf32, #tpu.memory_space<vmem>>, %arg5: memref<48x48xbf16, #tpu.memory_space<vmem>>, %arg6: memref<1x48xf32, #tpu.memory_space<vmem>>, %arg7: memref<32x32xbf16, #tpu.memory_space<vmem>>, %arg8: memref<1x32xf32, #tpu.memory_space<vmem>>, %arg9: memref<16x16xbf16, #tpu.memory_space<vmem>>, %arg10: memref<1x16xf32, #tpu.memory_space<vmem>>, %arg11: memref<144x48xbf16, #tpu.memory_space<vmem>>, %arg12: memref<1x48xf32, #tpu.memory_space<vmem>>, %arg13: memref<48x48xbf16, #tpu.memory_space<vmem>>, %arg14: memref<1x48xf32, #tpu.memory_space<vmem>>, %arg15: memref<32x32xbf16, #tpu.memory_space<vmem>>, %arg16: memref<1x32xf32, #tpu.memory_space<vmem>>, %arg17: memref<16x16xbf16, #tpu.memory_space<vmem>>, %arg18: memref<1x16xf32, #tpu.memory_space<vmem>>, %arg19: memref<144x1xf32, #tpu.memory_space<vmem>>, %arg20: memref<1x1xf32, #tpu.memory_space<vmem>>, %arg21: memref<432x144xbf16, #tpu.memory_space<vmem>>, %arg22: memref<144x16xbf16, #tpu.memory_space<vmem>>, %arg23: memref<1x16xf32, #tpu.memory_space<vmem>>, %arg24: memref<16x8xbf16, #tpu.memory_space<vmem>>, %arg25: memref<1x8xf32, #tpu.memory_space<vmem>>, %arg26: memref<8x3xbf16, #tpu.memory_space<vmem>>, %arg27: memref<1x3xf32, #tpu.memory_space<vmem>>, %arg28: memref<1x1x3xf32, #tpu.memory_space<vmem>>, %arg29: memref<1x3x144xf32, #tpu.memory_space<vmem>>) attributes {dimension_semantics = [#tpu.dimension_semantics<parallel>], iteration_bounds = array<i64: 2>, scalar_prefetch = 0 : i64, scratch_operands = 0 : i64, tpu.core_type = #tpu.core_type<tc>, window_params = [{transform_indices = @transform_0, window_bounds = array<i64: 1, 16, 16>}, {transform_indices = @transform_1, window_bounds = array<i64: 1, 16, 8>}, {pipeline_mode = #tpu.pipeline_mode<synchronous>, transform_indices = @transform_2, window_bounds = array<i64: 8, 48>}, {pipeline_mode = #tpu.pipeline_mode<synchronous>, transform_indices = @transform_3, window_bounds = array<i64: 1, 48>}, {pipeline_mode = #tpu.pipeline_mode<synchronous>, transform_indices = @transform_4, window_bounds = array<i64: 48, 48>}, {pipeline_mode = #tpu.pipeline_mode<synchronous>, transform_indices = @transform_5, window_bounds = array<i64: 1, 48>}, {pipeline_mode = #tpu.pipeline_mode<synchronous>, transform_indices = @transform_6, window_bounds = array<i64: 32, 32>}, {pipeline_mode = #tpu.pipeline_mode<synchronous>, transform_indices = @transform_7, window_bounds = array<i64: 1, 32>}, {pipeline_mode = #tpu.pipeline_mode<synchronous>, transform_indices = @transform_8, window_bounds = array<i64: 16, 16>}, {pipeline_mode = #tpu.pipeline_mode<synchronous>, transform_indices = @transform_9, window_bounds = array<i64: 1, 16>}, {pipeline_mode = #tpu.pipeline_mode<synchronous>, transform_indices = @transform_10, window_bounds = array<i64: 144, 48>}, {pipeline_mode = #tpu.pipeline_mode<synchronous>, transform_indices = @transform_11, window_bounds = array<i64: 1, 48>}, {pipeline_mode = #tpu.pipeline_mode<synchronous>, transform_indices = @transform_12, window_bounds = array<i64: 48, 48>}, {pipeline_mode = #tpu.pipeline_mode<synchronous>, transform_indices = @transform_13, window_bounds = array<i64: 1, 48>}, {pipeline_mode = #tpu.pipeline_mode<synchronous>, transform_indices = @transform_14, window_bounds = array<i64: 32, 32>}, {pipeline_mode = #tpu.pipeline_mode<synchronous>, transform_indices = @transform_15, window_bounds = array<i64: 1, 32>}, {pipeline_mode = #tpu.pipeline_mode<synchronous>, transform_indices = @transform_16, window_bounds = array<i64: 16, 16>}, {pipeline_mode = #tpu.pipeline_mode<synchronous>, transform_indices = @transform_17, window_bounds = array<i64: 1, 16>}, {pipeline_mode = #tpu.pipeline_mode<synchronous>, transform_indices = @transform_18, window_bounds = array<i64: 144, 1>}, {pipeline_mode = #tpu.pipeline_mode<synchronous>, transform_indices = @transform_19, window_bounds = array<i64: 1, 1>}, {pipeline_mode = #tpu.pipeline_mode<synchronous>, transform_indices = @transform_20, window_bounds = array<i64: 432, 144>}, {pipeline_mode = #tpu.pipeline_mode<synchronous>, transform_indices = @transform_21, window_bounds = array<i64: 144, 16>}, {pipeline_mode = #tpu.pipeline_mode<synchronous>, transform_indices = @transform_22, window_bounds = array<i64: 1, 16>}, {pipeline_mode = #tpu.pipeline_mode<synchronous>, transform_indices = @transform_23, window_bounds = array<i64: 16, 8>}, {pipeline_mode = #tpu.pipeline_mode<synchronous>, transform_indices = @transform_24, window_bounds = array<i64: 1, 8>}, {pipeline_mode = #tpu.pipeline_mode<synchronous>, transform_indices = @transform_25, window_bounds = array<i64: 8, 3>}, {pipeline_mode = #tpu.pipeline_mode<synchronous>, transform_indices = @transform_26, window_bounds = array<i64: 1, 3>}, {transform_indices = @transform_27, window_bounds = array<i64: 1, 1, 3>}, {transform_indices = @transform_28, window_bounds = array<i64: 1, 3, 144>}]} {
    %c0 = arith.constant 0 : index
    %c0_0 = arith.constant 0 : index
    %0 = vector.load %arg3[%c0, %c0_0] : memref<8x48xbf16, #tpu.memory_space<vmem>>, vector<8x48xbf16>
    %c0_1 = arith.constant 0 : index
    %c0_2 = arith.constant 0 : index
    %1 = vector.load %arg5[%c0_1, %c0_2] : memref<48x48xbf16, #tpu.memory_space<vmem>>, vector<48x48xbf16>
    %c0_3 = arith.constant 0 : index
    %c0_4 = arith.constant 0 : index
    %2 = vector.load %arg7[%c0_3, %c0_4] : memref<32x32xbf16, #tpu.memory_space<vmem>>, vector<32x32xbf16>
    %c0_5 = arith.constant 0 : index
    %c0_6 = arith.constant 0 : index
    %3 = vector.load %arg9[%c0_5, %c0_6] : memref<16x16xbf16, #tpu.memory_space<vmem>>, vector<16x16xbf16>
    %c0_7 = arith.constant 0 : index
    %c0_8 = arith.constant 0 : index
    %4 = vector.load %arg4[%c0_7, %c0_8] : memref<1x48xf32, #tpu.memory_space<vmem>>, vector<1x48xf32>
    %c0_9 = arith.constant 0 : index
    %c0_10 = arith.constant 0 : index
    %5 = vector.load %arg6[%c0_9, %c0_10] : memref<1x48xf32, #tpu.memory_space<vmem>>, vector<1x48xf32>
    %c0_11 = arith.constant 0 : index
    %c0_12 = arith.constant 0 : index
    %6 = vector.load %arg8[%c0_11, %c0_12] : memref<1x32xf32, #tpu.memory_space<vmem>>, vector<1x32xf32>
    %c0_13 = arith.constant 0 : index
    %c0_14 = arith.constant 0 : index
    %7 = vector.load %arg10[%c0_13, %c0_14] : memref<1x16xf32, #tpu.memory_space<vmem>>, vector<1x16xf32>
    %c0_15 = arith.constant 0 : index
    %c0_16 = arith.constant 0 : index
    %8 = vector.load %arg11[%c0_15, %c0_16] : memref<144x48xbf16, #tpu.memory_space<vmem>>, vector<144x48xbf16>
    %c0_17 = arith.constant 0 : index
    %c0_18 = arith.constant 0 : index
    %9 = vector.load %arg13[%c0_17, %c0_18] : memref<48x48xbf16, #tpu.memory_space<vmem>>, vector<48x48xbf16>
    %c0_19 = arith.constant 0 : index
    %c0_20 = arith.constant 0 : index
    %10 = vector.load %arg15[%c0_19, %c0_20] : memref<32x32xbf16, #tpu.memory_space<vmem>>, vector<32x32xbf16>
    %c0_21 = arith.constant 0 : index
    %c0_22 = arith.constant 0 : index
    %11 = vector.load %arg17[%c0_21, %c0_22] : memref<16x16xbf16, #tpu.memory_space<vmem>>, vector<16x16xbf16>
    %c0_23 = arith.constant 0 : index
    %c0_24 = arith.constant 0 : index
    %12 = vector.load %arg12[%c0_23, %c0_24] : memref<1x48xf32, #tpu.memory_space<vmem>>, vector<1x48xf32>
    %c0_25 = arith.constant 0 : index
    %c0_26 = arith.constant 0 : index
    %13 = vector.load %arg14[%c0_25, %c0_26] : memref<1x48xf32, #tpu.memory_space<vmem>>, vector<1x48xf32>
    %c0_27 = arith.constant 0 : index
    %c0_28 = arith.constant 0 : index
    %14 = vector.load %arg16[%c0_27, %c0_28] : memref<1x32xf32, #tpu.memory_space<vmem>>, vector<1x32xf32>
    %c0_29 = arith.constant 0 : index
    %c0_30 = arith.constant 0 : index
    %15 = vector.load %arg18[%c0_29, %c0_30] : memref<1x16xf32, #tpu.memory_space<vmem>>, vector<1x16xf32>
    %c0_31 = arith.constant 0 : index
    %c0_32 = arith.constant 0 : index
    %16 = vector.load %arg19[%c0_31, %c0_32] : memref<144x1xf32, #tpu.memory_space<vmem>>, vector<144x1xf32>
    %17 = arith.truncf %16 : vector<144x1xf32> to vector<144x1xbf16>
    %c0_33 = arith.constant 0 : index
    %c0_34 = arith.constant 0 : index
    %18 = vector.load %arg20[%c0_33, %c0_34] : memref<1x1xf32, #tpu.memory_space<vmem>>, vector<1x1xf32>
    %c0_35 = arith.constant 0 : index
    %c0_36 = arith.constant 0 : index
    %c0_37 = arith.constant 0 : index
    %19 = vector.load %arg1[%c0_35, %c0_36, %c0_37] : memref<1x16x16xf32, #tpu.memory_space<vmem>>, vector<1x16x16xf32>
    %20 = vector.shape_cast %19 : vector<1x16x16xf32> to vector<16x16xf32>
    %c0_38 = arith.constant 0 : index
    %c0_39 = arith.constant 0 : index
    %c0_40 = arith.constant 0 : index
    %21 = vector.load %arg2[%c0_38, %c0_39, %c0_40] : memref<1x16x8xf32, #tpu.memory_space<vmem>>, vector<1x16x8xf32>
    %22 = vector.shape_cast %21 : vector<1x16x8xf32> to vector<16x8xf32>
    %23 = tpu.iota {dimensions = array<i32: 0>} : vector<16x16xi32>
    %24 = tpu.iota {dimensions = array<i32: 1>} : vector<16x16xi32>
    %25 = arith.cmpi eq, %23, %24 : vector<16x16xi32>
    %26 = arith.extui %25 : vector<16x16xi1> to vector<16x16xi32>
    %27 = arith.sitofp %26 : vector<16x16xi32> to vector<16x16xf32>
    %28 = arith.addf %20, %27 : vector<16x16xf32>
    %cst = arith.constant dense<0.000000e+00> : vector<16xf32>
    %29 = vector.multi_reduction <add>, %28, %cst [1] : vector<16x16xf32> to vector<16xf32>
    %30 = vector.shape_cast %29 : vector<16xf32> to vector<16x1xf32>
    %31 = math.rsqrt %30 : vector<16x1xf32>
    %32 = vector.broadcast %31 : vector<16x1xf32> to vector<16x16xf32>
    %33 = arith.mulf %28, %32 : vector<16x16xf32>
    %34 = tpu.transpose %31, [1, 0] : vector<16x1xf32> -> vector<1x16xf32>
    %35 = vector.broadcast %34 : vector<1x16xf32> to vector<16x16xf32>
    %36 = arith.mulf %33, %35 : vector<16x16xf32>
    %37 = arith.truncf %36 : vector<16x16xf32> to vector<16x16xbf16>
    %38 = arith.truncf %22 : vector<16x8xf32> to vector<16x8xbf16>
    %cst_41 = arith.constant dense<0.000000e+00> : vector<16x48xf32>
    %39 = tpu.matmul %38, %0, %cst_41 {dimension_numbers = #tpu.dot_dimension_numbers<[1], [0], [0], [1], [0, 0, 1, 1], [], []>} : vector<16x8xbf16>, vector<8x48xbf16>, vector<16x48xf32> -> vector<16x48xf32>
    %40 = arith.truncf %39 : vector<16x48xf32> to vector<16x48xbf16>
    %cst_42 = arith.constant dense<0.000000e+00> : vector<16x48xf32>
    %41 = tpu.matmul %37, %40, %cst_42 {dimension_numbers = #tpu.dot_dimension_numbers<[1], [0], [0], [1], [0, 0, 1, 1], [], []>} : vector<16x16xbf16>, vector<16x48xbf16>, vector<16x48xf32> -> vector<16x48xf32>
    %42 = vector.broadcast %4 : vector<1x48xf32> to vector<16x48xf32>
    %43 = arith.addf %41, %42 : vector<16x48xf32>
    %cst_43 = arith.constant 0.000000e+00 : f32
    %44 = vector.broadcast %cst_43 : f32 to vector<16x48xf32>
    %45 = arith.maximumf %43, %44 : vector<16x48xf32>
    %46 = arith.truncf %45 : vector<16x48xf32> to vector<16x48xbf16>
    %cst_44 = arith.constant dense<0.000000e+00> : vector<16x48xf32>
    %47 = tpu.matmul %46, %1, %cst_44 {dimension_numbers = #tpu.dot_dimension_numbers<[1], [0], [0], [1], [0, 0, 1, 1], [], []>} : vector<16x48xbf16>, vector<48x48xbf16>, vector<16x48xf32> -> vector<16x48xf32>
    %48 = arith.truncf %47 : vector<16x48xf32> to vector<16x48xbf16>
    %cst_45 = arith.constant dense<0.000000e+00> : vector<16x48xf32>
    %49 = tpu.matmul %37, %48, %cst_45 {dimension_numbers = #tpu.dot_dimension_numbers<[1], [0], [0], [1], [0, 0, 1, 1], [], []>} : vector<16x16xbf16>, vector<16x48xbf16>, vector<16x48xf32> -> vector<16x48xf32>
    %50 = vector.broadcast %5 : vector<1x48xf32> to vector<16x48xf32>
    %51 = arith.addf %49, %50 : vector<16x48xf32>
    %cst_46 = arith.constant 0.000000e+00 : f32
    %52 = vector.broadcast %cst_46 : f32 to vector<16x48xf32>
    %53 = arith.maximumf %51, %52 : vector<16x48xf32>
    %54 = vector.extract_strided_slice %53 {offsets = [0, 16], sizes = [16, 32], strides = [1, 1]} : vector<16x48xf32> to vector<16x32xf32>
    %55 = arith.truncf %54 : vector<16x32xf32> to vector<16x32xbf16>
    %cst_47 = arith.constant dense<0.000000e+00> : vector<16x32xf32>
    %56 = tpu.matmul %55, %2, %cst_47 {dimension_numbers = #tpu.dot_dimension_numbers<[1], [0], [0], [1], [0, 0, 1, 1], [], []>} : vector<16x32xbf16>, vector<32x32xbf16>, vector<16x32xf32> -> vector<16x32xf32>
    %57 = arith.truncf %56 : vector<16x32xf32> to vector<16x32xbf16>
    %cst_48 = arith.constant dense<0.000000e+00> : vector<16x32xf32>
    %58 = tpu.matmul %37, %57, %cst_48 {dimension_numbers = #tpu.dot_dimension_numbers<[1], [0], [0], [1], [0, 0, 1, 1], [], []>} : vector<16x16xbf16>, vector<16x32xbf16>, vector<16x32xf32> -> vector<16x32xf32>
    %59 = vector.broadcast %6 : vector<1x32xf32> to vector<16x32xf32>
    %60 = arith.addf %58, %59 : vector<16x32xf32>
    %cst_49 = arith.constant 0.000000e+00 : f32
    %61 = vector.broadcast %cst_49 : f32 to vector<16x32xf32>
    %62 = arith.maximumf %60, %61 : vector<16x32xf32>
    %63 = vector.extract_strided_slice %62 {offsets = [0, 16], sizes = [16, 16], strides = [1, 1]} : vector<16x32xf32> to vector<16x16xf32>
    %64 = arith.truncf %63 : vector<16x16xf32> to vector<16x16xbf16>
    %cst_50 = arith.constant dense<0.000000e+00> : vector<16x16xf32>
    %65 = tpu.matmul %64, %3, %cst_50 {dimension_numbers = #tpu.dot_dimension_numbers<[1], [0], [0], [1], [0, 0, 1, 1], [], []>} : vector<16x16xbf16>, vector<16x16xbf16>, vector<16x16xf32> -> vector<16x16xf32>
    %66 = arith.truncf %65 : vector<16x16xf32> to vector<16x16xbf16>
    %cst_51 = arith.constant dense<0.000000e+00> : vector<16x16xf32>
    %67 = tpu.matmul %37, %66, %cst_51 {dimension_numbers = #tpu.dot_dimension_numbers<[1], [0], [0], [1], [0, 0, 1, 1], [], []>} : vector<16x16xbf16>, vector<16x16xbf16>, vector<16x16xf32> -> vector<16x16xf32>
    %68 = vector.broadcast %7 : vector<1x16xf32> to vector<16x16xf32>
    %69 = arith.addf %67, %68 : vector<16x16xf32>
    %cst_52 = arith.constant 0.000000e+00 : f32
    %70 = vector.broadcast %cst_52 : f32 to vector<16x16xf32>
    %71 = arith.maximumf %69, %70 : vector<16x16xf32>
    %72 = vector.extract_strided_slice %45 {offsets = [0, 0], sizes = [16, 16], strides = [1, 1]} : vector<16x48xf32> to vector<16x16xf32>
    %73 = vector.extract_strided_slice %53 {offsets = [0, 0], sizes = [16, 16], strides = [1, 1]} : vector<16x48xf32> to vector<16x16xf32>
    %74 = vector.extract_strided_slice %45 {offsets = [0, 16], sizes = [16, 16], strides = [1, 1]} : vector<16x48xf32> to vector<16x16xf32>
    %75 = vector.extract_strided_slice %53 {offsets = [0, 16], sizes = [16, 16], strides = [1, 1]} : vector<16x48xf32> to vector<16x16xf32>
    %76 = vector.extract_strided_slice %62 {offsets = [0, 0], sizes = [16, 16], strides = [1, 1]} : vector<16x32xf32> to vector<16x16xf32>
    %77 = vector.extract_strided_slice %45 {offsets = [0, 32], sizes = [16, 16], strides = [1, 1]} : vector<16x48xf32> to vector<16x16xf32>
    %78 = vector.extract_strided_slice %53 {offsets = [0, 32], sizes = [16, 16], strides = [1, 1]} : vector<16x48xf32> to vector<16x16xf32>
    %79 = vector.extract_strided_slice %62 {offsets = [0, 16], sizes = [16, 16], strides = [1, 1]} : vector<16x32xf32> to vector<16x16xf32>
    %80 = tpu.concatenate %72, %73, %74, %75, %76, %77, %78, %79, %71 in 1 : vector<16x16xf32>, vector<16x16xf32>, vector<16x16xf32>, vector<16x16xf32>, vector<16x16xf32>, vector<16x16xf32>, vector<16x16xf32>, vector<16x16xf32>, vector<16x16xf32> -> vector<16x144xf32>
    %81 = arith.truncf %80 : vector<16x144xf32> to vector<16x144xbf16>
    %cst_53 = arith.constant dense<0.000000e+00> : vector<16x1xf32>
    %82 = tpu.matmul %81, %17, %cst_53 {dimension_numbers = #tpu.dot_dimension_numbers<[1], [0], [0], [1], [0, 0, 1, 1], [], []>} : vector<16x144xbf16>, vector<144x1xbf16>, vector<16x1xf32> -> vector<16x1xf32>
    %83 = arith.truncf %82 : vector<16x1xf32> to vector<16x1xbf16>
    %cst_54 = arith.constant dense<0.000000e+00> : vector<16x1xf32>
    %84 = tpu.matmul %37, %83, %cst_54 {dimension_numbers = #tpu.dot_dimension_numbers<[1], [0], [0], [1], [0, 0, 1, 1], [], []>} : vector<16x16xbf16>, vector<16x1xbf16>, vector<16x1xf32> -> vector<16x1xf32>
    %85 = vector.broadcast %18 : vector<1x1xf32> to vector<16x1xf32>
    %86 = arith.addf %84, %85 : vector<16x1xf32>
    %87 = tpu.transpose %86, [1, 0] : vector<16x1xf32> -> vector<1x16xf32>
    %88 = vector.broadcast %87 : vector<1x16xf32> to vector<16x16xf32>
    %89 = vector.broadcast %86 : vector<16x1xf32> to vector<16x16xf32>
    %90 = arith.cmpf ogt, %88, %89 : vector<16x16xf32>
    %91 = vector.broadcast %87 : vector<1x16xf32> to vector<16x16xf32>
    %92 = vector.broadcast %86 : vector<16x1xf32> to vector<16x16xf32>
    %93 = arith.cmpf oeq, %91, %92 : vector<16x16xf32>
    %94 = arith.cmpi slt, %24, %23 : vector<16x16xi32>
    %95 = arith.andi %93, %94 : vector<16x16xi1>
    %96 = arith.ori %90, %95 : vector<16x16xi1>
    %97 = arith.extui %96 : vector<16x16xi1> to vector<16x16xi32>
    %98 = arith.sitofp %97 : vector<16x16xi32> to vector<16x16xf32>
    %cst_55 = arith.constant dense<0.000000e+00> : vector<16xf32>
    %99 = vector.multi_reduction <add>, %98, %cst_55 [1] : vector<16x16xf32> to vector<16xf32>
    %100 = vector.shape_cast %99 : vector<16xf32> to vector<16x1xf32>
    %101 = tpu.iota {dimensions = array<i32: 0>} : vector<8x16xi32>
    %102 = arith.sitofp %101 : vector<8x16xi32> to vector<8x16xf32>
    %103 = tpu.transpose %100, [1, 0] : vector<16x1xf32> -> vector<1x16xf32>
    %104 = vector.broadcast %103 : vector<1x16xf32> to vector<8x16xf32>
    %105 = arith.cmpf oeq, %102, %104 : vector<8x16xf32>
    %106 = arith.extui %105 : vector<8x16xi1> to vector<8x16xi32>
    %107 = arith.sitofp %106 : vector<8x16xi32> to vector<8x16xf32>
    %108 = arith.truncf %107 : vector<8x16xf32> to vector<8x16xbf16>
    %109 = math.tanh %86 : vector<16x1xf32>
    %110 = vector.broadcast %109 : vector<16x1xf32> to vector<16x144xf32>
    %111 = arith.mulf %80, %110 : vector<16x144xf32>
    %112 = arith.truncf %111 : vector<16x144xf32> to vector<16x144xbf16>
    %cst_56 = arith.constant dense<0.000000e+00> : vector<8x144xf32>
    %113 = tpu.matmul %108, %112, %cst_56 {dimension_numbers = #tpu.dot_dimension_numbers<[1], [0], [0], [1], [0, 0, 1, 1], [], []>} : vector<8x16xbf16>, vector<16x144xbf16>, vector<8x144xf32> -> vector<8x144xf32>
    %cst_57 = arith.constant dense<0xFF800000> : vector<144xf32>
    %114 = vector.multi_reduction <maximumf>, %113, %cst_57 [0] : vector<8x144xf32> to vector<144xf32>
    %115 = vector.shape_cast %114 : vector<144xf32> to vector<1x144xf32>
    %116 = tpu.iota {dimensions = array<i32: 1>} : vector<16x8xi32>
    %117 = arith.sitofp %116 : vector<16x8xi32> to vector<16x8xf32>
    %118 = vector.broadcast %100 : vector<16x1xf32> to vector<16x8xf32>
    %119 = arith.cmpf oeq, %117, %118 : vector<16x8xf32>
    %120 = arith.extui %119 : vector<16x8xi1> to vector<16x8xi32>
    %121 = arith.sitofp %120 : vector<16x8xi32> to vector<16x8xf32>
    %122 = arith.truncf %121 : vector<16x8xf32> to vector<16x8xbf16>
    %123 = arith.truncf %20 : vector<16x16xf32> to vector<16x16xbf16>
    %cst_58 = arith.constant dense<0.000000e+00> : vector<8x16xf32>
    %124 = tpu.matmul %108, %123, %cst_58 {dimension_numbers = #tpu.dot_dimension_numbers<[1], [0], [0], [1], [0, 0, 1, 1], [], []>} : vector<8x16xbf16>, vector<16x16xbf16>, vector<8x16xf32> -> vector<8x16xf32>
    %125 = arith.truncf %124 : vector<8x16xf32> to vector<8x16xbf16>
    %cst_59 = arith.constant dense<0.000000e+00> : vector<8x8xf32>
    %126 = tpu.matmul %125, %122, %cst_59 {dimension_numbers = #tpu.dot_dimension_numbers<[1], [0], [0], [1], [0, 0, 1, 1], [], []>} : vector<8x16xbf16>, vector<16x8xbf16>, vector<8x8xf32> -> vector<8x8xf32>
    %127 = tpu.iota {dimensions = array<i32: 0>} : vector<8x8xi32>
    %128 = tpu.iota {dimensions = array<i32: 1>} : vector<8x8xi32>
    %129 = arith.cmpi eq, %127, %128 : vector<8x8xi32>
    %130 = arith.extui %129 : vector<8x8xi1> to vector<8x8xi32>
    %131 = arith.sitofp %130 : vector<8x8xi32> to vector<8x8xf32>
    %132 = arith.addf %126, %131 : vector<8x8xf32>
    %cst_60 = arith.constant dense<0.000000e+00> : vector<8xf32>
    %133 = vector.multi_reduction <add>, %132, %cst_60 [1] : vector<8x8xf32> to vector<8xf32>
    %134 = vector.shape_cast %133 : vector<8xf32> to vector<8x1xf32>
    %135 = math.rsqrt %134 : vector<8x1xf32>
    %136 = vector.broadcast %135 : vector<8x1xf32> to vector<8x8xf32>
    %137 = arith.mulf %132, %136 : vector<8x8xf32>
    %138 = tpu.transpose %135, [1, 0] : vector<8x1xf32> -> vector<1x8xf32>
    %139 = vector.broadcast %138 : vector<1x8xf32> to vector<8x8xf32>
    %140 = arith.mulf %137, %139 : vector<8x8xf32>
    %141 = arith.truncf %140 : vector<8x8xf32> to vector<8x8xbf16>
    %142 = arith.truncf %113 : vector<8x144xf32> to vector<8x144xbf16>
    %cst_61 = arith.constant dense<0.000000e+00> : vector<8x48xf32>
    %143 = tpu.matmul %142, %8, %cst_61 {dimension_numbers = #tpu.dot_dimension_numbers<[1], [0], [0], [1], [0, 0, 1, 1], [], []>} : vector<8x144xbf16>, vector<144x48xbf16>, vector<8x48xf32> -> vector<8x48xf32>
    %144 = arith.truncf %143 : vector<8x48xf32> to vector<8x48xbf16>
    %cst_62 = arith.constant dense<0.000000e+00> : vector<8x48xf32>
    %145 = tpu.matmul %141, %144, %cst_62 {dimension_numbers = #tpu.dot_dimension_numbers<[1], [0], [0], [1], [0, 0, 1, 1], [], []>} : vector<8x8xbf16>, vector<8x48xbf16>, vector<8x48xf32> -> vector<8x48xf32>
    %146 = vector.broadcast %12 : vector<1x48xf32> to vector<8x48xf32>
    %147 = arith.addf %145, %146 : vector<8x48xf32>
    %cst_63 = arith.constant 0.000000e+00 : f32
    %148 = vector.broadcast %cst_63 : f32 to vector<8x48xf32>
    %149 = arith.maximumf %147, %148 : vector<8x48xf32>
    %150 = arith.truncf %149 : vector<8x48xf32> to vector<8x48xbf16>
    %cst_64 = arith.constant dense<0.000000e+00> : vector<8x48xf32>
    %151 = tpu.matmul %150, %9, %cst_64 {dimension_numbers = #tpu.dot_dimension_numbers<[1], [0], [0], [1], [0, 0, 1, 1], [], []>} : vector<8x48xbf16>, vector<48x48xbf16>, vector<8x48xf32> -> vector<8x48xf32>
    %152 = arith.truncf %151 : vector<8x48xf32> to vector<8x48xbf16>
    %cst_65 = arith.constant dense<0.000000e+00> : vector<8x48xf32>
    %153 = tpu.matmul %141, %152, %cst_65 {dimension_numbers = #tpu.dot_dimension_numbers<[1], [0], [0], [1], [0, 0, 1, 1], [], []>} : vector<8x8xbf16>, vector<8x48xbf16>, vector<8x48xf32> -> vector<8x48xf32>
    %154 = vector.broadcast %13 : vector<1x48xf32> to vector<8x48xf32>
    %155 = arith.addf %153, %154 : vector<8x48xf32>
    %cst_66 = arith.constant 0.000000e+00 : f32
    %156 = vector.broadcast %cst_66 : f32 to vector<8x48xf32>
    %157 = arith.maximumf %155, %156 : vector<8x48xf32>
    %158 = vector.extract_strided_slice %157 {offsets = [0, 16], sizes = [8, 32], strides = [1, 1]} : vector<8x48xf32> to vector<8x32xf32>
    %159 = arith.truncf %158 : vector<8x32xf32> to vector<8x32xbf16>
    %cst_67 = arith.constant dense<0.000000e+00> : vector<8x32xf32>
    %160 = tpu.matmul %159, %10, %cst_67 {dimension_numbers = #tpu.dot_dimension_numbers<[1], [0], [0], [1], [0, 0, 1, 1], [], []>} : vector<8x32xbf16>, vector<32x32xbf16>, vector<8x32xf32> -> vector<8x32xf32>
    %161 = arith.truncf %160 : vector<8x32xf32> to vector<8x32xbf16>
    %cst_68 = arith.constant dense<0.000000e+00> : vector<8x32xf32>
    %162 = tpu.matmul %141, %161, %cst_68 {dimension_numbers = #tpu.dot_dimension_numbers<[1], [0], [0], [1], [0, 0, 1, 1], [], []>} : vector<8x8xbf16>, vector<8x32xbf16>, vector<8x32xf32> -> vector<8x32xf32>
    %163 = vector.broadcast %14 : vector<1x32xf32> to vector<8x32xf32>
    %164 = arith.addf %162, %163 : vector<8x32xf32>
    %cst_69 = arith.constant 0.000000e+00 : f32
    %165 = vector.broadcast %cst_69 : f32 to vector<8x32xf32>
    %166 = arith.maximumf %164, %165 : vector<8x32xf32>
    %167 = vector.extract_strided_slice %166 {offsets = [0, 16], sizes = [8, 16], strides = [1, 1]} : vector<8x32xf32> to vector<8x16xf32>
    %168 = arith.truncf %167 : vector<8x16xf32> to vector<8x16xbf16>
    %cst_70 = arith.constant dense<0.000000e+00> : vector<8x16xf32>
    %169 = tpu.matmul %168, %11, %cst_70 {dimension_numbers = #tpu.dot_dimension_numbers<[1], [0], [0], [1], [0, 0, 1, 1], [], []>} : vector<8x16xbf16>, vector<16x16xbf16>, vector<8x16xf32> -> vector<8x16xf32>
    %170 = arith.truncf %169 : vector<8x16xf32> to vector<8x16xbf16>
    %cst_71 = arith.constant dense<0.000000e+00> : vector<8x16xf32>
    %171 = tpu.matmul %141, %170, %cst_71 {dimension_numbers = #tpu.dot_dimension_numbers<[1], [0], [0], [1], [0, 0, 1, 1], [], []>} : vector<8x8xbf16>, vector<8x16xbf16>, vector<8x16xf32> -> vector<8x16xf32>
    %172 = vector.broadcast %15 : vector<1x16xf32> to vector<8x16xf32>
    %173 = arith.addf %171, %172 : vector<8x16xf32>
    %cst_72 = arith.constant 0.000000e+00 : f32
    %174 = vector.broadcast %cst_72 : f32 to vector<8x16xf32>
    %175 = arith.maximumf %173, %174 : vector<8x16xf32>
    %176 = vector.extract_strided_slice %149 {offsets = [0, 0], sizes = [8, 16], strides = [1, 1]} : vector<8x48xf32> to vector<8x16xf32>
    %177 = vector.extract_strided_slice %157 {offsets = [0, 0], sizes = [8, 16], strides = [1, 1]} : vector<8x48xf32> to vector<8x16xf32>
    %178 = vector.extract_strided_slice %149 {offsets = [0, 16], sizes = [8, 16], strides = [1, 1]} : vector<8x48xf32> to vector<8x16xf32>
    %179 = vector.extract_strided_slice %157 {offsets = [0, 16], sizes = [8, 16], strides = [1, 1]} : vector<8x48xf32> to vector<8x16xf32>
    %180 = vector.extract_strided_slice %166 {offsets = [0, 0], sizes = [8, 16], strides = [1, 1]} : vector<8x32xf32> to vector<8x16xf32>
    %181 = vector.extract_strided_slice %149 {offsets = [0, 32], sizes = [8, 16], strides = [1, 1]} : vector<8x48xf32> to vector<8x16xf32>
    %182 = vector.extract_strided_slice %157 {offsets = [0, 32], sizes = [8, 16], strides = [1, 1]} : vector<8x48xf32> to vector<8x16xf32>
    %183 = vector.extract_strided_slice %166 {offsets = [0, 16], sizes = [8, 16], strides = [1, 1]} : vector<8x32xf32> to vector<8x16xf32>
    %184 = tpu.concatenate %176, %177, %178, %179, %180, %181, %182, %183, %175 in 1 : vector<8x16xf32>, vector<8x16xf32>, vector<8x16xf32>, vector<8x16xf32>, vector<8x16xf32>, vector<8x16xf32>, vector<8x16xf32>, vector<8x16xf32>, vector<8x16xf32> -> vector<8x144xf32>
    %185 = arith.truncf %184 : vector<8x144xf32> to vector<8x144xbf16>
    %cst_73 = arith.constant dense<0.000000e+00> : vector<8x1xf32>
    %186 = tpu.matmul %185, %17, %cst_73 {dimension_numbers = #tpu.dot_dimension_numbers<[1], [0], [0], [1], [0, 0, 1, 1], [], []>} : vector<8x144xbf16>, vector<144x1xbf16>, vector<8x1xf32> -> vector<8x1xf32>
    %187 = arith.truncf %186 : vector<8x1xf32> to vector<8x1xbf16>
    %cst_74 = arith.constant dense<0.000000e+00> : vector<8x1xf32>
    %188 = tpu.matmul %141, %187, %cst_74 {dimension_numbers = #tpu.dot_dimension_numbers<[1], [0], [0], [1], [0, 0, 1, 1], [], []>} : vector<8x8xbf16>, vector<8x1xbf16>, vector<8x1xf32> -> vector<8x1xf32>
    %189 = vector.broadcast %18 : vector<1x1xf32> to vector<8x1xf32>
    %190 = arith.addf %188, %189 : vector<8x1xf32>
    %191 = tpu.transpose %190, [1, 0] : vector<8x1xf32> -> vector<1x8xf32>
    %192 = vector.broadcast %191 : vector<1x8xf32> to vector<8x8xf32>
    %193 = vector.broadcast %190 : vector<8x1xf32> to vector<8x8xf32>
    %194 = arith.cmpf ogt, %192, %193 : vector<8x8xf32>
    %195 = vector.broadcast %191 : vector<1x8xf32> to vector<8x8xf32>
    %196 = vector.broadcast %190 : vector<8x1xf32> to vector<8x8xf32>
    %197 = arith.cmpf oeq, %195, %196 : vector<8x8xf32>
    %198 = arith.cmpi slt, %128, %127 : vector<8x8xi32>
    %199 = arith.andi %197, %198 : vector<8x8xi1>
    %200 = arith.ori %194, %199 : vector<8x8xi1>
    %201 = arith.extui %200 : vector<8x8xi1> to vector<8x8xi32>
    %202 = arith.sitofp %201 : vector<8x8xi32> to vector<8x8xf32>
    %cst_75 = arith.constant dense<0.000000e+00> : vector<8xf32>
    %203 = vector.multi_reduction <add>, %202, %cst_75 [1] : vector<8x8xf32> to vector<8xf32>
    %204 = vector.shape_cast %203 : vector<8xf32> to vector<8x1xf32>
    %205 = tpu.iota {dimensions = array<i32: 0>} : vector<4x8xi32>
    %206 = arith.sitofp %205 : vector<4x8xi32> to vector<4x8xf32>
    %207 = tpu.transpose %204, [1, 0] : vector<8x1xf32> -> vector<1x8xf32>
    %208 = vector.broadcast %207 : vector<1x8xf32> to vector<4x8xf32>
    %209 = arith.cmpf oeq, %206, %208 : vector<4x8xf32>
    %210 = arith.extui %209 : vector<4x8xi1> to vector<4x8xi32>
    %211 = arith.sitofp %210 : vector<4x8xi32> to vector<4x8xf32>
    %212 = arith.truncf %211 : vector<4x8xf32> to vector<4x8xbf16>
    %213 = math.tanh %190 : vector<8x1xf32>
    %214 = vector.broadcast %213 : vector<8x1xf32> to vector<8x144xf32>
    %215 = arith.mulf %184, %214 : vector<8x144xf32>
    %216 = arith.truncf %215 : vector<8x144xf32> to vector<8x144xbf16>
    %cst_76 = arith.constant dense<0.000000e+00> : vector<4x144xf32>
    %217 = tpu.matmul %212, %216, %cst_76 {dimension_numbers = #tpu.dot_dimension_numbers<[1], [0], [0], [1], [0, 0, 1, 1], [], []>} : vector<4x8xbf16>, vector<8x144xbf16>, vector<4x144xf32> -> vector<4x144xf32>
    %cst_77 = arith.constant dense<0xFF800000> : vector<144xf32>
    %218 = vector.multi_reduction <maximumf>, %217, %cst_77 [0] : vector<4x144xf32> to vector<144xf32>
    %219 = vector.shape_cast %218 : vector<144xf32> to vector<1x144xf32>
    %220 = tpu.iota {dimensions = array<i32: 1>} : vector<8x4xi32>
    %221 = arith.sitofp %220 : vector<8x4xi32> to vector<8x4xf32>
    %222 = vector.broadcast %204 : vector<8x1xf32> to vector<8x4xf32>
    %223 = arith.cmpf oeq, %221, %222 : vector<8x4xf32>
    %224 = arith.extui %223 : vector<8x4xi1> to vector<8x4xi32>
    %225 = arith.sitofp %224 : vector<8x4xi32> to vector<8x4xf32>
    %226 = arith.truncf %225 : vector<8x4xf32> to vector<8x4xbf16>
    %227 = arith.truncf %126 : vector<8x8xf32> to vector<8x8xbf16>
    %cst_78 = arith.constant dense<0.000000e+00> : vector<4x8xf32>
    %228 = tpu.matmul %212, %227, %cst_78 {dimension_numbers = #tpu.dot_dimension_numbers<[1], [0], [0], [1], [0, 0, 1, 1], [], []>} : vector<4x8xbf16>, vector<8x8xbf16>, vector<4x8xf32> -> vector<4x8xf32>
    %229 = arith.truncf %228 : vector<4x8xf32> to vector<4x8xbf16>
    %cst_79 = arith.constant dense<0.000000e+00> : vector<4x4xf32>
    %230 = tpu.matmul %229, %226, %cst_79 {dimension_numbers = #tpu.dot_dimension_numbers<[1], [0], [0], [1], [0, 0, 1, 1], [], []>} : vector<4x8xbf16>, vector<8x4xbf16>, vector<4x4xf32> -> vector<4x4xf32>
    %231 = tpu.iota {dimensions = array<i32: 0>} : vector<4x4xi32>
    %232 = tpu.iota {dimensions = array<i32: 1>} : vector<4x4xi32>
    %233 = arith.cmpi eq, %231, %232 : vector<4x4xi32>
    %234 = arith.extui %233 : vector<4x4xi1> to vector<4x4xi32>
    %235 = arith.sitofp %234 : vector<4x4xi32> to vector<4x4xf32>
    %236 = arith.addf %230, %235 : vector<4x4xf32>
    %cst_80 = arith.constant dense<0.000000e+00> : vector<4xf32>
    %237 = vector.multi_reduction <add>, %236, %cst_80 [1] : vector<4x4xf32> to vector<4xf32>
    %238 = vector.shape_cast %237 : vector<4xf32> to vector<4x1xf32>
    %239 = math.rsqrt %238 : vector<4x1xf32>
    %240 = vector.broadcast %239 : vector<4x1xf32> to vector<4x4xf32>
    %241 = arith.mulf %236, %240 : vector<4x4xf32>
    %242 = tpu.transpose %239, [1, 0] : vector<4x1xf32> -> vector<1x4xf32>
    %243 = vector.broadcast %242 : vector<1x4xf32> to vector<4x4xf32>
    %244 = arith.mulf %241, %243 : vector<4x4xf32>
    %245 = arith.truncf %244 : vector<4x4xf32> to vector<4x4xbf16>
    %246 = arith.truncf %217 : vector<4x144xf32> to vector<4x144xbf16>
    %cst_81 = arith.constant dense<0.000000e+00> : vector<4x48xf32>
    %247 = tpu.matmul %246, %8, %cst_81 {dimension_numbers = #tpu.dot_dimension_numbers<[1], [0], [0], [1], [0, 0, 1, 1], [], []>} : vector<4x144xbf16>, vector<144x48xbf16>, vector<4x48xf32> -> vector<4x48xf32>
    %248 = arith.truncf %247 : vector<4x48xf32> to vector<4x48xbf16>
    %cst_82 = arith.constant dense<0.000000e+00> : vector<4x48xf32>
    %249 = tpu.matmul %245, %248, %cst_82 {dimension_numbers = #tpu.dot_dimension_numbers<[1], [0], [0], [1], [0, 0, 1, 1], [], []>} : vector<4x4xbf16>, vector<4x48xbf16>, vector<4x48xf32> -> vector<4x48xf32>
    %250 = vector.broadcast %12 : vector<1x48xf32> to vector<4x48xf32>
    %251 = arith.addf %249, %250 : vector<4x48xf32>
    %cst_83 = arith.constant 0.000000e+00 : f32
    %252 = vector.broadcast %cst_83 : f32 to vector<4x48xf32>
    %253 = arith.maximumf %251, %252 : vector<4x48xf32>
    %254 = arith.truncf %253 : vector<4x48xf32> to vector<4x48xbf16>
    %cst_84 = arith.constant dense<0.000000e+00> : vector<4x48xf32>
    %255 = tpu.matmul %254, %9, %cst_84 {dimension_numbers = #tpu.dot_dimension_numbers<[1], [0], [0], [1], [0, 0, 1, 1], [], []>} : vector<4x48xbf16>, vector<48x48xbf16>, vector<4x48xf32> -> vector<4x48xf32>
    %256 = arith.truncf %255 : vector<4x48xf32> to vector<4x48xbf16>
    %cst_85 = arith.constant dense<0.000000e+00> : vector<4x48xf32>
    %257 = tpu.matmul %245, %256, %cst_85 {dimension_numbers = #tpu.dot_dimension_numbers<[1], [0], [0], [1], [0, 0, 1, 1], [], []>} : vector<4x4xbf16>, vector<4x48xbf16>, vector<4x48xf32> -> vector<4x48xf32>
    %258 = vector.broadcast %13 : vector<1x48xf32> to vector<4x48xf32>
    %259 = arith.addf %257, %258 : vector<4x48xf32>
    %cst_86 = arith.constant 0.000000e+00 : f32
    %260 = vector.broadcast %cst_86 : f32 to vector<4x48xf32>
    %261 = arith.maximumf %259, %260 : vector<4x48xf32>
    %262 = vector.extract_strided_slice %261 {offsets = [0, 16], sizes = [4, 32], strides = [1, 1]} : vector<4x48xf32> to vector<4x32xf32>
    %263 = arith.truncf %262 : vector<4x32xf32> to vector<4x32xbf16>
    %cst_87 = arith.constant dense<0.000000e+00> : vector<4x32xf32>
    %264 = tpu.matmul %263, %10, %cst_87 {dimension_numbers = #tpu.dot_dimension_numbers<[1], [0], [0], [1], [0, 0, 1, 1], [], []>} : vector<4x32xbf16>, vector<32x32xbf16>, vector<4x32xf32> -> vector<4x32xf32>
    %265 = arith.truncf %264 : vector<4x32xf32> to vector<4x32xbf16>
    %cst_88 = arith.constant dense<0.000000e+00> : vector<4x32xf32>
    %266 = tpu.matmul %245, %265, %cst_88 {dimension_numbers = #tpu.dot_dimension_numbers<[1], [0], [0], [1], [0, 0, 1, 1], [], []>} : vector<4x4xbf16>, vector<4x32xbf16>, vector<4x32xf32> -> vector<4x32xf32>
    %267 = vector.broadcast %14 : vector<1x32xf32> to vector<4x32xf32>
    %268 = arith.addf %266, %267 : vector<4x32xf32>
    %cst_89 = arith.constant 0.000000e+00 : f32
    %269 = vector.broadcast %cst_89 : f32 to vector<4x32xf32>
    %270 = arith.maximumf %268, %269 : vector<4x32xf32>
    %271 = vector.extract_strided_slice %270 {offsets = [0, 16], sizes = [4, 16], strides = [1, 1]} : vector<4x32xf32> to vector<4x16xf32>
    %272 = arith.truncf %271 : vector<4x16xf32> to vector<4x16xbf16>
    %cst_90 = arith.constant dense<0.000000e+00> : vector<4x16xf32>
    %273 = tpu.matmul %272, %11, %cst_90 {dimension_numbers = #tpu.dot_dimension_numbers<[1], [0], [0], [1], [0, 0, 1, 1], [], []>} : vector<4x16xbf16>, vector<16x16xbf16>, vector<4x16xf32> -> vector<4x16xf32>
    %274 = arith.truncf %273 : vector<4x16xf32> to vector<4x16xbf16>
    %cst_91 = arith.constant dense<0.000000e+00> : vector<4x16xf32>
    %275 = tpu.matmul %245, %274, %cst_91 {dimension_numbers = #tpu.dot_dimension_numbers<[1], [0], [0], [1], [0, 0, 1, 1], [], []>} : vector<4x4xbf16>, vector<4x16xbf16>, vector<4x16xf32> -> vector<4x16xf32>
    %276 = vector.broadcast %15 : vector<1x16xf32> to vector<4x16xf32>
    %277 = arith.addf %275, %276 : vector<4x16xf32>
    %cst_92 = arith.constant 0.000000e+00 : f32
    %278 = vector.broadcast %cst_92 : f32 to vector<4x16xf32>
    %279 = arith.maximumf %277, %278 : vector<4x16xf32>
    %280 = vector.extract_strided_slice %253 {offsets = [0, 0], sizes = [4, 16], strides = [1, 1]} : vector<4x48xf32> to vector<4x16xf32>
    %281 = vector.extract_strided_slice %261 {offsets = [0, 0], sizes = [4, 16], strides = [1, 1]} : vector<4x48xf32> to vector<4x16xf32>
    %282 = vector.extract_strided_slice %253 {offsets = [0, 16], sizes = [4, 16], strides = [1, 1]} : vector<4x48xf32> to vector<4x16xf32>
    %283 = vector.extract_strided_slice %261 {offsets = [0, 16], sizes = [4, 16], strides = [1, 1]} : vector<4x48xf32> to vector<4x16xf32>
    %284 = vector.extract_strided_slice %270 {offsets = [0, 0], sizes = [4, 16], strides = [1, 1]} : vector<4x32xf32> to vector<4x16xf32>
    %285 = vector.extract_strided_slice %253 {offsets = [0, 32], sizes = [4, 16], strides = [1, 1]} : vector<4x48xf32> to vector<4x16xf32>
    %286 = vector.extract_strided_slice %261 {offsets = [0, 32], sizes = [4, 16], strides = [1, 1]} : vector<4x48xf32> to vector<4x16xf32>
    %287 = vector.extract_strided_slice %270 {offsets = [0, 16], sizes = [4, 16], strides = [1, 1]} : vector<4x32xf32> to vector<4x16xf32>
    %288 = tpu.concatenate %280, %281, %282, %283, %284, %285, %286, %287, %279 in 1 : vector<4x16xf32>, vector<4x16xf32>, vector<4x16xf32>, vector<4x16xf32>, vector<4x16xf32>, vector<4x16xf32>, vector<4x16xf32>, vector<4x16xf32>, vector<4x16xf32> -> vector<4x144xf32>
    %289 = arith.truncf %288 : vector<4x144xf32> to vector<4x144xbf16>
    %cst_93 = arith.constant dense<0.000000e+00> : vector<4x1xf32>
    %290 = tpu.matmul %289, %17, %cst_93 {dimension_numbers = #tpu.dot_dimension_numbers<[1], [0], [0], [1], [0, 0, 1, 1], [], []>} : vector<4x144xbf16>, vector<144x1xbf16>, vector<4x1xf32> -> vector<4x1xf32>
    %291 = arith.truncf %290 : vector<4x1xf32> to vector<4x1xbf16>
    %cst_94 = arith.constant dense<0.000000e+00> : vector<4x1xf32>
    %292 = tpu.matmul %245, %291, %cst_94 {dimension_numbers = #tpu.dot_dimension_numbers<[1], [0], [0], [1], [0, 0, 1, 1], [], []>} : vector<4x4xbf16>, vector<4x1xbf16>, vector<4x1xf32> -> vector<4x1xf32>
    %293 = vector.broadcast %18 : vector<1x1xf32> to vector<4x1xf32>
    %294 = arith.addf %292, %293 : vector<4x1xf32>
    %295 = tpu.transpose %294, [1, 0] : vector<4x1xf32> -> vector<1x4xf32>
    %296 = vector.broadcast %295 : vector<1x4xf32> to vector<4x4xf32>
    %297 = vector.broadcast %294 : vector<4x1xf32> to vector<4x4xf32>
    %298 = arith.cmpf ogt, %296, %297 : vector<4x4xf32>
    %299 = vector.broadcast %295 : vector<1x4xf32> to vector<4x4xf32>
    %300 = vector.broadcast %294 : vector<4x1xf32> to vector<4x4xf32>
    %301 = arith.cmpf oeq, %299, %300 : vector<4x4xf32>
    %302 = arith.cmpi slt, %232, %231 : vector<4x4xi32>
    %303 = arith.andi %301, %302 : vector<4x4xi1>
    %304 = arith.ori %298, %303 : vector<4x4xi1>
    %305 = arith.extui %304 : vector<4x4xi1> to vector<4x4xi32>
    %306 = arith.sitofp %305 : vector<4x4xi32> to vector<4x4xf32>
    %cst_95 = arith.constant dense<0.000000e+00> : vector<4xf32>
    %307 = vector.multi_reduction <add>, %306, %cst_95 [1] : vector<4x4xf32> to vector<4xf32>
    %308 = vector.shape_cast %307 : vector<4xf32> to vector<4x1xf32>
    %309 = tpu.iota {dimensions = array<i32: 0>} : vector<2x4xi32>
    %310 = arith.sitofp %309 : vector<2x4xi32> to vector<2x4xf32>
    %311 = tpu.transpose %308, [1, 0] : vector<4x1xf32> -> vector<1x4xf32>
    %312 = vector.broadcast %311 : vector<1x4xf32> to vector<2x4xf32>
    %313 = arith.cmpf oeq, %310, %312 : vector<2x4xf32>
    %314 = arith.extui %313 : vector<2x4xi1> to vector<2x4xi32>
    %315 = arith.sitofp %314 : vector<2x4xi32> to vector<2x4xf32>
    %316 = arith.truncf %315 : vector<2x4xf32> to vector<2x4xbf16>
    %317 = math.tanh %294 : vector<4x1xf32>
    %318 = vector.broadcast %317 : vector<4x1xf32> to vector<4x144xf32>
    %319 = arith.mulf %288, %318 : vector<4x144xf32>
    %320 = arith.truncf %319 : vector<4x144xf32> to vector<4x144xbf16>
    %cst_96 = arith.constant dense<0.000000e+00> : vector<2x144xf32>
    %321 = tpu.matmul %316, %320, %cst_96 {dimension_numbers = #tpu.dot_dimension_numbers<[1], [0], [0], [1], [0, 0, 1, 1], [], []>} : vector<2x4xbf16>, vector<4x144xbf16>, vector<2x144xf32> -> vector<2x144xf32>
    %cst_97 = arith.constant dense<0xFF800000> : vector<144xf32>
    %322 = vector.multi_reduction <maximumf>, %321, %cst_97 [0] : vector<2x144xf32> to vector<144xf32>
    %323 = vector.shape_cast %322 : vector<144xf32> to vector<1x144xf32>
    %324 = tpu.concatenate %115, %219, %323 in 1 : vector<1x144xf32>, vector<1x144xf32>, vector<1x144xf32> -> vector<1x432xf32>
    %325 = arith.truncf %324 : vector<1x432xf32> to vector<1x432xbf16>
    %c0_98 = arith.constant 0 : index
    %c0_99 = arith.constant 0 : index
    %326 = vector.load %arg21[%c0_98, %c0_99] : memref<432x144xbf16, #tpu.memory_space<vmem>>, vector<432x144xbf16>
    %cst_100 = arith.constant dense<0.000000e+00> : vector<1x144xf32>
    %327 = tpu.matmul %325, %326, %cst_100 {dimension_numbers = #tpu.dot_dimension_numbers<[1], [0], [0], [1], [0, 0, 1, 1], [], []>} : vector<1x432xbf16>, vector<432x144xbf16>, vector<1x144xf32> -> vector<1x144xf32>
    %328 = arith.truncf %327 : vector<1x144xf32> to vector<1x144xbf16>
    %c0_101 = arith.constant 0 : index
    %c0_102 = arith.constant 0 : index
    %329 = vector.load %arg22[%c0_101, %c0_102] : memref<144x16xbf16, #tpu.memory_space<vmem>>, vector<144x16xbf16>
    %cst_103 = arith.constant dense<0.000000e+00> : vector<1x16xf32>
    %330 = tpu.matmul %328, %329, %cst_103 {dimension_numbers = #tpu.dot_dimension_numbers<[1], [0], [0], [1], [0, 0, 1, 1], [], []>} : vector<1x144xbf16>, vector<144x16xbf16>, vector<1x16xf32> -> vector<1x16xf32>
    %c0_104 = arith.constant 0 : index
    %c0_105 = arith.constant 0 : index
    %331 = vector.load %arg23[%c0_104, %c0_105] : memref<1x16xf32, #tpu.memory_space<vmem>>, vector<1x16xf32>
    %332 = arith.addf %330, %331 : vector<1x16xf32>
    %cst_106 = arith.constant 0.000000e+00 : f32
    %333 = vector.broadcast %cst_106 : f32 to vector<1x16xf32>
    %334 = arith.maximumf %332, %333 : vector<1x16xf32>
    %335 = arith.truncf %334 : vector<1x16xf32> to vector<1x16xbf16>
    %c0_107 = arith.constant 0 : index
    %c0_108 = arith.constant 0 : index
    %336 = vector.load %arg24[%c0_107, %c0_108] : memref<16x8xbf16, #tpu.memory_space<vmem>>, vector<16x8xbf16>
    %cst_109 = arith.constant dense<0.000000e+00> : vector<1x8xf32>
    %337 = tpu.matmul %335, %336, %cst_109 {dimension_numbers = #tpu.dot_dimension_numbers<[1], [0], [0], [1], [0, 0, 1, 1], [], []>} : vector<1x16xbf16>, vector<16x8xbf16>, vector<1x8xf32> -> vector<1x8xf32>
    %c0_110 = arith.constant 0 : index
    %c0_111 = arith.constant 0 : index
    %338 = vector.load %arg25[%c0_110, %c0_111] : memref<1x8xf32, #tpu.memory_space<vmem>>, vector<1x8xf32>
    %339 = arith.addf %337, %338 : vector<1x8xf32>
    %cst_112 = arith.constant 0.000000e+00 : f32
    %340 = vector.broadcast %cst_112 : f32 to vector<1x8xf32>
    %341 = arith.maximumf %339, %340 : vector<1x8xf32>
    %342 = arith.truncf %341 : vector<1x8xf32> to vector<1x8xbf16>
    %c0_113 = arith.constant 0 : index
    %c0_114 = arith.constant 0 : index
    %343 = vector.load %arg26[%c0_113, %c0_114] : memref<8x3xbf16, #tpu.memory_space<vmem>>, vector<8x3xbf16>
    %cst_115 = arith.constant dense<0.000000e+00> : vector<1x3xf32>
    %344 = tpu.matmul %342, %343, %cst_115 {dimension_numbers = #tpu.dot_dimension_numbers<[1], [0], [0], [1], [0, 0, 1, 1], [], []>} : vector<1x8xbf16>, vector<8x3xbf16>, vector<1x3xf32> -> vector<1x3xf32>
    %c0_116 = arith.constant 0 : index
    %c0_117 = arith.constant 0 : index
    %345 = vector.load %arg27[%c0_116, %c0_117] : memref<1x3xf32, #tpu.memory_space<vmem>>, vector<1x3xf32>
    %346 = arith.addf %344, %345 : vector<1x3xf32>
    %cst_118 = arith.constant dense<0xFF800000> : vector<1xf32>
    %347 = vector.multi_reduction <maximumf>, %346, %cst_118 [1] : vector<1x3xf32> to vector<1xf32>
    %348 = vector.shape_cast %347 : vector<1xf32> to vector<1x1xf32>
    %349 = vector.broadcast %348 : vector<1x1xf32> to vector<1x3xf32>
    %350 = arith.subf %346, %349 : vector<1x3xf32>
    %351 = math.exp %350 : vector<1x3xf32>
    %cst_119 = arith.constant dense<0.000000e+00> : vector<1xf32>
    %352 = vector.multi_reduction <add>, %351, %cst_119 [1] : vector<1x3xf32> to vector<1xf32>
    %353 = vector.shape_cast %352 : vector<1xf32> to vector<1x1xf32>
    %354 = math.log %353 : vector<1x1xf32>
    %355 = vector.broadcast %354 : vector<1x1xf32> to vector<1x3xf32>
    %356 = arith.subf %350, %355 : vector<1x3xf32>
    %c0_120 = arith.constant 0 : index
    %c0_121 = arith.constant 0 : index
    %c0_122 = arith.constant 0 : index
    %357 = vector.load %arg28[%c0_120, %c0_121, %c0_122] : memref<1x1x3xf32, #tpu.memory_space<vmem>>, vector<1x1x3xf32>
    %358 = vector.shape_cast %357 : vector<1x1x3xf32> to vector<1x3xf32>
    %359 = vector.shape_cast %356 : vector<1x3xf32> to vector<1x1x3xf32>
    tpu.vector_store %arg28[%c0_120, %c0_121, %c0_122], %359 {strides = array<i32>} : memref<1x1x3xf32, #tpu.memory_space<vmem>>, vector<1x1x3xf32>,
    %360 = tpu.concatenate %115, %219, %323 in 0 : vector<1x144xf32>, vector<1x144xf32>, vector<1x144xf32> -> vector<3x144xf32>
    %c0_123 = arith.constant 0 : index
    %c0_124 = arith.constant 0 : index
    %c0_125 = arith.constant 0 : index
    %361 = vector.load %arg29[%c0_123, %c0_124, %c0_125] : memref<1x3x144xf32, #tpu.memory_space<vmem>>, vector<1x3x144xf32>
    %362 = vector.shape_cast %361 : vector<1x3x144xf32> to vector<3x144xf32>
    %363 = vector.shape_cast %360 : vector<3x144xf32> to vector<1x3x144xf32>
    tpu.vector_store %arg29[%c0_123, %c0_124, %c0_125], %363 {strides = array<i32>} : memref<1x3x144xf32, #tpu.memory_space<vmem>>, vector<1x3x144xf32>,
    return
  }
  func.func @transform_0(%arg0: i32) -> (i32, i32, i32) {
    %c0_i32 = arith.constant 0 : i32
    %c0_i32_0 = arith.constant 0 : i32
    %c0_i32_1 = arith.constant 0 : i32
    return %arg0, %c0_i32, %c0_i32_0 : i32, i32, i32
  }
  func.func @transform_1(%arg0: i32) -> (i32, i32, i32) {
    %c0_i32 = arith.constant 0 : i32
    %c0_i32_0 = arith.constant 0 : i32
    %c0_i32_1 = arith.constant 0 : i32
    return %arg0, %c0_i32, %c0_i32_0 : i32, i32, i32
  }
  func.func @transform_2(%arg0: i32) -> (i32, i32) {
    %c0_i32 = arith.constant 0 : i32
    %c0_i32_0 = arith.constant 0 : i32
    %c0_i32_1 = arith.constant 0 : i32
    return %c0_i32, %c0_i32_0 : i32, i32
  }
  func.func @transform_3(%arg0: i32) -> (i32, i32) {
    %c0_i32 = arith.constant 0 : i32
    %c0_i32_0 = arith.constant 0 : i32
    %c0_i32_1 = arith.constant 0 : i32
    return %c0_i32, %c0_i32_0 : i32, i32
  }
  func.func @transform_4(%arg0: i32) -> (i32, i32) {
    %c0_i32 = arith.constant 0 : i32
    %c0_i32_0 = arith.constant 0 : i32
    %c0_i32_1 = arith.constant 0 : i32
    return %c0_i32, %c0_i32_0 : i32, i32
  }
  func.func @transform_5(%arg0: i32) -> (i32, i32) {
    %c0_i32 = arith.constant 0 : i32
    %c0_i32_0 = arith.constant 0 : i32
    %c0_i32_1 = arith.constant 0 : i32
    return %c0_i32, %c0_i32_0 : i32, i32
  }
  func.func @transform_6(%arg0: i32) -> (i32, i32) {
    %c0_i32 = arith.constant 0 : i32
    %c0_i32_0 = arith.constant 0 : i32
    %c0_i32_1 = arith.constant 0 : i32
    return %c0_i32, %c0_i32_0 : i32, i32
  }
  func.func @transform_7(%arg0: i32) -> (i32, i32) {
    %c0_i32 = arith.constant 0 : i32
    %c0_i32_0 = arith.constant 0 : i32
    %c0_i32_1 = arith.constant 0 : i32
    return %c0_i32, %c0_i32_0 : i32, i32
  }
  func.func @transform_8(%arg0: i32) -> (i32, i32) {
    %c0_i32 = arith.constant 0 : i32
    %c0_i32_0 = arith.constant 0 : i32
    %c0_i32_1 = arith.constant 0 : i32
    return %c0_i32, %c0_i32_0 : i32, i32
  }
  func.func @transform_9(%arg0: i32) -> (i32, i32) {
    %c0_i32 = arith.constant 0 : i32
    %c0_i32_0 = arith.constant 0 : i32
    %c0_i32_1 = arith.constant 0 : i32
    return %c0_i32, %c0_i32_0 : i32, i32
  }
  func.func @transform_10(%arg0: i32) -> (i32, i32) {
    %c0_i32 = arith.constant 0 : i32
    %c0_i32_0 = arith.constant 0 : i32
    %c0_i32_1 = arith.constant 0 : i32
    return %c0_i32, %c0_i32_0 : i32, i32
  }
  func.func @transform_11(%arg0: i32) -> (i32, i32) {
    %c0_i32 = arith.constant 0 : i32
    %c0_i32_0 = arith.constant 0 : i32
    %c0_i32_1 = arith.constant 0 : i32
    return %c0_i32, %c0_i32_0 : i32, i32
  }
  func.func @transform_12(%arg0: i32) -> (i32, i32) {
    %c0_i32 = arith.constant 0 : i32
    %c0_i32_0 = arith.constant 0 : i32
    %c0_i32_1 = arith.constant 0 : i32
    return %c0_i32, %c0_i32_0 : i32, i32
  }
  func.func @transform_13(%arg0: i32) -> (i32, i32) {
    %c0_i32 = arith.constant 0 : i32
    %c0_i32_0 = arith.constant 0 : i32
    %c0_i32_1 = arith.constant 0 : i32
    return %c0_i32, %c0_i32_0 : i32, i32
  }
  func.func @transform_14(%arg0: i32) -> (i32, i32) {
    %c0_i32 = arith.constant 0 : i32
    %c0_i32_0 = arith.constant 0 : i32
    %c0_i32_1 = arith.constant 0 : i32
    return %c0_i32, %c0_i32_0 : i32, i32
  }
  func.func @transform_15(%arg0: i32) -> (i32, i32) {
    %c0_i32 = arith.constant 0 : i32
    %c0_i32_0 = arith.constant 0 : i32
    %c0_i32_1 = arith.constant 0 : i32
    return %c0_i32, %c0_i32_0 : i32, i32
  }
  func.func @transform_16(%arg0: i32) -> (i32, i32) {
    %c0_i32 = arith.constant 0 : i32
    %c0_i32_0 = arith.constant 0 : i32
    %c0_i32_1 = arith.constant 0 : i32
    return %c0_i32, %c0_i32_0 : i32, i32
  }
  func.func @transform_17(%arg0: i32) -> (i32, i32) {
    %c0_i32 = arith.constant 0 : i32
    %c0_i32_0 = arith.constant 0 : i32
    %c0_i32_1 = arith.constant 0 : i32
    return %c0_i32, %c0_i32_0 : i32, i32
  }
  func.func @transform_18(%arg0: i32) -> (i32, i32) {
    %c0_i32 = arith.constant 0 : i32
    %c0_i32_0 = arith.constant 0 : i32
    %c0_i32_1 = arith.constant 0 : i32
    return %c0_i32, %c0_i32_0 : i32, i32
  }
  func.func @transform_19(%arg0: i32) -> (i32, i32) {
    %c0_i32 = arith.constant 0 : i32
    %c0_i32_0 = arith.constant 0 : i32
    %c0_i32_1 = arith.constant 0 : i32
    return %c0_i32, %c0_i32_0 : i32, i32
  }
  func.func @transform_20(%arg0: i32) -> (i32, i32) {
    %c0_i32 = arith.constant 0 : i32
    %c0_i32_0 = arith.constant 0 : i32
    %c0_i32_1 = arith.constant 0 : i32
    return %c0_i32, %c0_i32_0 : i32, i32
  }
  func.func @transform_21(%arg0: i32) -> (i32, i32) {
    %c0_i32 = arith.constant 0 : i32
    %c0_i32_0 = arith.constant 0 : i32
    %c0_i32_1 = arith.constant 0 : i32
    return %c0_i32, %c0_i32_0 : i32, i32
  }
  func.func @transform_22(%arg0: i32) -> (i32, i32) {
    %c0_i32 = arith.constant 0 : i32
    %c0_i32_0 = arith.constant 0 : i32
    %c0_i32_1 = arith.constant 0 : i32
    return %c0_i32, %c0_i32_0 : i32, i32
  }
  func.func @transform_23(%arg0: i32) -> (i32, i32) {
    %c0_i32 = arith.constant 0 : i32
    %c0_i32_0 = arith.constant 0 : i32
    %c0_i32_1 = arith.constant 0 : i32
    return %c0_i32, %c0_i32_0 : i32, i32
  }
  func.func @transform_24(%arg0: i32) -> (i32, i32) {
    %c0_i32 = arith.constant 0 : i32
    %c0_i32_0 = arith.constant 0 : i32
    %c0_i32_1 = arith.constant 0 : i32
    return %c0_i32, %c0_i32_0 : i32, i32
  }
  func.func @transform_25(%arg0: i32) -> (i32, i32) {
    %c0_i32 = arith.constant 0 : i32
    %c0_i32_0 = arith.constant 0 : i32
    %c0_i32_1 = arith.constant 0 : i32
    return %c0_i32, %c0_i32_0 : i32, i32
  }
  func.func @transform_26(%arg0: i32) -> (i32, i32) {
    %c0_i32 = arith.constant 0 : i32
    %c0_i32_0 = arith.constant 0 : i32
    %c0_i32_1 = arith.constant 0 : i32
    return %c0_i32, %c0_i32_0 : i32, i32
  }
  func.func @transform_27(%arg0: i32) -> (i32, i32, i32) {
    %c0_i32 = arith.constant 0 : i32
    %c0_i32_0 = arith.constant 0 : i32
    %c0_i32_1 = arith.constant 0 : i32
    return %arg0, %c0_i32, %c0_i32_0 : i32, i32, i32
  }
  func.func @transform_28(%arg0: i32) -> (i32, i32, i32) {
    %c0_i32 = arith.constant 0 : i32
    %c0_i32_0 = arith.constant 0 : i32
    %c0_i32_1 = arith.constant 0 : i32
    return %arg0, %c0_i32, %c0_i32_0 : i32, i32, i32
  }
}

</mosaic_0001>

<bundles_post_ra>
// kernel: net_forward.1
= control target key start
LH: loop header
LB: loop body
LE: loop exit
PB: predicated region body
PF: predicated region fallthrough
CT: control target
= control target key end

     0   :  { %s6213_s0 = inlined_call_operand.vmem [shape: f32[2,16,16], index: 0, kind: input, shape index: {}]   ;;  %s6214_s1 = inlined_call_operand.vmem [shape: f32[2,16,8], index: 1, kind: input, shape index: {}]   ;;  %s6215_s2 = inlined_call_operand.vmem [shape: bf16[8,48], index: 2, kind: input, shape index: {}]   ;;  %s6216_s3 = inlined_call_operand.vmem [shape: f32[1,48], index: 3, kind: input, shape index: {}]   ;;  %s6217_s4 = inlined_call_operand.vmem [shape: bf16[48,48], index: 4, kind: input, shape index: {}]   ;;  %s6218_s5 = inlined_call_operand.vmem [shape: f32[1,48], index: 5, kind: input, shape index: {}]   ;;  %s6219_s6 = inlined_call_operand.vmem [shape: bf16[32,32], index: 6, kind: input, shape index: {}]   ;;  %s6220_s7 = inlined_call_operand.vmem [shape: f32[1,32], index: 7, kind: input, shape index: {}]   ;;  %s6221_s8 = inlined_call_operand.vmem [shape: bf16[16,16], index: 8, kind: input, shape index: {}]   ;;  %s6222_s9 = inlined_call_operand.vmem [shape: f32[1,16], index: 9, kind: input, shape index: {}]   ;;  %s6223_s10 = inlined_call_operand.vmem [shape: bf16[144,48], index: 10, kind: input, shape index: {}]   ;;  %s6224_s11 = inlined_call_operand.vmem [shape: f32[1,48], index: 11, kind: input, shape index: {}]   ;;  %s6225_s12 = inlined_call_operand.vmem [shape: bf16[48,48], index: 12, kind: input, shape index: {}]   ;;  %s6226_s13 = inlined_call_operand.vmem [shape: f32[1,48], index: 13, kind: input, shape index: {}]   ;;  %s6227_s14 = inlined_call_operand.vmem [shape: bf16[32,32], index: 14, kind: input, shape index: {}]   ;;  %s6228_s15 = inlined_call_operand.vmem [shape: f32[1,32], index: 15, kind: input, shape index: {}]   ;;  %s6229_s16 = inlined_call_operand.vmem [shape: bf16[16,16], index: 16, kind: input, shape index: {}]   ;;  %s6230_s17 = inlined_call_operand.vmem [shape: f32[1,16], index: 17, kind: input, shape index: {}]   ;;  %s6231_s18 = inlined_call_operand.vmem [shape: f32[144,1], index: 18, kind: input, shape index: {}]   ;;  %s6232_s19 = inlined_call_operand.<no memory space> [shape: f32[1,1], index: 19, kind: input, shape index: {}]   ;;  %s6233_s20 = inlined_call_operand.vmem [shape: bf16[432,144], index: 20, kind: input, shape index: {}]   ;;  %s6234_s21 = inlined_call_operand.vmem [shape: bf16[144,16], index: 21, kind: input, shape index: {}]   ;;  %s6235_s22 = inlined_call_operand.vmem [shape: f32[1,16], index: 22, kind: input, shape index: {}]   ;;  %s6236_s23 = inlined_call_operand.vmem [shape: bf16[16,8], index: 23, kind: input, shape index: {}]   ;;  %s6237_s24 = inlined_call_operand.vmem [shape: f32[1,8], index: 24, kind: input, shape index: {}]   ;;  %s6238_s25 = inlined_call_operand.vmem [shape: bf16[8,3], index: 25, kind: input, shape index: {}]   ;;  %s6239_s26 = inlined_call_operand.vmem [shape: f32[1,3], index: 26, kind: input, shape index: {}]   ;;  %s6240_s27 = inlined_call_operand.hbm [shape: f32[2,1,3], index: 27, kind: output, shape index: {0}]   ;;  %s6241_s28 = inlined_call_operand.vmem [shape: f32[2,3,144], index: 28, kind: output, shape index: {1}]  }
   0x1   :  { %6271 = sst [smem:[#allocation12_spill]] %s6213_s0  ;;  %v34_v0 = vstv %s6232_s19 }
   0x2   :  { %6272 = sst [smem:[#allocation13_spill]] %s6214_s1  ;;  %35 = vst [vmem:[#allocation2] sm:$0x1] %v34_v0 }
   0x3   :  { %6273 = sst [smem:[#allocation14_spill]] %s6215_s2 }
   0x4   :  { %6274 = sst [smem:[#allocation15_spill]] %s6216_s3 }
   0x5   :  { %6275 = sst [smem:[#allocation16_spill]] %s6217_s4 }
   0x6   :  { %6276 = sst [smem:[#allocation17_spill]] %s6218_s5 }
   0x7   :  { %6277 = sst [smem:[#allocation18_spill]] %s6219_s6 }
   0x8   :  { %6278 = sst [smem:[#allocation19_spill]] %s6220_s7 }
   0x9   :  { %6279 = sst [smem:[#allocation20_spill]] %s6221_s8 }
   0xa   :  { %6280 = sst [smem:[#allocation21_spill]] %s6222_s9 }
   0xb   :  { %6281 = sst [smem:[#allocation22_spill]] %s6223_s10 }
   0xc   :  { %6282 = sst [smem:[#allocation23_spill]] %s6224_s11 }
   0xd   :  { %6283 = sst [smem:[#allocation24_spill]] %s6225_s12 }
   0xe   :  { %36 = vsyncpa [#allocation4], 0 }
   0xf   :  { %38 = vsyncpa [#allocation4 + $0x1], 0  ;;  %s5145_s9 = smov 0   ;;  %s5147_s30 = smov 0  }
  0x10   :  { %s5149_s3 = smov 0   ;;  %s5151_s6 = smov 0  }
  0x11 LB: > { %6284 = sst [smem:[#allocation6_spill]] %s4972_s9  ;;  %s5166_s19 = sadd.s32 4294967295, %s4984_s6   ;;  %s4984_s6 = sphi %s5151_s6, %s6326_s6   ;;  %s4980_s3 = sphi %s5149_s3, %s6328_s3   ;;  %s4976_s30 = sphi %s5147_s30, %s6330_s30   ;;  %s4972_s9 = sphi %s5145_s9, %s6329_s9  }
  0x12   : > { %6285 = sst [smem:[#allocation7_spill]] %s4980_s3  ;;  %s4288_s10 = sadd.s32 4294967294, %s4984_s6  }
  0x13   : > { %6286 = sst [smem:[#allocation8_spill]] %s4984_s6  ;;  %s5170_s0 = sadd.s32 1, %s4984_s6  }
  0x14   : > { %6287 = sst [smem:[#allocation9_spill]] %s5170_s0  ;;  %s628_s11 = sadd.s32 1, %s4980_s3 }
  0x15   : > { %s625_s29 = ssub.s32 %s4984_s6, %s5170_s0  ;;  %p638_p0 = scmp.ne.s32.totalorder %s4980_s3, %s4976_s30 }
  0x16   : > { %p626_p1 = scmp.eq.s32.totalorder %s625_s29, 0  ;;  %p639_p2 = scmp.eq.s32.totalorder %s5166_s19, 1 }
  0x17   : > { %p644_p3 = scmp.ne.s32.totalorder %s4976_s30, %s4972_s9  ;;  %p645_p4 = scmp.eq.s32.totalorder %s4288_s10, 1 }
  0x18   : > { %s5181_s2 = scalar_select %p626_p1, %s4980_s3, %s628_s11  }
  0x19   : > { %p5183_p5 = por %p639_p2, %p638_p0  ;;  %p5187_p6 = por %p645_p4, %p644_p3 }
  0x1a   : > { %6288 = sst [smem:[#allocation10_spill]] %s5181_s2  ;;  %p4291_p7 = scmp.ge.s32.totalorder %s4984_s6, 1 }
  0x1b   : > { %s6290_s12 = scalar_select %p5187_p6, 1, 0 }
  0x1c   : > { %p780_p8 = scmp.lt.s32.totalorder %s4984_s6, 3 }
  0x1d   : > { %6291 = sst [smem:[#allocation11_spill]] %s6290_s12 }
  0x1e   : > { %p781_p9 = pnand %p4291_p7, %p780_p8 }
  0x1f   : > { %p863_p10 = scmp.lt.s32.totalorder (!%p781_p9), %s5166_s19, 1  ;;  %s6292_s8 = sld [smem:[#allocation14_spill]] (!%p781_p9) }
  0x20   : > { %784 = sbr.rel (%p781_p9) target bundleno = 10474 (0x28ea), region = 128  ;;  %s6293_s1 = sld [smem:[#allocation12_spill]] (!%p781_p9) }
  0x21   : > { %s6294_s3 = sld [smem:[#allocation13_spill]] (!%p781_p9)  ;;  %s6249_s29 = smov (!%p781_p9), 32  }
  0x22   : > { %s6295_s2 = sld [smem:[#allocation16_spill]] (!%p781_p9) }
  0x23   : > { %s6297_s11 = sld [smem:[#allocation18_spill]] (!%p781_p9) }
  0x24   : > { %s6307_s6 = sld [smem:[#allocation22_spill]] (!%p781_p9) }
  0x25   : > { %v962_v1 = vlaneseq  ;;  %v879_v2 = vld [vmem:[%s6292_s8] sm:$0xf]  ;;  %vm1030_vm0 = vcmask 1043456   ;;  %v4986_v3 = vmov 0.0   ;;  %s5201_s5 = scalar_select %p863_p10, %s5166_s19, 1  ;;  %vm4987_vm1 = vmmov 0  }
  0x26   : > { %4526 = vmatprep.subr.bf16.mxu0 %v4986_v3  ;;  %v1032_v4 = vsel %vm1030_vm0, %v879_v2, 0  ;;  %4532 = vmatprep.subr.bf16.mxu1 %v4986_v3  ;;  %vm975_vm3 = vcmask 130048   ;;  %vm1026_vm5 = vcmask 64512   ;;  %vm1147_vm6 = vcmask 392192   ;;  %s6299_s8 = sld [smem:[#allocation20_spill]] }
  0x27   : > { %v5203_v5 = vshrl.u32 %v962_v1, 7  ;;  %v5205_v6 = vand.u32 127, %v962_v1  ;;  %4527 = vmatpush3.bf16.msra.mxu0 %v1032_v4  ;;  %4528 = vmatprep.mubr.msk.bf16.mxu0 %vm4987_vm1, %v4986_v3  ;;  %s4452_s10 = sshll.u32 %s5201_s5, 4  ;;  %vm1258_vm7 = vcmask 261120   ;;  %vm6267_vm8 = vcmask 523264   ;;  %s4454_s9 = sshll.u32 %s5201_s5, 3 }
  0x28   : > { %4534 = vmatprep.mubr.msk.bf16.mxu1 %vm4987_vm1, %v4986_v3  ;;  %4538 = vmatprep.subr.bf16.mxu0 %v4986_v3  ;;  %s867_s4 = scalar_lea.vmem %s6293_s1, %s4452_s10  ;;  %s872_s0 = scalar_lea.vmem %s6294_s3, %s4452_s10  ;;  %v4791_v37 = vld [vmem:[%s6295_s2 + $0x10] sm:$0xff]   ;;  %v4792_v38 = vld [vmem:[%s6295_s2 + $0x8] sm:$0xff]   ;;  %v4793_v39 = vld [vmem:[%s6295_s2] sm:$0xff]   ;;  %vm6266_vm9 = vcmask 654336   ;;  %vm6265_vm10 = vcmask 785408   ;;  %vm6264_vm11 = vcmask 916480  }
  0x29   : > { %vm967_vm2 = vcmp.eq.s32.totalorder %v5203_v5, %v5205_v6  ;;  %v5216_v7 = vadd.s32 8, %v5203_v5  ;;  %v5227_v9 = vld [vmem:[%s867_s4] sm:$0xff]  ;;  %v961_v11 = vld [vmem:[%s872_s0 + $0x8] sm:$0xff]  ;;  %v5246_v29 = vsub.s32 0, %v5203_v5  ;;  %s6296_s3 = sld [smem:[#allocation15_spill]]  ;;  %s6251_s10 = smov 16   ;;  %vm1667_vm12 = vcmp.lt.s32.totalorder %v5205_v6, %v5203_v5 }
  0x2a   : > { %v5225_v8 = vsel %vm967_vm2, 1.0, %v4986_v3  ;;  %v960_v10 = vld [vmem:[%s872_s0] sm:$0xff]  ;;  %v5233_v13 = vld [vmem:[%s867_s4 + $0x8] sm:$0xff]  ;;  %s6253_s0 = smov 112   ;;  %s6262_s2 = smov 48  }
  0x2b   : > { %vm968_vm4 = vcmp.eq.s32.totalorder %v5216_v7, %v5205_v6  ;;  %v973_v12 = vadd.f32 %v5225_v8, %v5227_v9  ;;  %v1025_v15 = vpack.c.bf16 %v961_v11, %v960_v10  ;;  %v1807_v17 = vpack.c.bf16 %v5233_v13, %v5227_v9  ;;  %v4794_v55 = vld [vmem:[%s6297_s11 + $0x8] sm:$0xff]   ;;  %v4795_v56 = vld [vmem:[%s6297_s11] sm:$0xff]   ;;  %s6301_s1 = smov 112   ;;  %s6303_s4 = smov 32  }
  0x2c   : > { %v4299_v14 = vsel %vm968_vm4, 1.0, %v4986_v3  ;;  %vm1668_vm2 = vcmp.lt.s32.totalorder %v5205_v6, %v5216_v7  ;;  %s6308_s12 = smov %s6307_s6 }
  0x2d   : > { %v974_v16 = vadd.f32 %v4299_v14, %v5233_v13  ;;  %v976_v18 = vsel %vm975_vm3, %v973_v12, 0.0  ;;  %4529 = vmatmul.mubr.msk.bf16.vlgmr.msra.gmra.mxu0 %vm1026_vm5, %v1025_v15 }
  0x2e   : > { %977 = vadd.xlane.f32.xlu0 %v976_v18  ;;  %4544 = vmatprep.mubr.msk.bf16.mxu0 %vm4987_vm1, %v4986_v3 }
  0x2f   : > { %v979_v19 = vsel %vm975_vm3, %v974_v16, 0.0  ;;  %4539 = vmatpush3.bf16.msra.mxu0 %v4791_v37  ;;  %v4301_v40 = vld [vmem:[%s6296_s3] ss:$0 sm:$0xff]  ;;  %s6298_s3 = sld [smem:[#allocation17_spill]] }
  0x30   : > { %4540 = vmatprep.subr.bf16.mxu0 %v4986_v3 }
  0x32   : > { %980 = vadd.xlane.f32.xlu0 %v979_v19 }
  0x33   : > { %4541 = vmatpush3.bf16.msra.mxu0 %v4792_v38  ;;  %v940_v38 = vld [vmem:[%s6231_s18 + $0x50] sm:$0xff] }
  0x34   : > { %4542 = vmatprep.subr.bf16.mxu0 %v4986_v3 }
  0x35   : > { %v4307_v57 = vld [vmem:[%s6298_s3] ss:$0 sm:$0xff]  ;;  %s6309_s3 = sld [smem:[#allocation24_spill]] }
  0x37   : > { %4543 = vmatpush3.bf16.msra.mxu0 %v4793_v39  ;;  %v941_v39 = vld [vmem:[%s6231_s18 + $0x58] sm:$0xff] }
  0x38   : > { %4574 = vmatprep.subr.bf16.mxu0 %v4986_v3 }
  0x3b   : > { %s6310_s11 = smov %s6309_s3 }
  0xb7   : > { %v978_v20 = vpop.xlane.xlu0 %977 }
  0xb8   : > { %4903 = vrsqrt.f32 %v978_v20 }
  0xbb   : > { %v981_v21 = vpop.xlane.xlu0 %980 }
  0xbc   : > { %4905 = vrsqrt.f32 %v981_v21 }
  0xc5   : > { %v4904_v22 = vpop.eup %4903 }
  0xc6   : > { %986 = vxpose.xlu1.b32.start [1/2] (short) (narrow) %v4904_v22, 8  ;;  %v984_v31 = vmul.f32 %v4904_v22, %v973_v12 }
  0xc9   : > { %v4906_v23 = vpop.eup %4905 }
  0xca   : > { %987 = vxpose.xlu1.b32.end [2/2] (short) (narrow) %v4906_v23, 8  ;;  %v985_v32 = vmul.f32 %v4906_v23, %v974_v16  ;;  %v4796_v16 = vld [vmem:[%s6299_s8] sm:$0xff]   ;;  %s6304_s8 = sld [smem:[#allocation21_spill]] }
  0xed   : > { %v1068_v24 = vpop.f32.mrf.mxu0 }
  0xef   : > { %v4530_v25 = vpop.f32.mrf.mxu0 }
  0xf1   : > { %v1071_v26 = vpop.f32.mrf.mxu0 }
  0xf2   : > { %v1075_v27 = vpack.c.bf16 %v1071_v26, %v1068_v24 }
  0xf3   : > { %v4531_v28 = vpop.f32.mrf.mxu0 }
  0xf4   : > { %4533 = vmatpush3.bf16.msra.mxu1 %v1075_v27 }
  0xf5   : > { %4548 = vmatprep.subr.bf16.mxu1 %v4986_v3 }
 0x142   : > { %v1002_v30 = vpop.trf.xlu1 }
 0x143   : > { %v1021_v33 = vrot.slane %v1002_v30, %v5246_v29  ;;  %v944_v30 = vld [vmem:[%s6231_s18 + $0x70] sm:$0xff] }
 0x145   : > { %v1022_v34 = vmul.f32 %v1021_v33, %v984_v31  ;;  %v1023_v35 = vmul.f32 %v1021_v33, %v985_v32  ;;  %v945_v31 = vld [vmem:[%s6231_s18 + $0x78] sm:$0xff]  ;;  %v942_v32 = vld [vmem:[%s6231_s18 + $0x60] sm:$0xff]  ;;  %v4994_v33 = vmov 0  }
 0x146   : > { %4779 = vset.pattern.permute.xlu0 %v4994_v33  ;;  %4780 = vset.pattern.permute.xlu1 %v4994_v33 }
 0x147   : > { %v5249_v36 = vpack.c.bf16 %v1023_v35, %v1022_v34  ;;  %v5340_v34 = vpack.c.bf16 %v945_v31, %v944_v30  ;;  %v943_v35 = vld [vmem:[%s6231_s18 + $0x68] sm:$0xff] }
 0x148   : > { %v5348_v37 = vpack.c.bf16 %v943_v35, %v942_v32 }
 0x149   : > { %4535 = vmatmul.mubr.msk.bf16.vlgmr.msra.gmra.mxu1 %vm975_vm3, %v5249_v36 }
 0x14a   : > { %4550 = vmatprep.mubr.msk.bf16.mxu1 %vm4987_vm1, %v4986_v3 }
 0x209   : > { %v1119_v41 = vpop.f32.mrf.mxu1 }
 0x20a   : > { %v1120_v43 = vadd.f32 %v4301_v40, %v1119_v41  ;;  %v938_v41 = vld [vmem:[%s6231_s18 + $0x40] sm:$0xff] }
 0x20b   : > { %v4536_v42 = vpop.f32.mrf.mxu1 }
 0x20c   : > { %v5270_v47 = vmax.f32 %v1120_v43, 0.0  ;;  %v939_v42 = vld [vmem:[%s6231_s18 + $0x48] sm:$0xff] }
 0x20d   : > { %v1122_v44 = vpop.f32.mrf.mxu1  ;;  %v5368_v43 = vpack.c.bf16 %v939_v42, %v938_v41 }
 0x20e   : > { %v1123_v45 = vadd.f32 %v4301_v40, %v1122_v44  ;;  %v5358_v40 = vpack.c.bf16 %v941_v39, %v940_v38  ;;  %v936_v44 = vld [vmem:[%s6231_s18 + $0x30] sm:$0xff] }
 0x20f   : > { %v4537_v46 = vpop.f32.mrf.mxu1 }
 0x210   : > { %v5272_v48 = vmax.f32 %v1123_v45, 0.0  ;;  %v937_v45 = vld [vmem:[%s6231_s18 + $0x38] sm:$0xff] }
 0x211   : > { %v5378_v46 = vpack.c.bf16 %v937_v45, %v936_v44 }
 0x212   : > { %v1128_v49 = vpack.c.bf16 %v5272_v48, %v5270_v47 }
 0x214   : > { %4545 = vmatmul.mubr.msk.bf16.vlgmr.msra.gmra.mxu0 %vm1147_vm6, %v1128_v49  ;;  %v934_v49 = vld [vmem:[%s6231_s18 + $0x20] sm:$0xff] }
 0x215   : > { %4576 = vmatprep.mubr.msk.bf16.mxu0 %vm4987_vm1, %v4986_v3 }
 0x2d4   : > { %v1185_v50 = vpop.f32.mrf.mxu0 }
 0x2d6   : > { %v4546_v51 = vpop.f32.mrf.mxu0 }
 0x2d8   : > { %v1188_v52 = vpop.f32.mrf.mxu0 }
 0x2d9   : > { %v1192_v53 = vpack.c.bf16 %v1188_v52, %v1185_v50  ;;  %v935_v50 = vld [vmem:[%s6231_s18 + $0x28] sm:$0xff] }
 0x2da   : > { %v4547_v54 = vpop.f32.mrf.mxu0  ;;  %v5388_v51 = vpack.c.bf16 %v935_v50, %v934_v49 }
 0x2db   : > { %4549 = vmatpush3.bf16.msra.mxu1 %v1192_v53 }
 0x2dc   : > { %4554 = vmatprep.subr.bf16.mxu1 %v4986_v3 }
 0x2de   : > { %4551 = vmatmul.mubr.msk.bf16.vlgmr.msra.gmra.mxu1 %vm975_vm3, %v5249_v36 }
 0x2df   : > { %4558 = vmatprep.mubr.msk.bf16.mxu1 %vm4987_vm1, %v4986_v3  ;;  %4555 = vmatpush3.bf16.msra.mxu1 %v4794_v55 }
 0x2e0   : > { %4556 = vmatprep.subr.bf16.mxu1 %v4986_v3 }
 0x2e3   : > { %4557 = vmatpush3.bf16.msra.mxu1 %v4795_v56 }
 0x2e4   : > { %4562 = vmatprep.subr.bf16.mxu1 %v4986_v3 }
 0x39e   : > { %v1233_v58 = vpop.f32.mrf.mxu1 }
 0x39f   : > { %v1234_v60 = vadd.f32 %v4307_v57, %v1233_v58  ;;  %v933_v58 = vld [vmem:[%s6231_s18 + $0x18] sm:$0xff] }
 0x3a0   : > { %v4552_v59 = vpop.f32.mrf.mxu1 }
 0x3a1   : > { %v1240_v0 = vmax.f32 %v1234_v60, 0.0  ;;  %v930_v60 = vld [vmem:[%s6231_s18] sm:$0xff] }
 0x3a2   : > { %v1236_v61 = vpop.f32.mrf.mxu1 }
 0x3a3   : > { %v1237_v62 = vadd.f32 %v4307_v57, %v1236_v61  ;;  %v932_v57 = vld [vmem:[%s6231_s18 + $0x10] sm:$0xff]  ;;  %v931_v61 = vld [vmem:[%s6231_s18 + $0x8] sm:$0xff] }
 0x3a4   : > { %v4553_v63 = vpop.f32.mrf.mxu1  ;;  %v5404_v59 = vpack.c.bf16 %v933_v58, %v932_v57 }
 0x3a5   : > { %v1241_v1 = vmax.f32 %v1237_v62, 0.0  ;;  %v5414_v62 = vpack.c.bf16 %v931_v61, %v930_v60  ;;  %v946_v63 = vld [vmem:[%s6231_s18 + $0x80] sm:$0xff] }
 0x3a7   : > { %v1242_v2 = vpack.c.bf16 %v1241_v1, %v1240_v0 }
 0x3a9   : > { %1244 = vrot.lane.b32.xlu0 %v1242_v2, %s6253_s0  ;;  %s6268_s0 = smov 64  }
 0x3ad   : > { %1459 = vrot.lane.b32.xlu0 %v1240_v0, %s6251_s10 }
 0x3b1   : > { %1461 = vrot.lane.b32.xlu0 %v1241_v1, %s6251_s10 }
 0x3b5   : > { %1467 = vrot.lane.b32.xlu0 %v5270_v47, %s6251_s10  ;;  %s6300_s10 = sld [smem:[#allocation19_spill]] }
 0x3b9   : > { %1473 = vrot.lane.b32.xlu0 %v1240_v0, %s6249_s29  ;;  %s6260_s29 = smov 96  }
 0x3bb   : > { %v4312_v18 = vld [vmem:[%s6300_s10] ss:$0 sm:$0xff]  ;;  %s6302_s10 = smov 16  }
 0x41b   : > { %v1245_v4 = vpop.permute.xlu0 %1244 }
 0x41c   : > { %4559 = vmatmul.mubr.msk.bf16.vlgmr.msra.gmra.mxu1 %vm1258_vm7, %v1245_v4 }
 0x41d   : > { %4564 = vmatprep.mubr.msk.bf16.mxu1 %vm4987_vm1, %v4986_v3 }
 0x41f   : > { %v1460_v2 = vpop.permute.xlu0 %1459 }
 0x423   : > { %v1462_v4 = vpop.permute.xlu0 %1461 }
 0x4dc   : > { %v1296_v10 = vpop.f32.mrf.mxu1 }
 0x4de   : > { %v4560_v11 = vpop.f32.mrf.mxu1 }
 0x4df   : > { %v1468_v11 = vpop.permute.xlu0 %1467 }
 0x4e0   : > { %v1299_v12 = vpop.f32.mrf.mxu1 }
 0x4e1   : > { %v1303_v14 = vpack.c.bf16 %v1299_v12, %v1296_v10 }
 0x4e2   : > { %v4561_v15 = vpop.f32.mrf.mxu1 }
 0x4e3   : > { %4563 = vmatpush3.bf16.msra.mxu1 %v1303_v14  ;;  %v1474_v14 = vpop.permute.xlu0 %1473 }
 0x4e4   : > { %4568 = vmatprep.subr.bf16.mxu1 %v4986_v3 }
 0x4e6   : > { %4565 = vmatmul.mubr.msk.bf16.vlgmr.msra.gmra.mxu1 %vm975_vm3, %v5249_v36 }
 0x4e7   : > { %4570 = vmatprep.mubr.msk.bf16.mxu1 %vm4987_vm1, %v4986_v3  ;;  %4569 = vmatpush3.bf16.msra.mxu1 %v4796_v16 }
 0x4e8   : > { %1528 = vmatprep.subr.bf16.mxu1 %v4994_v33 }
 0x5a6   : > { %v1344_v19 = vpop.f32.mrf.mxu1 }
 0x5a7   : > { %v1345_v20 = vadd.f32 %v4312_v18, %v1344_v19 }
 0x5a8   : > { %v4566_v21 = vpop.f32.mrf.mxu1 }
 0x5a9   : > { %v1351_v22 = vmax.f32 %v1345_v20, 0.0 }
 0x5aa   : > { %v1347_v23 = vpop.f32.mrf.mxu1 }
 0x5ab   : > { %v1348_v24 = vadd.f32 %v4312_v18, %v1347_v23  ;;  %1481 = vrot.lane.b32.xlu0 %v1351_v22, %s6268_s0 }
 0x5ac   : > { %v4567_v25 = vpop.f32.mrf.mxu1 }
 0x5ad   : > { %v1352_v26 = vmax.f32 %v1348_v24, 0.0  ;;  %v1506_v24 = vsel %vm975_vm3, %v5272_v48, %v1462_v4 }
 0x5af   : > { %1487 = vrot.lane.b32.xlu0 %v5270_v47, %s6262_s2  ;;  %v1353_v27 = vpack.c.bf16 %v1352_v26, %v1351_v22 }
 0x5b1   : > { %1355 = vrot.lane.b32.xlu1 %v1353_v27, %s6301_s1  ;;  %v1505_v27 = vsel %vm975_vm3, %v5270_v47, %v1460_v2  ;;  %v5469_v2 = vld [vmem:[#allocation2] ss:$0 sm:$0xff] }
 0x5b2   : > { %v1507_v31 = vsel %vm1258_vm7, %v1505_v27, %v1468_v11 }
 0x5b3   : > { %1493 = vrot.lane.b32.xlu0 %v1240_v0, %s6268_s0  ;;  %v947_v0 = vld [vmem:[%s6231_s18 + $0x88] sm:$0xff] }
 0x5b5   : > { %1469 = vrot.lane.b32.xlu1 %v5272_v48, %s6302_s10 }
 0x5b7   : > { %1499 = vrot.lane.b32.xlu0 %v1351_v22, %s6260_s29  ;;  %v4316_v22 = vld [vmem:[%s6304_s8] ss:$0 sm:$0xff]  ;;  %s6314_s8 = smov 96  }
 0x5b9   : > { %1475 = vrot.lane.b32.xlu1 %v1241_v1, %s6303_s4 }
 0x5bd   : > { %1483 = vrot.lane.b32.xlu1 %v1352_v26, %s6268_s0 }
 0x5c1   : > { %1489 = vrot.lane.b32.xlu1 %v5272_v48, %s6262_s2  ;;  %v1509_v48 = vsel %vm1147_vm6, %v1507_v31, %v1474_v14  ;;  %s6312_s2 = smov 64  }
 0x5c5   : > { %1495 = vrot.lane.b32.xlu1 %v1241_v1, %s6268_s0  ;;  %v5424_v1 = vpack.c.bf16 %v947_v0, %v946_v63  ;;  %s6311_s0 = sld [smem:[#allocation23_spill]] }
 0x5c9   : > { %1501 = vrot.lane.b32.xlu1 %v1352_v26, %s6260_s29  ;;  %s6313_s29 = smov 48  }
 0x61d   : > { %v1482_v16 = vpop.permute.xlu0 %1481 }
 0x61e   : > { %v1512_v47 = vsel %vm6267_vm8, %v1509_v48, %v1482_v16 }
 0x621   : > { %v1488_v19 = vpop.permute.xlu0 %1487 }
 0x622   : > { %v1515_v49 = vsel %vm6266_vm9, %v1512_v47, %v1488_v19 }
 0x623   : > { %v1356_v28 = vpop.permute.xlu1 %1355 }
 0x624   : > { %4571 = vmatmul.mubr.msk.bf16.vlgmr.msra.gmra.mxu1 %vm975_vm3, %v1356_v28 }
 0x625   : > { %1529 = vmatpush1.bf16.msra.mxu1 %v5340_v34  ;;  %v1494_v21 = vpop.permute.xlu0 %1493 }
 0x626   : > { %1530 = vmatprep.subr.bf16.mxu1 %v4994_v33 }
 0x627   : > { %v1470_v10 = vpop.permute.xlu1 %1469 }
 0x628   : > { %v1508_v25 = vsel %vm1258_vm7, %v1506_v24, %v1470_v10 }
 0x629   : > { %1531 = vmatpush1.bf16.msra.mxu1 %v5348_v37  ;;  %v1500_v42 = vpop.permute.xlu0 %1499 }
 0x62a   : > { %1532 = vmatprep.subr.bf16.mxu1 %v4994_v33 }
 0x62b   : > { %v1476_v12 = vpop.permute.xlu1 %1475 }
 0x62c   : > { %v1510_v28 = vsel %vm1147_vm6, %v1508_v25, %v1476_v12 }
 0x62d   : > { %1533 = vmatpush1.bf16.msra.mxu1 %v5358_v40 }
 0x62e   : > { %1534 = vmatprep.subr.bf16.mxu1 %v4994_v33 }
 0x62f   : > { %v1484_v15 = vpop.permute.xlu1 %1483 }
 0x630   : > { %v1513_v32 = vsel %vm6267_vm8, %v1510_v28, %v1484_v15 }
 0x631   : > { %1535 = vmatpush1.bf16.msra.mxu1 %v5368_v43 }
 0x632   : > { %1536 = vmatprep.subr.bf16.mxu1 %v4994_v33 }
 0x633   : > { %v1490_v18 = vpop.permute.xlu1 %1489 }
 0x634   : > { %v1516_v39 = vsel %vm6266_vm9, %v1513_v32, %v1490_v18 }
 0x635   : > { %1537 = vmatpush1.bf16.msra.mxu1 %v5378_v46 }
 0x636   : > { %1538 = vmatprep.subr.bf16.mxu1 %v4994_v33 }
 0x637   : > { %v1496_v20 = vpop.permute.xlu1 %1495 }
 0x638   : > { %v1519_v44 = vsel %vm6265_vm10, %v1516_v39, %v1496_v20 }
 0x639   : > { %1539 = vmatpush1.bf16.msra.mxu1 %v5388_v51 }
 0x63a   : > { %1540 = vmatprep.subr.bf16.mxu1 %v4994_v33 }
 0x63b   : > { %v1502_v35 = vpop.permute.xlu1 %1501 }
 0x63c   : > { %v5449_v50 = vsel %vm6264_vm11, %v1519_v44, %v1502_v35  ;;  %v5502_v44 = vcvt.s32.f32 %v5203_v5  ;;  %v4814_v5 = vld [vmem:[%s6233_s20 + $0x74] ss:$8 sps:$4 sm:$0xff]  }
 0x63d   : > { %1541 = vmatpush1.bf16.msra.mxu1 %v5404_v59 }
 0x63e   : > { %1542 = vmatprep.subr.bf16.mxu1 %v4994_v33 }
 0x641   : > { %1543 = vmatpush1.bf16.msra.mxu1 %v5414_v62 }
 0x642   : > { %1558 = vmatprep.subr.bf16.mxu1 %v4994_v33 }
 0x645   : > { %1559 = vmatpush2.bf16.msra.mxu1 %v5424_v1 }
 0x646   : > { %4598 = vmatprep.subr.bf16.mxu1 %v4986_v3 }
 0x6e4   : > { %v1400_v52 = vpop.f32.mrf.mxu1 }
 0x6e6   : > { %v4572_v53 = vpop.f32.mrf.mxu1 }
 0x6e8   : > { %v1403_v54 = vpop.f32.mrf.mxu1 }
 0x6e9   : > { %v1407_v55 = vpack.c.bf16 %v1403_v54, %v1400_v52  ;;  %v1518_v54 = vsel %vm6265_vm10, %v1515_v49, %v1494_v21 }
 0x6ea   : > { %v4573_v56 = vpop.f32.mrf.mxu1 }
 0x6eb   : > { %4575 = vmatpush3.bf16.msra.mxu0 %v1407_v55  ;;  %v5455_v55 = vsel %vm6264_vm11, %v1518_v54, %v1500_v42  ;;  %v5527_v54 = vld [vmem:[%s6307_s6 + $0x38] sm:$0xff]  }
 0x6ec   : > { %4580 = vmatprep.subr.bf16.mxu0 %v4986_v3  ;;  %v1523_v57 = vpack.c.bf16 %v5449_v50, %v5455_v55 }
 0x6ee   : > { %4577 = vmatmul.mubr.msk.bf16.vlgmr.msra.gmra.mxu0 %vm975_vm3, %v5249_v36 }
 0x6ef   : > { %4582 = vmatprep.mubr.msk.bf16.mxu0 %vm4987_vm1, %v4986_v3 }
 0x7ae   : > { %v1448_v23 = vpop.f32.mrf.mxu0 }
 0x7af   : > { %v5437_v30 = vadd.f32 %v4316_v22, %v1448_v23 }
 0x7b0   : > { %v4578_v26 = vpop.f32.mrf.mxu0 }
 0x7b1   : > { %v1455_v52 = vmax.f32 %v5437_v30, 0.0  ;;  %v5486_v26 = vcvt.s32.f32 %v5205_v6  ;;  %v4995_v30 = vmov 1.0|1.0  }
 0x7b2   : > { %v1451_v38 = vpop.f32.mrf.mxu0 }
 0x7b3   : > { %v5443_v41 = vadd.f32 %v4316_v22, %v1451_v38 }
 0x7b4   : > { %v4579_v45 = vpop.f32.mrf.mxu0 }
 0x7b5   : > { %v1456_v53 = vmax.f32 %v5443_v41, 0.0 }
 0x7b7   : > { %v1524_v56 = vpack.c.bf16 %v1456_v53, %v1455_v52 }
 0x7b9   : > { %4318 = vmatprep.mubr.msk.bf16.mxu1 %vm975_vm3, %v1524_v56 }
 0x7ba   : > { %1561 = vmatmul.mubr.bf16.vlgmr.msra.gmra.mxu1 %v1523_v57 }
 0x7bb   : > { %4600 = vmatprep.mubr.msk.bf16.mxu1 %vm4987_vm1, %v4986_v3 }
 0x87a   : > { %v1562_v58 = vpop.f32.mrf.mxu1 }
 0x87c   : > { %v1564_v60 = vpop.f32.mrf.mxu1 }
 0x87d   : > { %v5537_v60 = vld [vmem:[%s6308_s12 + $0x30] sm:$0xff]  }
 0x87e   : > { %v1565_v61 = vpop.f32.mrf.mxu1 }
 0x87f   : > { %v1569_v63 = vpack.c.bf16 %v1565_v61, %v1562_v58 }
 0x880   : > { %v1567_v0 = vpop.f32.mrf.mxu1 }
 0x881   : > { %4581 = vmatpush3.bf16.msra.mxu0 %v1569_v63  ;;  %v5544_v63 = vld [vmem:[%s6308_s12 + $0x28] sm:$0xff]   ;;  %v5551_v0 = vld [vmem:[%s6308_s12 + $0x20] sm:$0xff]  }
 0x884   : > { %4583 = vmatmul.mubr.msk.bf16.vlgmr.msra.gmra.mxu0 %vm975_vm3, %v5249_v36 }
 0x885   : > { %1777 = vmatprep.mubr.bf16.mxu0 %v4994_v33 }
 0x944   : > { %v1610_v4 = vpop.f32.mrf.mxu0 }
 0x945   : > { %v1611_v10 = vadd.f32 %v5469_v2, %v1610_v4  ;;  %v5558_v4 = vld [vmem:[%s6308_s12 + $0x18] sm:$0xff]  }
 0x946   : > { %v4584_v11 = vpop.f32.mrf.mxu0 }
 0x947   : > { %1655 = vperm.xlu0 %4779, %v1611_v10   ;;  %v5572_v11 = vld [vmem:[%s6308_s12 + $0x8] sm:$0xff]  }
 0x948   : > { %v1613_v12 = vpop.f32.mrf.mxu0 }
 0x949   : > { %v1614_v14 = vadd.f32 %v5469_v2, %v1613_v12  ;;  %v5579_v12 = vld [vmem:[%s6308_s12] sm:$0xff]  }
 0x94a   : > { %v4585_v15 = vpop.f32.mrf.mxu0 }
 0x94b   : > { %1660 = vperm.xlu1 %4780, %v1614_v14   ;;  %4907 = vtanh.f32 %v1614_v14 }
 0x94c   : > { %4909 = vtanh.f32 %v1611_v10 }
 0x958   : > { %v4908_v16 = vpop.eup %4907 }
 0x959   : > { %v4910_v7 = vpop.eup %4909 }
 0x974   : > { %1617 = vxpose.xlu1.b32.start [1/2] (short) (narrow) %v1611_v10, 8  ;;  %v5565_v10 = vld [vmem:[%s6308_s12 + $0x10] sm:$0xff]  }
 0x978   : > { %1618 = vxpose.xlu1.b32.end [2/2] (short) (narrow) %v1614_v14, 8  ;;  %v5586_v14 = vld [vmem:[%s6308_s12 + $0x40] sm:$0xff]  }
 0x996   : > { %1733 = vperm.xlu1 %4780, %v4908_v16  }
 0x9c2   : > { %v1656_v20 = vpop.permute.xlu0 %1655 }
 0x9c6   : > { %v1661_v36 = vpop.permute.xlu1 %1660 }
 0x9f0   : > { %v1633_v18 = vpop.trf.xlu1 }
 0x9f1   : > { %v1652_v19 = vrot.slane %v1633_v18, %v5246_v29 }
 0x9f3   : > { %vm1663_vm13 = vcmp.gt.f32.partialorder %v1652_v19, %v1656_v20  ;;  %vm1665_vm14 = vcmp.eq.f32.partialorder %v1652_v19, %v1656_v20  ;;  %vm1666_vm15 = vcmp.eq.f32.partialorder %v1652_v19, %v1661_v36  ;;  %vm1664_vm11 = vcmp.gt.f32.partialorder %v1652_v19, %v1661_v36 }
 0x9f4   : > { %vm1669_vm4 = vmand %vm1665_vm14, %vm1667_vm12  ;;  %vm6316_vm14 = vcmask 654336  }
 0x9f5   : > { %vm1671_vm10 = vmor %vm1663_vm13, %vm1669_vm4 }
 0x9f6   : > { %v4321_v21 = vsel %vm1671_vm10, 1.0, %v4986_v3  ;;  %vm1670_vm9 = vmand %vm1666_vm15, %vm1668_vm2  ;;  %vm6317_vm15 = vcmask 785408   ;;  %vm6318_vm2 = vcmask 916480  }
 0x9f7   : > { %v1677_v22 = vsel %vm975_vm3, %v4321_v21, 0.0  ;;  %vm1672_vm8 = vmor %vm1664_vm11, %vm1670_vm9  ;;  %vm6315_vm11 = vcmask 523264  }
 0x9f8   : > { %1678 = vadd.xlane.f32.xlu0 %v1677_v22  ;;  %v4322_v23 = vsel %vm1672_vm8, 1.0, %v4986_v3 }
 0x9f9   : > { %v1680_v24 = vsel %vm975_vm3, %v4322_v23, 0.0 }
 0x9fc   : > { %1681 = vadd.xlane.f32.xlu0 %v1680_v24 }
 0xa11   : > { %v1734_v31 = vpop.permute.xlu1 %1733 }
 0xa12   : > { %1728 = vperm.xlu0 %4779, %v4910_v7   ;;  %v1738_v35 = vmul.f32 %v1734_v31, %v5449_v50  ;;  %v1739_v38 = vmul.f32 %v1734_v31, %v1456_v53 }
 0xa81   : > { %v1679_v25 = vpop.xlane.xlu0 %1678 }
 0xa82   : > { %1684 = vxpose.xlu0.b32.start [1/2] (short) (narrow) %v1679_v25, 8  ;;  %vm1800_vm10 = vcmp.eq.f32.partialorder %v5486_v26, %v1679_v25 }
 0xa85   : > { %v1682_v27 = vpop.xlane.xlu0 %1681 }
 0xa86   : > { %vm1801_vm13 = vcmp.eq.f32.partialorder %v5486_v26, %v1682_v27  ;;  %1685 = vxpose.xlu0.b32.end [2/2] (short) (narrow) %v1682_v27, 8 }
 0xa87   : > { %vm5490_vm9 = vmpackc.low %vm1801_vm13, %vm1800_vm10 }
 0xa8d   : > { %v1729_v32 = vpop.permute.xlu0 %1728 }
 0xa8e   : > { %v1736_v48 = vmul.f32 %v1729_v32, %v5455_v55  ;;  %v1737_v39 = vmul.f32 %v1729_v32, %v1455_v52 }
 0xa90   : > { %v1740_v47 = vpack.c.bf16 %v1738_v35, %v1736_v48  ;;  %v1741_v42 = vpack.c.bf16 %v1739_v38, %v1737_v39  ;;  %v5606_v39 = vld [vmem:[%s6309_s3 + $0x10] sm:$0xff]   ;;  %s4449_s3 = sshll.u32 %s5166_s19, 4 }
 0xa92   : > { %1759 = vmatprep.subr.bf16.mxu0 %v1741_v42  ;;  %v5619_v42 = vld [vmem:[%s6310_s11 + $0x8] sm:$0xff]  }
 0xa93   : > { %1760 = vmatpush1.bf16.msra.mxu0 %v1740_v47 }
 0xa94   : > { %4586 = vmatprep.subr.bf16.mxu0 %v4986_v3 }
 0xafe   : > { %v1700_v45 = vpop.trf.xlu0 }
 0xaff   : > { %v1719_v49 = vrot.slane %v1700_v45, %v5246_v29  ;;  %v5626_v45 = vld [vmem:[%s6310_s11] sm:$0xff]   ;;  %s854_s11 = sand.u32 1, %s4976_s30  }
 0xb01   : > { %vm1720_vm8 = vcmp.eq.f32.partialorder %v5502_v44, %v1719_v49  ;;  %v5633_v49 = vld [vmem:[%s6311_s0] ss:$0 sm:$0xff]  ;;  %s855_s0 = scalar_lea.vmem [#allocation3], %s854_s11 }
 0xb02   : > { %v4323_v41 = vsel %vm1720_vm8, 1.0, %v4986_v3 }
 0xb03   : > { %v1723_v50 = vpack.c.bf16 %v4323_v41, %v4323_v41 }
 0xb05   : > { %4324 = vmatmul.mubr.msk.bf16.vlgmr.msra.gmra.mxu0 %vm975_vm3, %v1723_v50 }
 0xb06   : > { %4587 = vmatpush3.bf16.msra.mxu0 %v1807_v17  ;;  %4588 = vmatprep.mubr.msk.bf16.mxu0 %vm4987_vm1, %v4986_v3 }
 0xb07   : > { %4592 = vmatprep.subr.bf16.mxu0 %v4986_v3 }
 0xb0d   : > { %4589 = vmatmul.mubr.msk.bf16.vlgmr.msra.gmra.mxu0 %vm975_vm3, %v1723_v50 }
 0xb0e   : > { %4593 = vmatpush3.bf16.msk.msra.mxu0 %vm5490_vm9, %v4995_v30  ;;  %4594 = vmatprep.mubr.msk.bf16.mxu0 %vm4987_vm1, %v4986_v3 }
 0xb0f   : > { %1995 = vmatprep.subr.bf16.mxu0 %v4994_v33 }
 0xbc5   : > { %v5520_v52 = vpop.f32.mrf.mxu0 }
 0xbc6   : > { %v1936_v15 = vpack.c.bf16 %v5520_v52, %v5520_v52 }
 0xbc7   : > { %v5522_v9 = vpop.f32.mrf.mxu0 }
 0xbc8   : > { %v1937_v56 = vpack.c.bf16 %v5522_v9, %v5522_v9 }
 0xbc9   : > { %v1783_v13 = vpop.f32.mrf.mxu0 }
 0xbcb   : > { %v1784_v17 = vpop.f32.mrf.mxu0 }
 0xbcd   : > { %v1842_v53 = vpop.f32.mrf.mxu0 }
 0xbce   : > { %v1848_v55 = vpack.c.bf16 %v1842_v53, %v1842_v53 }
 0xbcf   : > { %v4590_v57 = vpop.f32.mrf.mxu0 }
 0xbd0   : > { %4595 = vmatmul.mubr.msk.bf16.vlgmr.msra.gmra.mxu0 %vm975_vm3, %v1848_v55 }
 0xbd1   : > { %1996 = vmatpush1.bf16.msra.mxu0 %v5527_v54  ;;  %v1845_v58 = vpop.f32.mrf.mxu0  ;;  %4340 = vmatprep.mubr.msk.bf16.mxu0 %vm975_vm3, %v1937_v56 }
 0xbd2   : > { %1997 = vmatprep.subr.bf16.mxu0 %v4994_v33 }
 0xbd3   : > { %v4591_v61 = vpop.f32.mrf.mxu0 }
 0xbd5   : > { %1998 = vmatpush1.bf16.msra.mxu0 %v5537_v60 }
 0xbd6   : > { %1999 = vmatprep.subr.bf16.mxu0 %v4994_v33 }
 0xbd9   : > { %2000 = vmatpush1.bf16.msra.mxu0 %v5544_v63 }
 0xbda   : > { %2001 = vmatprep.subr.bf16.mxu0 %v4994_v33 }
 0xbdd   : > { %2002 = vmatpush1.bf16.msra.mxu0 %v5551_v0 }
 0xbde   : > { %2003 = vmatprep.subr.bf16.mxu0 %v4994_v33 }
 0xbe1   : > { %2004 = vmatpush1.bf16.msra.mxu0 %v5558_v4 }
 0xbe2   : > { %2005 = vmatprep.subr.bf16.mxu0 %v4994_v33 }
 0xbe5   : > { %2006 = vmatpush1.bf16.msra.mxu0 %v5565_v10 }
 0xbe6   : > { %2007 = vmatprep.subr.bf16.mxu0 %v4994_v33 }
 0xbe9   : > { %2008 = vmatpush1.bf16.msra.mxu0 %v5572_v11 }
 0xbea   : > { %2009 = vmatprep.subr.bf16.mxu0 %v4994_v33 }
 0xbed   : > { %2010 = vmatpush1.bf16.msra.mxu0 %v5579_v12 }
 0xbee   : > { %2025 = vmatprep.subr.bf16.mxu0 %v4994_v33 }
 0xbf1   : > { %2026 = vmatpush2.bf16.msra.mxu0 %v5586_v14 }
 0xbf2   : > { %4628 = vmatprep.subr.bf16.mxu0 %v4986_v3 }
 0xbf4   : > { %2028 = vmatmul.mubr.bf16.vlgmr.msra.gmra.mxu0 %v1936_v15 }
 0xbf5   : > { %4630 = vmatprep.mubr.msk.bf16.mxu0 %vm4987_vm1, %v4986_v3 }
 0xc90   : > { %v5595_v16 = vpop.f32.mrf.mxu0 }
 0xc91   : > { %v1892_v36 = vadd.f32 %v5225_v8, %v5595_v16 }
 0xc92   : > { %v4596_v18 = vpop.f32.mrf.mxu0 }
 0xc93   : > { %v1893_v19 = vsel %vm1026_vm5, %v1892_v36, 0.0  ;;  %v5652_v18 = vld [vmem:[%s6227_s14 + $0x8] sm:$0xff]  }
 0xc94   : > { %1894 = vadd.xlane.f32.xlu1 %v1893_v19  ;;  %v1889_v20 = vpop.f32.mrf.mxu0  ;;  %v5658_v19 = vld [vmem:[%s6227_s14] sm:$0xff]  }
 0xc95   : > { %v5666_v20 = vld [vmem:[%s6226_s13] ss:$0 sm:$0xff] }
 0xc96   : > { %v4597_v21 = vpop.f32.mrf.mxu0 }
 0xcb4   : > { %v2029_v22 = vpop.f32.mrf.mxu0 }
 0xcb5   : > { %v2035_v23 = vpack.c.bf16 %v2029_v22, %v2029_v22 }
 0xcb6   : > { %v2031_v24 = vpop.f32.mrf.mxu0 }
 0xcb7   : > { %v2046_v7 = vsel %vm1030_vm0, %v2035_v23, 0 }
 0xcb8   : > { %v2032_v25 = vpop.f32.mrf.mxu0  ;;  %4599 = vmatpush3.bf16.msra.mxu1 %v2046_v7 }
 0xcb9   : > { %4604 = vmatprep.subr.bf16.mxu1 %v4986_v3 }
 0xcba   : > { %v2033_v27 = vpop.f32.mrf.mxu0 }
 0xd1d   : > { %v1895_v28 = vpop.xlane.xlu1 %1894 }
 0xd1e   : > { %4911 = vrsqrt.f32 %v1895_v28 }
 0xd2b   : > { %v4912_v31 = vpop.eup %4911 }
 0xd2c   : > { %1898 = vxpose.xlu0.b32.start.end [1/1] (short) (narrow) %v4912_v31, 8  ;;  %v1897_v35 = vmul.f32 %v4912_v31, %v1892_v36 }
 0xda8   : > { %v1914_v32 = vpop.trf.xlu0 }
 0xda9   : > { %v1933_v38 = vrot.slane %v1914_v32, %v5246_v29 }
 0xdab   : > { %v1934_v48 = vmul.f32 %v1933_v38, %v1897_v35 }
 0xdad   : > { %v5608_v47 = vpack.c.bf16 %v1934_v48, %v1934_v48 }
 0xdaf   : > { %4601 = vmatmul.mubr.msk.bf16.vlgmr.msra.gmra.mxu1 %vm1026_vm5, %v5608_v47 }
 0xdb0   : > { %4605 = vmatpush3.bf16.msra.mxu1 %v5606_v39  ;;  %4610 = vmatprep.mubr.msk.bf16.mxu1 %vm4987_vm1, %v4986_v3 }
 0xdb1   : > { %4606 = vmatprep.subr.bf16.mxu1 %v4986_v3 }
 0xdb4   : > { %4607 = vmatpush3.bf16.msra.mxu1 %v5619_v42 }
 0xdb5   : > { %4608 = vmatprep.subr.bf16.mxu1 %v4986_v3 }
 0xdb8   : > { %4609 = vmatpush3.bf16.msra.mxu1 %v5626_v45 }
 0xdb9   : > { %4614 = vmatprep.subr.bf16.mxu1 %v4986_v3 }
 0xe6f   : > { %v2082_v41 = vpop.f32.mrf.mxu1 }
 0xe70   : > { %v2083_v50 = vadd.f32 %v5633_v49, %v2082_v41 }
 0xe71   : > { %v4602_v30 = vpop.f32.mrf.mxu1 }
 0xe72   : > { %v5636_v13 = vmax.f32 %v2083_v50, 0.0  ;;  %v5682_v50 = vld [vmem:[%s6229_s16] sm:$0xff]  }
 0xe73   : > { %v2085_v17 = vpop.f32.mrf.mxu1  ;;  %v5689_v30 = vld [vmem:[%s6228_s15] ss:$0 sm:$0xff] }
 0xe74   : > { %v2089_v53 = vpack.c.bf16 %v5636_v13, %v5636_v13 }
 0xe75   : > { %v4603_v55 = vpop.f32.mrf.mxu1 }
 0xe76   : > { %4611 = vmatmul.mubr.msk.bf16.vlgmr.msra.gmra.mxu1 %vm1147_vm6, %v2089_v53 }
 0xe77   : > { %4616 = vmatprep.mubr.msk.bf16.mxu1 %vm4987_vm1, %v4986_v3 }
 0xf36   : > { %v2145_v56 = vpop.f32.mrf.mxu1 }
 0xf37   : > { %v2151_v57 = vpack.c.bf16 %v2145_v56, %v2145_v56 }
 0xf38   : > { %v4612_v58 = vpop.f32.mrf.mxu1 }
 0xf39   : > { %v2159_v61 = vsel %vm1030_vm0, %v2151_v57, 0 }
 0xf3a   : > { %v2148_v15 = vpop.f32.mrf.mxu1  ;;  %4615 = vmatpush3.bf16.msra.mxu1 %v2159_v61 }
 0xf3b   : > { %4620 = vmatprep.subr.bf16.mxu1 %v4986_v3 }
 0xf3c   : > { %v4613_v36 = vpop.f32.mrf.mxu1 }
 0xf3d   : > { %4617 = vmatmul.mubr.msk.bf16.vlgmr.msra.gmra.mxu1 %vm1026_vm5, %v5608_v47 }
 0xf3e   : > { %4624 = vmatprep.mubr.msk.bf16.mxu1 %vm4987_vm1, %v4986_v3  ;;  %4621 = vmatpush3.bf16.msra.mxu1 %v5652_v18 }
 0xf3f   : > { %4622 = vmatprep.subr.bf16.mxu1 %v4986_v3 }
 0xf42   : > { %4623 = vmatpush3.bf16.msra.mxu1 %v5658_v19 }
 0xf43   : > { %4634 = vmatprep.subr.bf16.mxu1 %v4986_v3 }
 0xffd   : > { %v2195_v21 = vpop.f32.mrf.mxu1 }
 0xffe   : > { %v2196_v22 = vadd.f32 %v5666_v20, %v2195_v21 }
 0xfff   : > { %v4618_v23 = vpop.f32.mrf.mxu1 }
0x1000   : > { %v2201_v24 = vmax.f32 %v2196_v22, 0.0 }
0x1001   : > { %v2198_v7 = vpop.f32.mrf.mxu1 }
0x1002   : > { %v2202_v25 = vpack.c.bf16 %v2201_v24, %v2201_v24 }
0x1003   : > { %v4619_v27 = vpop.f32.mrf.mxu1 }
0x1004   : > { %2204 = vrot.lane.b32.xlu0 %v2202_v25, %s6301_s1 }
0x1076   : > { %v2205_v28 = vpop.permute.xlu0 %2204 }
0x1077   : > { %4625 = vmatmul.mubr.msk.bf16.vlgmr.msra.gmra.mxu1 %vm1258_vm7, %v2205_v28 }
0x1078   : > { %4636 = vmatprep.mubr.msk.bf16.mxu1 %vm4987_vm1, %v4986_v3  ;;  %4635 = vmatpush3.bf16.msra.mxu1 %v5682_v50 }
0x1079   : > { %2452 = vmatprep.subr.bf16.mxu1 %v4994_v33 }
0x1137   : > { %v2255_v31 = vpop.f32.mrf.mxu1 }
0x1138   : > { %v2261_v32 = vpack.c.bf16 %v2255_v31, %v2255_v31 }
0x1139   : > { %v4626_v35 = vpop.f32.mrf.mxu1 }
0x113a   : > { %v2269_v38 = vsel %vm1030_vm0, %v2261_v32, 0 }
0x113b   : > { %v2258_v48 = vpop.f32.mrf.mxu1  ;;  %4629 = vmatpush3.bf16.msra.mxu0 %v2269_v38 }
0x113c   : > { %4640 = vmatprep.subr.bf16.mxu0 %v4986_v3 }
0x113d   : > { %v4627_v41 = vpop.f32.mrf.mxu1 }
0x113e   : > { %4631 = vmatmul.mubr.msk.bf16.vlgmr.msra.gmra.mxu0 %vm1026_vm5, %v5608_v47 }
0x113f   : > { %4642 = vmatprep.mubr.msk.bf16.mxu0 %vm4987_vm1, %v4986_v3 }
0x11fe   : > { %v2305_v17 = vpop.f32.mrf.mxu0 }
0x11ff   : > { %v2306_v53 = vadd.f32 %v5689_v30, %v2305_v17  ;;  %v5735_v17 = vld [vmem:[%s6230_s17] ss:$0 sm:$0xff] }
0x1200   : > { %v4632_v55 = vpop.f32.mrf.mxu0 }
0x1201   : > { %v2311_v56 = vmax.f32 %v2306_v53, 0.0 }
0x1202   : > { %v2308_v57 = vpop.f32.mrf.mxu0 }
0x1203   : > { %2428 = vrot.lane.b32.xlu0 %v2311_v56, %s6312_s2  ;;  %v2312_v58 = vpack.c.bf16 %v2311_v56, %v2311_v56 }
0x1204   : > { %v4633_v61 = vpop.f32.mrf.mxu0 }
0x1205   : > { %2314 = vrot.lane.b32.xlu1 %v2312_v58, %s6301_s1 }
0x1207   : > { %2434 = vrot.lane.b32.xlu0 %v2201_v24, %s6312_s2 }
0x1209   : > { %2417 = vrot.lane.b32.xlu1 %v2201_v24, %s6302_s10 }
0x120d   : > { %2421 = vrot.lane.b32.xlu1 %v5636_v13, %s6302_s10 }
0x1211   : > { %2424 = vrot.lane.b32.xlu1 %v2201_v24, %s6303_s4 }
0x1215   : > { %2431 = vrot.lane.b32.xlu1 %v5636_v13, %s6313_s29 }
0x1219   : > { %2437 = vrot.lane.b32.xlu1 %v2311_v56, %s6314_s8 }
0x1275   : > { %v2429_v38 = vpop.permute.xlu0 %2428 }
0x1277   : > { %v2315_v15 = vpop.permute.xlu1 %2314 }
0x1278   : > { %4637 = vmatmul.mubr.msk.bf16.vlgmr.msra.gmra.mxu1 %vm975_vm3, %v2315_v15 }
0x1279   : > { %2453 = vmatpush1.bf16.msra.mxu1 %v5340_v34  ;;  %v2435_v57 = vpop.permute.xlu0 %2434 }
0x127a   : > { %2454 = vmatprep.subr.bf16.mxu1 %v4994_v33 }
0x127b   : > { %v2418_v25 = vpop.permute.xlu1 %2417 }
0x127c   : > { %v2440_v31 = vsel %vm975_vm3, %v5636_v13, %v2418_v25 }
0x127d   : > { %2455 = vmatpush1.bf16.msra.mxu1 %v5348_v37 }
0x127e   : > { %2456 = vmatprep.subr.bf16.mxu1 %v4994_v33 }
0x127f   : > { %v2422_v27 = vpop.permute.xlu1 %2421 }
0x1280   : > { %v2441_v32 = vsel %vm1258_vm7, %v2440_v31, %v2422_v27 }
0x1281   : > { %2457 = vmatpush1.bf16.msra.mxu1 %v5358_v40 }
0x1282   : > { %2458 = vmatprep.subr.bf16.mxu1 %v4994_v33 }
0x1283   : > { %v2425_v28 = vpop.permute.xlu1 %2424 }
0x1284   : > { %v2442_v48 = vsel %vm1147_vm6, %v2441_v32, %v2425_v28 }
0x1285   : > { %2459 = vmatpush1.bf16.msra.mxu1 %v5368_v43  ;;  %v2443_v41 = vsel %vm6315_vm11, %v2442_v48, %v2429_v38 }
0x1286   : > { %2460 = vmatprep.subr.bf16.mxu1 %v4994_v33 }
0x1287   : > { %v2432_v35 = vpop.permute.xlu1 %2431 }
0x1288   : > { %v2444_v53 = vsel %vm6316_vm14, %v2443_v41, %v2432_v35  ;;  %vm2693_vm14 = vcmask 125952  }
0x1289   : > { %2461 = vmatpush1.bf16.msra.mxu1 %v5378_v46  ;;  %v2445_v58 = vsel %vm6317_vm15, %v2444_v53, %v2435_v57  ;;  %vm2890_vm15 = vcmask 1041408  }
0x128a   : > { %2462 = vmatprep.subr.bf16.mxu1 %v4994_v33 }
0x128b   : > { %v2438_v55 = vpop.permute.xlu1 %2437 }
0x128c   : > { %v2446_v15 = vsel %vm6318_vm2, %v2445_v58, %v2438_v55  ;;  %v2705_v58 = vpack.c.bf16 %v5595_v16, %v5595_v16  ;;  %vm2796_vm2 = vcmask 27648  }
0x128d   : > { %2463 = vmatpush1.bf16.msra.mxu1 %v5388_v51 }
0x128e   : > { %2464 = vmatprep.subr.bf16.mxu1 %v4994_v33 }
0x1291   : > { %2465 = vmatpush1.bf16.msra.mxu1 %v5404_v59 }
0x1292   : > { %2466 = vmatprep.subr.bf16.mxu1 %v4994_v33 }
0x1295   : > { %2467 = vmatpush1.bf16.msra.mxu1 %v5414_v62 }
0x1296   : > { %2482 = vmatprep.subr.bf16.mxu1 %v4994_v33 }
0x1299   : > { %2483 = vmatpush2.bf16.msra.mxu1 %v5424_v1 }
0x129a   : > { %2845 = vmatprep.subr.bf16.mxu1 %v4994_v33 }
0x1338   : > { %v2359_v36 = vpop.f32.mrf.mxu1 }
0x1339   : > { %v2365_v21 = vpack.c.bf16 %v2359_v36, %v2359_v36 }
0x133a   : > { %v4638_v22 = vpop.f32.mrf.mxu1 }
0x133b   : > { %v2373_v23 = vsel %vm1030_vm0, %v2365_v21, 0 }
0x133c   : > { %v2362_v24 = vpop.f32.mrf.mxu1  ;;  %4641 = vmatpush3.bf16.msra.mxu0 %v2373_v23  ;;  %v2447_v23 = vpack.c.bf16 %v2446_v15, %v2446_v15 }
0x133d   : > { %4646 = vmatprep.subr.bf16.mxu0 %v4986_v3 }
0x133e   : > { %v4639_v7 = vpop.f32.mrf.mxu1 }
0x133f   : > { %4643 = vmatmul.mubr.msk.bf16.vlgmr.msra.gmra.mxu0 %vm1026_vm5, %v5608_v47 }
0x1340   : > { %4648 = vmatprep.mubr.msk.bf16.mxu0 %vm4987_vm1, %v4986_v3 }
0x13ff   : > { %v2409_v56 = vpop.f32.mrf.mxu0 }
0x1400   : > { %v2410_v13 = vadd.f32 %v5735_v17, %v2409_v56 }
0x1401   : > { %v4644_v61 = vpop.f32.mrf.mxu0 }
0x1402   : > { %v2415_v36 = vmax.f32 %v2410_v13, 0.0 }
0x1403   : > { %v2412_v21 = vpop.f32.mrf.mxu0 }
0x1404   : > { %v2448_v22 = vpack.c.bf16 %v2415_v36, %v2415_v36 }
0x1405   : > { %v4645_v24 = vpop.f32.mrf.mxu0 }
0x1406   : > { %4358 = vmatprep.mubr.msk.bf16.mxu1 %vm975_vm3, %v2448_v22 }
0x1407   : > { %2485 = vmatmul.mubr.bf16.vlgmr.msra.gmra.mxu1 %v2447_v23 }
0x1408   : > { %2846 = vmatpush1.bf16.msra.mxu1 %v5527_v54 }
0x1409   : > { %2847 = vmatprep.subr.bf16.mxu1 %v4994_v33 }
0x140c   : > { %2848 = vmatpush1.bf16.msra.mxu1 %v5537_v60 }
0x140d   : > { %2849 = vmatprep.subr.bf16.mxu1 %v4994_v33 }
0x1410   : > { %2850 = vmatpush1.bf16.msra.mxu1 %v5544_v63 }
0x1411   : > { %2851 = vmatprep.subr.bf16.mxu1 %v4994_v33 }
0x1414   : > { %2852 = vmatpush1.bf16.msra.mxu1 %v5551_v0 }
0x1415   : > { %2853 = vmatprep.subr.bf16.mxu1 %v4994_v33 }
0x1418   : > { %2854 = vmatpush1.bf16.msra.mxu1 %v5558_v4 }
0x1419   : > { %2855 = vmatprep.subr.bf16.mxu1 %v4994_v33 }
0x141c   : > { %2856 = vmatpush1.bf16.msra.mxu1 %v5565_v10 }
0x141d   : > { %2857 = vmatprep.subr.bf16.mxu1 %v4994_v33 }
0x1420   : > { %2858 = vmatpush1.bf16.msra.mxu1 %v5572_v11 }
0x1421   : > { %2859 = vmatprep.subr.bf16.mxu1 %v4994_v33 }
0x1424   : > { %2860 = vmatpush1.bf16.msra.mxu1 %v5579_v12 }
0x1425   : > { %2875 = vmatprep.subr.bf16.mxu1 %v4994_v33 }
0x1428   : > { %2876 = vmatpush2.bf16.msra.mxu1 %v5586_v14 }
0x1429   : > { %4694 = vmatprep.subr.bf16.mxu1 %v4986_v3 }
0x14c7   : > { %v2486_v54 = vpop.f32.mrf.mxu1 }
0x14c8   : > { %v2492_v60 = vpack.c.bf16 %v2486_v54, %v2486_v54 }
0x14c9   : > { %v2488_v63 = vpop.f32.mrf.mxu1 }
0x14ca   : > { %v2494_v0 = vsel %vm1030_vm0, %v2492_v60, 0 }
0x14cb   : > { %v2489_v4 = vpop.f32.mrf.mxu1  ;;  %4647 = vmatpush3.bf16.msra.mxu0 %v2494_v0 }
0x14cd   : > { %v2490_v10 = vpop.f32.mrf.mxu1 }
0x14ce   : > { %4649 = vmatmul.mubr.msk.bf16.vlgmr.msra.gmra.mxu0 %vm1026_vm5, %v5608_v47 }
0x14cf   : > { %2677 = vmatprep.mubr.bf16.mxu0 %v4994_v33 }
0x158e   : > { %v2530_v11 = vpop.f32.mrf.mxu0 }
0x158f   : > { %v2531_v12 = vadd.f32 %v5469_v2, %v2530_v11 }
0x1590   : > { %v4650_v7 = vpop.f32.mrf.mxu0 }
0x1591   : > { %2536 = vxpose.xlu1.b32.start.end [1/1] (short) (narrow) %v2531_v12, 8  ;;  %2574 = vperm.xlu0 %4779, %v2531_v12   ;;  %4913 = vtanh.f32 %v2531_v12 }
0x1592   : > { %v2533_v14 = vpop.f32.mrf.mxu0 }
0x1594   : > { %v4651_v25 = vpop.f32.mrf.mxu0 }
0x159e   : > { %v4914_v32 = vpop.eup %4913 }
0x160c   : > { %v2575_v31 = vpop.permute.xlu0 %2574 }
0x160d   : > { %v2552_v27 = vpop.trf.xlu1 }
0x160e   : > { %v2571_v28 = vrot.slane %v2552_v27, %v5246_v29 }
0x1610   : > { %vm2577_vm4 = vcmp.gt.f32.partialorder %v2571_v28, %v2575_v31  ;;  %vm2578_vm10 = vcmp.eq.f32.partialorder %v2571_v28, %v2575_v31 }
0x1611   : > { %vm2579_vm13 = vmand %vm2578_vm10, %vm1667_vm12  ;;  %vm6319_vm10 = vcmask 523264  }
0x1612   : > { %vm2580_vm9 = vmor %vm2577_vm4, %vm2579_vm13  ;;  %vm2886_vm4 = vcmask 31744   ;;  %vm6320_vm13 = vcmask 654336  }
0x1613   : > { %v4360_v47 = vsel %vm2580_vm9, 1.0, %v4986_v3  ;;  %vm6321_vm9 = vcmask 785408  }
0x1614   : > { %v2583_v2 = vsel %vm1026_vm5, %v4360_v47, 0.0 }
0x1615   : > { %2584 = vadd.xlane.f32.xlu0 %v2583_v2 }
0x162b   : > { %2629 = vperm.xlu0 %4779, %v4914_v32  }
0x169e   : > { %v2585_v35 = vpop.xlane.xlu0 %2584 }
0x169f   : > { %2586 = vxpose.xlu1.b32.start.end [1/1] (short) (narrow) %v2585_v35, 8  ;;  %vm2701_vm11 = vcmp.eq.f32.partialorder %v5486_v26, %v2585_v35 }
0x16a0   : > { %v4364_v21 = vsel %vm2701_vm11, 1.0, %v4986_v3 }
0x16a1   : > { %v2704_v16 = vpack.c.bf16 %v4364_v21, %v4364_v21 }
0x16a3   : > { %v2754_v22 = vsel %vm1030_vm0, %v2704_v16, 0 }
0x16a6   : > { %v2630_v38 = vpop.permute.xlu0 %2629 }
0x16a7   : > { %v2632_v48 = vmul.f32 %v2630_v38, %v2446_v15  ;;  %v2633_v41 = vmul.f32 %v2630_v38, %v2415_v36  ;;  %v2707_v36 = vsel %vm1030_vm0, %v2705_v58, 0 }
0x16a9   : > { %v2634_v53 = vpack.c.bf16 %v2632_v48, %v2632_v48  ;;  %v2635_v55 = vpack.c.bf16 %v2633_v41, %v2633_v41 }
0x16ab   : > { %4362 = vmatprep.subr.msk.bf16.mxu0 %vm1030_vm0, %v2635_v55  ;;  %v2640_v56 = vsel %vm1030_vm0, %v2634_v53, 0 }
0x16ac   : > { %2660 = vmatpush1.bf16.msra.mxu0 %v2640_v56 }
0x16ad   : > { %4652 = vmatprep.subr.bf16.mxu0 %v4986_v3 }
0x171b   : > { %v2602_v57 = vpop.trf.xlu1 }
0x171c   : > { %v2621_v13 = vrot.slane %v2602_v57, %v5246_v29 }
0x171e   : > { %vm2622_vm8 = vcmp.eq.f32.partialorder %v5502_v44, %v2621_v13 }
0x171f   : > { %v4361_v61 = vsel %vm2622_vm8, 1.0, %v4986_v3  ;;  %vm6322_vm8 = vcmask 916480  }
0x1720   : > { %v2625_v15 = vpack.c.bf16 %v4361_v61, %v4361_v61 }
0x1722   : > { %4363 = vmatmul.mubr.msk.bf16.vlgmr.msra.gmra.mxu0 %vm1026_vm5, %v2625_v15 }
0x1723   : > { %4653 = vmatpush3.bf16.msra.mxu0 %v2707_v36  ;;  %4654 = vmatprep.mubr.msk.bf16.mxu0 %vm4987_vm1, %v4986_v3 }
0x1724   : > { %4658 = vmatprep.subr.bf16.mxu0 %v4986_v3 }
0x172a   : > { %4655 = vmatmul.mubr.msk.bf16.vlgmr.msra.gmra.mxu0 %vm1026_vm5, %v2625_v15 }
0x172b   : > { %4659 = vmatpush3.bf16.msra.mxu0 %v2754_v22  ;;  %4660 = vmatprep.mubr.msk.bf16.mxu0 %vm4987_vm1, %v4986_v3 }
0x172c   : > { %4664 = vmatprep.subr.bf16.mxu0 %v4986_v3 }
0x17e2   : > { %v2679_v26 = vpop.f32.mrf.mxu0 }
0x17e3   : > { %v2686_v23 = vsel %vm1030_vm0, %v2679_v26, -inf  ;;  %v2840_v4 = vpack.c.bf16 %v2679_v26, %v2679_v26 }
0x17e4   : > { %v2687_v24 = vrot.slane %v2686_v23, 4  ;;  %v2681_v54 = vpop.f32.mrf.mxu0 }
0x17e5   : > { %v2694_v60 = vsel %vm2693_vm14, %v2681_v54, -inf  ;;  %v2841_v63 = vpack.c.bf16 %v2681_v54, %v2681_v54 }
0x17e6   : > { %v2688_v0 = vmax.f32 %v2686_v23, %v2687_v24  ;;  %v2695_v10 = vrot.slane %v2694_v60, 4  ;;  %v2683_v11 = vpop.f32.mrf.mxu0 }
0x17e7   : > { %4367 = vmatprep.mubr.msk.bf16.mxu1 %vm975_vm3, %v2841_v63 }
0x17e8   : > { %v2689_v12 = vrot.slane %v2688_v0, 2  ;;  %v2696_v7 = vmax.f32 %v2694_v60, %v2695_v10  ;;  %v2684_v14 = vpop.f32.mrf.mxu0  ;;  %2878 = vmatmul.mubr.bf16.vlgmr.msra.gmra.mxu1 %v2840_v4 }
0x17e9   : > { %4696 = vmatprep.mubr.msk.bf16.mxu1 %vm4987_vm1, %v4986_v3 }
0x17ea   : > { %v2690_v25 = vmax.f32 %v2688_v0, %v2689_v12  ;;  %v2697_v27 = vrot.slane %v2696_v7, 2  ;;  %v2743_v28 = vpop.f32.mrf.mxu0 }
0x17eb   : > { %v2749_v31 = vpack.c.bf16 %v2743_v28, %v2743_v28 }
0x17ec   : > { %v2691_v47 = vrot.slane %v2690_v25, 1  ;;  %v2698_v2 = vmax.f32 %v2696_v7, %v2697_v27  ;;  %v4656_v32 = vpop.f32.mrf.mxu0 }
0x17ed   : > { %4661 = vmatmul.mubr.msk.bf16.vlgmr.msra.gmra.mxu0 %vm1026_vm5, %v2749_v31 }
0x17ee   : > { %v2699_v35 = vrot.slane %v2698_v2, 1  ;;  %v2746_v38 = vpop.f32.mrf.mxu0  ;;  %4666 = vmatprep.mubr.msk.bf16.mxu0 %vm4987_vm1, %v4986_v3  ;;  %v5798_v41 = vmax.f32 %v2690_v25, %v2691_v47 }
0x17f0   : > { %v4657_v48 = vpop.f32.mrf.mxu0  ;;  %v5800_v53 = vmax.f32 %v2698_v2, %v2699_v35 }
0x17f2   : > { %v4781_v55 = vpack.i.bf16 %v5800_v53, %v5798_v41 }
0x18a8   : > { %v2879_v56 = vpop.f32.mrf.mxu1 }
0x18a9   : > { %v2885_v57 = vpack.c.bf16 %v2879_v56, %v2879_v56 }
0x18aa   : > { %v2881_v13 = vpop.f32.mrf.mxu1 }
0x18ab   : > { %v2892_v58 = vsel %vm2890_vm15, %v2885_v57, 0 }
0x18ac   : > { %v2882_v61 = vpop.f32.mrf.mxu1  ;;  %4665 = vmatpush3.bf16.msra.mxu0 %v2892_v58 }
0x18ad   : > { %v2790_v15 = vpop.f32.mrf.mxu0  ;;  %4670 = vmatprep.subr.bf16.mxu0 %v4986_v3 }
0x18ae   : > { %v2791_v36 = vadd.f32 %v5225_v8, %v2790_v15  ;;  %v2883_v21 = vpop.f32.mrf.mxu1 }
0x18af   : > { %v4662_v16 = vpop.f32.mrf.mxu0 }
0x18b0   : > { %v2797_v22 = vsel %vm2796_vm2, %v2791_v36, 0.0 }
0x18b1   : > { %2798 = vadd.xlane.f32.xlu1 %v2797_v22  ;;  %v2793_v26 = vpop.f32.mrf.mxu0 }
0x18b3   : > { %v4663_v23 = vpop.f32.mrf.mxu0 }
0x193a   : > { %v2799_v24 = vpop.xlane.xlu1 %2798 }
0x193b   : > { %4915 = vrsqrt.f32 %v2799_v24 }
0x1948   : > { %v4916_v54 = vpop.eup %4915 }
0x1949   : > { %2802 = vxpose.xlu0.b32.start.end [1/1] (short) (narrow) %v4916_v54, 8  ;;  %v2801_v63 = vmul.f32 %v4916_v54, %v2791_v36 }
0x19c5   : > { %v2818_v60 = vpop.trf.xlu0 }
0x19c6   : > { %v2837_v0 = vrot.slane %v2818_v60, %v5246_v29 }
0x19c8   : > { %v2838_v4 = vmul.f32 %v2837_v0, %v2801_v63 }
0x19ca   : > { %v5809_v10 = vpack.c.bf16 %v2838_v4, %v2838_v4 }
0x19cc   : > { %4667 = vmatmul.mubr.msk.bf16.vlgmr.msra.gmra.mxu0 %vm2886_vm4, %v5809_v10 }
0x19cd   : > { %4671 = vmatpush3.bf16.msra.mxu0 %v5606_v39  ;;  %4676 = vmatprep.mubr.msk.bf16.mxu0 %vm4987_vm1, %v4986_v3 }
0x19ce   : > { %4672 = vmatprep.subr.bf16.mxu0 %v4986_v3 }
0x19d1   : > { %4673 = vmatpush3.bf16.msra.mxu0 %v5619_v42 }
0x19d2   : > { %4674 = vmatprep.subr.bf16.mxu0 %v4986_v3 }
0x19d5   : > { %4675 = vmatpush3.bf16.msra.mxu0 %v5626_v45 }
0x19d6   : > { %4680 = vmatprep.subr.bf16.mxu0 %v4986_v3 }
0x1a8c   : > { %v2928_v8 = vpop.f32.mrf.mxu0 }
0x1a8d   : > { %v2929_v11 = vadd.f32 %v5633_v49, %v2928_v8 }
0x1a8e   : > { %v4668_v12 = vpop.f32.mrf.mxu0 }
0x1a8f   : > { %v5822_v7 = vmax.f32 %v2929_v11, 0.0 }
0x1a90   : > { %v2931_v39 = vpop.f32.mrf.mxu0 }
0x1a91   : > { %v2935_v14 = vpack.c.bf16 %v5822_v7, %v5822_v7 }
0x1a92   : > { %v4669_v25 = vpop.f32.mrf.mxu0 }
0x1a93   : > { %4677 = vmatmul.mubr.msk.bf16.vlgmr.msra.gmra.mxu0 %vm1147_vm6, %v2935_v14 }
0x1a94   : > { %4682 = vmatprep.mubr.msk.bf16.mxu0 %vm4987_vm1, %v4986_v3 }
0x1b53   : > { %v2973_v42 = vpop.f32.mrf.mxu0 }
0x1b54   : > { %v2979_v45 = vpack.c.bf16 %v2973_v42, %v2973_v42 }
0x1b55   : > { %v4678_v27 = vpop.f32.mrf.mxu0 }
0x1b56   : > { %v2981_v28 = vsel %vm2890_vm15, %v2979_v45, 0 }
0x1b57   : > { %v2976_v31 = vpop.f32.mrf.mxu0  ;;  %4681 = vmatpush3.bf16.msra.mxu0 %v2981_v28 }
0x1b58   : > { %4686 = vmatprep.subr.bf16.mxu0 %v4986_v3 }
0x1b59   : > { %v4679_v49 = vpop.f32.mrf.mxu0 }
0x1b5a   : > { %4683 = vmatmul.mubr.msk.bf16.vlgmr.msra.gmra.mxu0 %vm2886_vm4, %v5809_v10 }
0x1b5b   : > { %4687 = vmatpush3.bf16.msra.mxu0 %v5652_v18  ;;  %4690 = vmatprep.mubr.msk.bf16.mxu0 %vm4987_vm1, %v4986_v3 }
0x1b5c   : > { %4688 = vmatprep.subr.bf16.mxu0 %v4986_v3 }
0x1b5f   : > { %4689 = vmatpush3.bf16.msra.mxu0 %v5658_v19 }
0x1b60   : > { %4700 = vmatprep.subr.bf16.mxu0 %v4986_v3 }
0x1c1a   : > { %v3017_v47 = vpop.f32.mrf.mxu0 }
0x1c1b   : > { %v3018_v2 = vadd.f32 %v5666_v20, %v3017_v47 }
0x1c1c   : > { %v4684_v32 = vpop.f32.mrf.mxu0 }
0x1c1d   : > { %v3023_v35 = vmax.f32 %v3018_v2, 0.0 }
0x1c1e   : > { %v3020_v38 = vpop.f32.mrf.mxu0 }
0x1c1f   : > { %v3024_v48 = vpack.c.bf16 %v3023_v35, %v3023_v35 }
0x1c20   : > { %v4685_v56 = vpop.f32.mrf.mxu0 }
0x1c21   : > { %3026 = vrot.lane.b32.xlu1 %v3024_v48, %s6301_s1  ;;  %v4923_v48 = vld [vmem:[#allocation2] ss:$0 sm:$0xff] }
0x1c25   : > { %3209 = vrot.lane.b32.xlu1 %v3023_v35, %s6302_s10 }
0x1c29   : > { %3213 = vrot.lane.b32.xlu1 %v5822_v7, %s6302_s10 }
0x1c2d   : > { %3216 = vrot.lane.b32.xlu1 %v3023_v35, %s6303_s4 }
0x1c93   : > { %v3027_v18 = vpop.permute.xlu1 %3026 }
0x1c94   : > { %4691 = vmatmul.mubr.msk.bf16.vlgmr.msra.gmra.mxu0 %vm1258_vm7, %v3027_v18 }
0x1c95   : > { %4701 = vmatpush3.bf16.msra.mxu0 %v5682_v50  ;;  %4702 = vmatprep.mubr.msk.bf16.mxu0 %vm4987_vm1, %v4986_v3 }
0x1c96   : > { %3244 = vmatprep.subr.bf16.mxu0 %v4994_v33 }
0x1d54   : > { %v3065_v19 = vpop.f32.mrf.mxu0 }
0x1d55   : > { %v3071_v20 = vpack.c.bf16 %v3065_v19, %v3065_v19 }
0x1d56   : > { %v4692_v57 = vpop.f32.mrf.mxu0 }
0x1d57   : > { %v3073_v13 = vsel %vm2890_vm15, %v3071_v20, 0 }
0x1d58   : > { %v3068_v58 = vpop.f32.mrf.mxu0  ;;  %4695 = vmatpush3.bf16.msra.mxu1 %v3073_v13 }
0x1d59   : > { %4706 = vmatprep.subr.bf16.mxu1 %v4986_v3 }
0x1d5a   : > { %v4693_v61 = vpop.f32.mrf.mxu0 }
0x1d5b   : > { %4697 = vmatmul.mubr.msk.bf16.vlgmr.msra.gmra.mxu1 %vm2886_vm4, %v5809_v10 }
0x1d5c   : > { %4708 = vmatprep.mubr.msk.bf16.mxu1 %vm4987_vm1, %v4986_v3 }
0x1e1b   : > { %v3109_v50 = vpop.f32.mrf.mxu1 }
0x1e1c   : > { %v3110_v15 = vadd.f32 %v5689_v30, %v3109_v50 }
0x1e1d   : > { %v4698_v36 = vpop.f32.mrf.mxu1 }
0x1e1e   : > { %v3115_v21 = vmax.f32 %v3110_v15, 0.0 }
0x1e1f   : > { %v3112_v16 = vpop.f32.mrf.mxu1 }
0x1e20   : > { %3220 = vrot.lane.b32.xlu1 %v3115_v21, %s6312_s2  ;;  %v3116_v22 = vpack.c.bf16 %v3115_v21, %v3115_v21 }
0x1e21   : > { %v4699_v26 = vpop.f32.mrf.mxu1 }
0x1e22   : > { %3118 = vrot.lane.b32.xlu0 %v3116_v22, %s6301_s1  ;;  %s4193_s1 = sshll.u32 %s855_s0, 4  ;;  %s4194_s1 = int_to_ptr.vmem [resolvable:$true] %s4193_s1 }
0x1e23   : > { %s4924_s5 = scalar_lea.vmem %s4194_s1, 16 }
0x1e24   : > { %3223 = vrot.lane.b32.xlu1 %v5822_v7, %s6313_s29  ;;  %s877_s29 = scalar_lea.vmem %s6241_s28, %s4454_s9  ;;  %p4925_p11 = scmp.ne.s32.totalorder %s4194_s1, %s4924_s5 }
0x1e26   : > { %p4926_p12 = pnand %p4925_p11, %p5183_p5 }
0x1e28   : > { %3226 = vrot.lane.b32.xlu1 %v3023_v35, %s6312_s2  ;;  %s4191_s2 = scalar_lea.hbm %s6240_s27, %s4449_s3  ;;  %p4927_p13 = pneg %p4926_p12 }
0x1e2c   : > { %3229 = vrot.lane.b32.xlu1 %v3115_v21, %s6314_s8 }
0x1e94   : > { %v3119_v23 = vpop.permute.xlu0 %3118 }
0x1e95   : > { %4703 = vmatmul.mubr.msk.bf16.vlgmr.msra.gmra.mxu0 %vm975_vm3, %v3119_v23  ;;  %v1792_v23 = vsel %vm975_vm3, %v5522_v9, -inf  ;;  %v4820_v9 = vld [vmem:[%s6233_s20 + $0x54] ss:$8 sps:$4 sm:$0xff]  }
0x1e96   : > { %3245 = vmatpush1.bf16.msra.mxu0 %v5340_v34 }
0x1e97   : > { %3246 = vmatprep.subr.bf16.mxu0 %v4994_v33 }
0x1e9a   : > { %3247 = vmatpush1.bf16.msra.mxu0 %v5348_v37 }
0x1e9b   : > { %3248 = vmatprep.subr.bf16.mxu0 %v4994_v33 }
0x1e9e   : > { %3249 = vmatpush1.bf16.msra.mxu0 %v5358_v40 }
0x1e9f   : > { %3250 = vmatprep.subr.bf16.mxu0 %v4994_v33 }
0x1ea2   : > { %3251 = vmatpush1.bf16.msra.mxu0 %v5368_v43 }
0x1ea3   : > { %3252 = vmatprep.subr.bf16.mxu0 %v4994_v33 }
0x1ea6   : > { %3253 = vmatpush1.bf16.msra.mxu0 %v5378_v46 }
0x1ea7   : > { %3254 = vmatprep.subr.bf16.mxu0 %v4994_v33 }
0x1eaa   : > { %3255 = vmatpush1.bf16.msra.mxu0 %v5388_v51 }
0x1eab   : > { %3256 = vmatprep.subr.bf16.mxu0 %v4994_v33 }
0x1eae   : > { %3257 = vmatpush1.bf16.msra.mxu0 %v5404_v59  ;;  %v3210_v59 = vpop.permute.xlu1 %3209 }
0x1eaf   : > { %3258 = vmatprep.subr.bf16.mxu0 %v4994_v33  ;;  %v3232_v60 = vsel %vm975_vm3, %v5822_v7, %v3210_v59 }
0x1eb2   : > { %3259 = vmatpush1.bf16.msra.mxu0 %v5414_v62  ;;  %v3214_v62 = vpop.permute.xlu1 %3213 }
0x1eb3   : > { %3274 = vmatprep.subr.bf16.mxu0 %v4994_v33  ;;  %v3233_v63 = vsel %vm1258_vm7, %v3232_v60, %v3214_v62  ;;  %v4818_v62 = vld [vmem:[%s6233_s20 + $0x50] ss:$8 sps:$4 sm:$0xff]   ;;  %v4826_v60 = vld [vmem:[%s6233_s20 + $0x34] ss:$8 sps:$4 sm:$0xff]  }
0x1eb6   : > { %3275 = vmatpush2.bf16.msra.mxu0 %v5424_v1  ;;  %v3217_v30 = vpop.permute.xlu1 %3216 }
0x1eb7   : > { %v3234_v0 = vsel %vm1147_vm6, %v3233_v63, %v3217_v30 }
0x1eba   : > { %v3221_v1 = vpop.permute.xlu1 %3220 }
0x1ebb   : > { %v3235_v4 = vsel %vm6319_vm10, %v3234_v0, %v3221_v1  ;;  %v4823_v1 = vld [vmem:[%s6233_s20 + $0x44] ss:$8 sps:$4 sm:$0xff]   ;;  %v4824_v0 = vld [vmem:[%s6233_s20 + $0x30] ss:$8 sps:$4 sm:$0xff]  }
0x1ebe   : > { %v3224_v24 = vpop.permute.xlu1 %3223 }
0x1ebf   : > { %v3236_v12 = vsel %vm6320_vm13, %v3235_v4, %v3224_v24  ;;  %v4821_v24 = vld [vmem:[%s6233_s20 + $0x40] ss:$8 sps:$4 sm:$0xff]  }
0x1ec2   : > { %v3227_v54 = vpop.permute.xlu1 %3226 }
0x1ec3   : > { %v3237_v14 = vsel %vm6321_vm9, %v3236_v12, %v3227_v54  ;;  %vm4171_vm9 = vcmask 1042432  }
0x1ec6   : > { %v3230_v8 = vpop.permute.xlu1 %3229 }
0x1ec7   : > { %v3238_v42 = vsel %vm6322_vm8, %v3237_v14, %v3230_v8  ;;  %vm4172_vm8 = vcmask 129028  }
0x1ec8   : > { %v3239_v28 = vpack.c.bf16 %v3238_v42, %v3238_v42 }
0x1f55   : > { %v3157_v34 = vpop.f32.mrf.mxu0 }
0x1f56   : > { %v3163_v37 = vpack.c.bf16 %v3157_v34, %v3157_v34 }
0x1f57   : > { %v4704_v40 = vpop.f32.mrf.mxu0 }
0x1f58   : > { %v3165_v43 = vsel %vm2890_vm15, %v3163_v37, 0  ;;  %v1793_v37 = vrot.slane %v1792_v23, 4 }
0x1f59   : > { %v3160_v46 = vpop.f32.mrf.mxu0  ;;  %4707 = vmatpush3.bf16.msra.mxu1 %v3165_v43 }
0x1f5a   : > { %4712 = vmatprep.subr.bf16.mxu1 %v4986_v3  ;;  %v4812_v46 = vld [vmem:[%s6233_s20 + $0x70] ss:$8 sps:$4 sm:$0xff]  }
0x1f5b   : > { %v4705_v51 = vpop.f32.mrf.mxu0 }
0x1f5c   : > { %4709 = vmatmul.mubr.msk.bf16.vlgmr.msra.gmra.mxu1 %vm2886_vm4, %v5809_v10  ;;  %v1794_v51 = vmax.f32 %v1792_v23, %v1793_v37  ;;  %v4869_v23 = vld [vmem:[%s6233_s20 + $0x140] ss:$8 sps:$4 sm:$0xff]   ;;  %v4872_v37 = vld [vmem:[%s6233_s20 + $0x130] ss:$8 sps:$4 sm:$0xff]  }
0x1f5d   : > { %4714 = vmatprep.mubr.msk.bf16.mxu1 %vm4987_vm1, %v4986_v3 }
0x201c   : > { %v3201_v11 = vpop.f32.mrf.mxu1 }
0x201d   : > { %v3202_v39 = vadd.f32 %v5735_v17, %v3201_v11  ;;  %v4829_v11 = vld [vmem:[%s6233_s20 + $0x24] ss:$8 sps:$4 sm:$0xff]  }
0x201e   : > { %v4710_v25 = vpop.f32.mrf.mxu1 }
0x201f   : > { %v3207_v45 = vmax.f32 %v3202_v39, 0.0  ;;  %v4827_v39 = vld [vmem:[%s6233_s20 + $0x20] ss:$8 sps:$4 sm:$0xff]   ;;  %v4832_v25 = vld [vmem:[%s6233_s20 + $0x14] ss:$8 sps:$4 sm:$0xff]  }
0x2020   : > { %v3204_v27 = vpop.f32.mrf.mxu1 }
0x2021   : > { %v3240_v7 = vpack.c.bf16 %v3207_v45, %v3207_v45  ;;  %v4833_v27 = vld [vmem:[%s6233_s20] ss:$8 sps:$4 sm:$0xff]  }
0x2022   : > { %v4711_v31 = vpop.f32.mrf.mxu1 }
0x2023   : > { %4375 = vmatprep.mubr.msk.bf16.mxu0 %vm975_vm3, %v3240_v7  ;;  %v4838_v7 = vld [vmem:[%s6233_s20 + $0xf4] ss:$8 sps:$4 sm:$0xff]   ;;  %v4841_v31 = vld [vmem:[%s6233_s20 + $0xe4] ss:$8 sps:$4 sm:$0xff]  }
0x2024   : > { %3277 = vmatmul.mubr.bf16.vlgmr.msra.gmra.mxu0 %v3239_v28  ;;  %v4836_v28 = vld [vmem:[%s6233_s20 + $0xf0] ss:$8 sps:$4 sm:$0xff]  }
0x20e4   : > { %v3278_v49 = vpop.f32.mrf.mxu0 }
0x20e5   : > { %v3284_v47 = vpack.c.bf16 %v3278_v49, %v3278_v49  ;;  %v4839_v49 = vld [vmem:[%s6233_s20 + $0xe0] ss:$8 sps:$4 sm:$0xff]  }
0x20e6   : > { %v3280_v2 = vpop.f32.mrf.mxu0 }
0x20e7   : > { %v3286_v32 = vsel %vm2890_vm15, %v3284_v47, 0  ;;  %v4844_v47 = vld [vmem:[%s6233_s20 + $0xd4] ss:$8 sps:$4 sm:$0xff]   ;;  %v4842_v2 = vld [vmem:[%s6233_s20 + $0xd0] ss:$8 sps:$4 sm:$0xff]  }
0x20e8   : > { %v3281_v35 = vpop.f32.mrf.mxu0  ;;  %4713 = vmatpush3.bf16.msra.mxu1 %v3286_v32  ;;  %v1786_v32 = vrot.slane %v5520_v52, 4 }
0x20e9   : > { %v4847_v35 = vld [vmem:[%s6233_s20 + $0xc4] ss:$8 sps:$4 sm:$0xff]  }
0x20ea   : > { %v3282_v17 = vpop.f32.mrf.mxu0 }
0x20eb   : > { %4715 = vmatmul.mubr.msk.bf16.vlgmr.msra.gmra.mxu1 %vm2886_vm4, %v5809_v10  ;;  %v4845_v17 = vld [vmem:[%s6233_s20 + $0xc0] ss:$8 sps:$4 sm:$0xff]  }
0x20ec   : > { %3469 = vmatprep.mubr.bf16.mxu1 %v4994_v33 }
0x21ab   : > { %v3322_v38 = vpop.f32.mrf.mxu1 }
0x21ac   : > { %v3323_v56 = vadd.f32 %v4923_v48, %v3322_v38  ;;  %v1787_v38 = vmax.f32 %v5520_v52, %v1786_v32  ;;  %v4850_v48 = vld [vmem:[%s6233_s20 + $0xb4] ss:$8 sps:$4 sm:$0xff]   ;;  %v4851_v52 = vld [vmem:[%s6233_s20 + $0xa0] ss:$8 sps:$4 sm:$0xff]  }
0x21ad   : > { %v4716_v18 = vpop.f32.mrf.mxu1 }
0x21ae   : > { %3328 = vxpose.xlu1.b32.start.end [1/1] (short) (narrow) %v3323_v56, 8  ;;  %3366 = vperm.xlu0 %4779, %v3323_v56   ;;  %4917 = vtanh.f32 %v3323_v56  ;;  %v4848_v56 = vld [vmem:[%s6233_s20 + $0xb0] ss:$8 sps:$4 sm:$0xff]   ;;  %v1788_v18 = vrot.slane %v1787_v38, 2 }
0x21af   : > { %v3325_v19 = vpop.f32.mrf.mxu1 }
0x21b0   : > { %v4853_v19 = vld [vmem:[%s6233_s20 + $0xa4] ss:$8 sps:$4 sm:$0xff]  }
0x21b1   : > { %v4717_v20 = vpop.f32.mrf.mxu1 }
0x21b2   : > { %v1789_v20 = vmax.f32 %v1787_v38, %v1788_v18 }
0x21bb   : > { %v4918_v50 = vpop.eup %4917 }
0x2229   : > { %v3367_v58 = vpop.permute.xlu0 %3366 }
0x222a   : > { %v3344_v57 = vpop.trf.xlu1 }
0x222b   : > { %v3363_v13 = vrot.slane %v3344_v57, %v5246_v29  ;;  %v4856_v57 = vld [vmem:[%s6233_s20 + $0x94] ss:$8 sps:$4 sm:$0xff]  }
0x222d   : > { %vm3369_vm11 = vcmp.gt.f32.partialorder %v3363_v13, %v3367_v58  ;;  %vm3370_vm14 = vcmp.eq.f32.partialorder %v3363_v13, %v3367_v58  ;;  %v4854_v13 = vld [vmem:[%s6233_s20 + $0x90] ss:$8 sps:$4 sm:$0xff]   ;;  %v1790_v58 = vrot.slane %v1789_v20, 1 }
0x222e   : > { %vm3371_vm10 = vmand %vm3370_vm14, %vm1667_vm12 }
0x222f   : > { %vm3372_vm13 = vmor %vm3369_vm11, %vm3371_vm10 }
0x2230   : > { %v4377_v10 = vsel %vm3372_vm13, 1.0, %v4986_v3  ;;  %vm4173_vm11 = vmor %vm4172_vm8, %vm4171_vm9 }
0x2231   : > { %v3375_v61 = vsel %vm2796_vm2, %v4377_v10, 0.0  ;;  %v4859_v10 = vld [vmem:[%s6233_s20 + $0x84] ss:$8 sps:$4 sm:$0xff]   ;;  %vm3485_vm2 = vcmask 123904  }
0x2232   : > { %3376 = vadd.xlane.f32.xlu0 %v3375_v61  ;;  %v4857_v61 = vld [vmem:[%s6233_s20 + $0x80] ss:$8 sps:$4 sm:$0xff]  }
0x2248   : > { %3421 = vperm.xlu0 %4779, %v4918_v50   ;;  %v6026_v50 = vmax.f32 %v1789_v20, %v1790_v58 }
0x22bb   : > { %v3377_v15 = vpop.xlane.xlu0 %3376 }
0x22bc   : > { %3378 = vxpose.xlu1.b32.start.end [1/1] (short) (narrow) %v3377_v15, 8  ;;  %v3513_v15 = vpack.c.bf16 %v6026_v50, %v6026_v50 }
0x22c3   : > { %v3422_v36 = vpop.permute.xlu0 %3421 }
0x22c4   : > { %v3424_v21 = vmul.f32 %v3422_v36, %v3238_v42  ;;  %v3425_v16 = vmul.f32 %v3422_v36, %v3207_v45  ;;  %v4830_v42 = vld [vmem:[%s6233_s20 + $0x10] ss:$8 sps:$4 sm:$0xff]   ;;  %v4835_v45 = vld [vmem:[%s6233_s20 + $0x4] ss:$8 sps:$4 sm:$0xff]  }
0x22c5   : > { %v4860_v36 = vld [vmem:[%s6233_s20 + $0x170] ss:$8 sps:$4 sm:$0xff]  }
0x22c6   : > { %v3426_v22 = vpack.c.bf16 %v3424_v21, %v3424_v21  ;;  %v3427_v26 = vpack.c.bf16 %v3425_v16, %v3425_v16  ;;  %v4862_v21 = vld [vmem:[%s6233_s20 + $0x174] ss:$8 sps:$4 sm:$0xff]   ;;  %v4865_v16 = vld [vmem:[%s6233_s20 + $0x164] ss:$8 sps:$4 sm:$0xff]  }
0x22c7   : > { %3885 = vmatprep.subr.bf16.mxu0 %v4862_v21  ;;  %v4897_v21 = vld [vmem:[%s6234_s21 + $0x18] sm:$0xff]  }
0x22c8   : > { %4379 = vmatprep.subr.msk.bf16.mxu1 %vm2890_vm15, %v3427_v26  ;;  %v3432_v6 = vsel %vm2890_vm15, %v3426_v22, 0  ;;  %3886 = vmatpush1.bf16.msra.mxu0 %v4860_v36  ;;  %v4863_v22 = vld [vmem:[%s6233_s20 + $0x160] ss:$8 sps:$4 sm:$0xff]   ;;  %v4868_v26 = vld [vmem:[%s6233_s20 + $0x154] ss:$8 sps:$4 sm:$0xff]  }
0x22c9   : > { %3452 = vmatpush1.bf16.msra.mxu1 %v3432_v6  ;;  %3887 = vmatprep.subr.bf16.mxu0 %v4865_v16  ;;  %v4871_v6 = vld [vmem:[%s6233_s20 + $0x144] ss:$8 sps:$4 sm:$0xff]   ;;  %v4898_v16 = vld [vmem:[%s6234_s21 + $0x10] sm:$0xff]  }
0x22ca   : > { %3844 = vmatprep.subr.bf16.mxu1 %v4814_v5  ;;  %v4866_v5 = vld [vmem:[%s6233_s20 + $0x150] ss:$8 sps:$4 sm:$0xff]   ;;  %v4896_v36 = vld [vmem:[%s6234_s21 + $0x20] sm:$0xff]  }
0x22cc   : > { %3888 = vmatpush1.bf16.msra.mxu0 %v4863_v22  ;;  %v4899_v22 = vld [vmem:[%s6234_s21 + $0x8] sm:$0xff]  }
0x22cd   : > { %3889 = vmatprep.subr.bf16.mxu0 %v4868_v26  ;;  %v4900_v26 = vld [vmem:[%s6234_s21] sm:$0xff]  }
0x22d0   : > { %3890 = vmatpush1.bf16.msra.mxu0 %v4866_v5  ;;  %v4901_v5 = vld [vmem:[%s6234_s21 + $0x40] sm:$0xff]  }
0x22d1   : > { %3891 = vmatprep.subr.bf16.mxu0 %v4871_v6 }
0x22d4   : > { %3892 = vmatpush1.bf16.msra.mxu0 %v4869_v23 }
0x22da   : > { %4782 = vrot.lane.b32.xlu1 %v4781_v55, %s6302_s10  ;;  %v4817_v55 = vld [vmem:[%s6233_s20 + $0x64] ss:$8 sps:$4 sm:$0xff]  }
0x2338   : > { %v3394_v34 = vpop.trf.xlu1 }
0x2339   : > { %v3413_v40 = vrot.slane %v3394_v34, %v5246_v29  ;;  %v4815_v29 = vld [vmem:[%s6233_s20 + $0x60] ss:$8 sps:$4 sm:$0xff]   ;;  %v4874_v34 = vld [vmem:[%s6233_s20 + $0x134] ss:$8 sps:$4 sm:$0xff]  }
0x233a   : > { %3893 = vmatprep.subr.bf16.mxu0 %v4874_v34 }
0x233b   : > { %vm3414_vm12 = vcmp.eq.f32.partialorder %v5502_v44, %v3413_v40  ;;  %v1795_v44 = vrot.slane %v1794_v51, 2  ;;  %v4877_v40 = vld [vmem:[%s6233_s20 + $0x124] ss:$8 sps:$4 sm:$0xff]   ;;  %3894 = vmatpush1.bf16.msra.mxu0 %v4872_v37 }
0x233c   : > { %v4378_v43 = vsel %vm3414_vm12, 1.0, %v4986_v3  ;;  %3895 = vmatprep.subr.bf16.mxu0 %v4877_v40 }
0x233d   : > { %v3417_v59 = vpack.c.bf16 %v4378_v43, %v4378_v43  ;;  %v1796_v30 = vmax.f32 %v1794_v51, %v1795_v44  ;;  %v4875_v43 = vld [vmem:[%s6233_s20 + $0x120] ss:$8 sps:$4 sm:$0xff]   ;;  %v4878_v51 = vld [vmem:[%s6233_s20 + $0x110] ss:$8 sps:$4 sm:$0xff]  }
0x233e   : > { %v4884_v44 = vld [vmem:[%s6233_s20 + $0x1a0] ss:$8 sps:$4 sm:$0xff]  }
0x233f   : > { %4380 = vmatmul.mubr.msk.bf16.vlgmr.msra.gmra.mxu1 %vm2886_vm4, %v3417_v59  ;;  %v1797_v54 = vrot.slane %v1796_v30, 1  ;;  %3896 = vmatpush1.bf16.msra.mxu0 %v4875_v43  ;;  %v4883_v59 = vld [vmem:[%s6233_s20 + $0x104] ss:$8 sps:$4 sm:$0xff]   ;;  %vm4162_vm4 = vcmask 1040384  }
0x2340   : > { %3845 = vmatpush1.bf16.msra.mxu1 %v4812_v46  ;;  %v4880_v46 = vld [vmem:[%s6233_s20 + $0x114] ss:$8 sps:$4 sm:$0xff]   ;;  %v4163_v32 = vsel %vm4162_vm4, %v6026_v50, %v5798_v41 }
0x2341   : > { %3846 = vmatprep.subr.bf16.mxu1 %v4817_v55  ;;  %v5951_v4 = vmax.f32 %v1796_v30, %v1797_v54  ;;  %3897 = vmatprep.subr.bf16.mxu0 %v4880_v46  ;;  %v4881_v55 = vld [vmem:[%s6233_s20 + $0x100] ss:$8 sps:$4 sm:$0xff]  }
0x2343   : > { %3898 = vmatpush1.bf16.msra.mxu0 %v4878_v51 }
0x2344   : > { %3847 = vmatpush1.bf16.msra.mxu1 %v4815_v29  ;;  %3899 = vmatprep.subr.bf16.mxu0 %v4883_v59  ;;  %v4886_v29 = vld [vmem:[%s6233_s20 + $0x1a4] ss:$8 sps:$4 sm:$0xff]   ;;  %v3946_v59 = vld [vmem:[%s6235_s22] sm:$0x1] }
0x2345   : > { %3848 = vmatprep.subr.bf16.mxu1 %v4820_v9  ;;  %v4889_v9 = vld [vmem:[%s6233_s20 + $0x194] ss:$8 sps:$4 sm:$0xff]  }
0x2347   : > { %3900 = vmatpush1.bf16.msra.mxu0 %v4881_v55 }
0x2348   : > { %3849 = vmatpush1.bf16.msra.mxu1 %v4818_v62  ;;  %3911 = vmatprep.subr.bf16.mxu0 %v4886_v29  ;;  %v4887_v62 = vld [vmem:[%s6233_s20 + $0x190] ss:$8 sps:$4 sm:$0xff]  }
0x2349   : > { %3850 = vmatprep.subr.bf16.mxu1 %v4823_v1 }
0x234b   : > { %3912 = vmatpush2.bf16.msra.mxu0 %v4884_v44 }
0x234c   : > { %3851 = vmatpush1.bf16.msra.mxu1 %v4821_v24  ;;  %v5946_v63 = vpop.permute.xlu1 %4782  ;;  %3913 = vmatprep.subr.bf16.mxu0 %v4889_v9 }
0x234d   : > { %v4784_v8 = vunpack.i.l.bf16 %v5946_v63  ;;  %3852 = vmatprep.subr.bf16.mxu1 %v4826_v60 }
0x234f   : > { %v3511_v12 = vsel %vm975_vm3, %v5951_v4, %v4784_v8  ;;  %3914 = vmatpush2.bf16.msra.mxu0 %v4887_v62 }
0x2350   : > { %3853 = vmatpush1.bf16.msra.mxu1 %v4824_v0  ;;  %v3514_v14 = vpack.c.bf16 %v3511_v12, %v3511_v12 }
0x2351   : > { %3854 = vmatprep.subr.bf16.mxu1 %v4829_v11 }
0x2352   : > { %3876 = vmatprep.mubr.bf16.mxu1 %v3514_v14 }
0x2354   : > { %3855 = vmatpush1.bf16.msra.mxu1 %v4827_v39 }
0x2355   : > { %3856 = vmatprep.subr.bf16.mxu1 %v4832_v25 }
0x2358   : > { %3857 = vmatpush1.bf16.msra.mxu1 %v4830_v42  ;;  %v4892_v42 = vld [vmem:[%s6233_s20 + $0x184] ss:$8 sps:$4 sm:$0xff]  }
0x2359   : > { %3858 = vmatprep.subr.bf16.mxu1 %v4835_v45  ;;  %3915 = vmatprep.subr.bf16.mxu0 %v4892_v42 }
0x235c   : > { %3859 = vmatpush1.bf16.msra.mxu1 %v4833_v27 }
0x235d   : > { %3860 = vmatprep.subr.bf16.mxu1 %v4838_v7  ;;  %v4890_v7 = vld [vmem:[%s6233_s20 + $0x180] ss:$8 sps:$4 sm:$0xff]  }
0x235e   : > { %3916 = vmatpush2.bf16.msra.mxu0 %v4890_v7 }
0x235f   : > { %4004 = vmatprep.subr.bf16.mxu0 %v4994_v33 }
0x2360   : > { %3861 = vmatpush2.bf16.msra.mxu1 %v4836_v28 }
0x2361   : > { %3862 = vmatprep.subr.bf16.mxu1 %v4841_v31 }
0x2364   : > { %3863 = vmatpush2.bf16.msra.mxu1 %v4839_v49 }
0x2365   : > { %3864 = vmatprep.subr.bf16.mxu1 %v4844_v47 }
0x2368   : > { %3865 = vmatpush2.bf16.msra.mxu1 %v4842_v2 }
0x2369   : > { %3866 = vmatprep.subr.bf16.mxu1 %v4847_v35  ;;  %v4164_v35 = vsel %vm4162_vm4, %v5951_v4, %v5800_v53  ;;  %v4785_v53 = vunpack.i.h.bf16 %v5946_v63  ;;  %v4894_v63 = vld [vmem:[%s6234_s21 + $0x30] sm:$0xff]  }
0x236c   : > { %3867 = vmatpush2.bf16.msra.mxu1 %v4845_v17 }
0x236d   : > { %3868 = vmatprep.subr.bf16.mxu1 %v4850_v48 }
0x2370   : > { %3869 = vmatpush2.bf16.msra.mxu1 %v4848_v56 }
0x2371   : > { %3870 = vmatprep.subr.bf16.mxu1 %v4853_v19 }
0x2374   : > { %3871 = vmatpush2.bf16.msra.mxu1 %v4851_v52 }
0x2375   : > { %3872 = vmatprep.subr.bf16.mxu1 %v4856_v57 }
0x2378   : > { %3873 = vmatpush2.bf16.msra.mxu1 %v4854_v13  ;;  %v3499_v13 = vsel %vm975_vm3, %v4784_v8, %v4785_v53  ;;  %v4895_v8 = vld [vmem:[%s6234_s21 + $0x28] sm:$0xff]  }
0x2379   : > { %3874 = vmatprep.subr.bf16.mxu1 %v4859_v10 }
0x237c   : > { %3875 = vmatpush2.bf16.msra.mxu1 %v4857_v61 }
0x237d   : > { %4718 = vmatprep.subr.bf16.mxu1 %v4986_v3 }
0x237f   : > { %3877 = vmatmul.mubr.bf16.vlgmr.msra.gmra.mxu1 %v3513_v15  ;;  %v4893_v15 = vld [vmem:[%s6234_s21 + $0x38] sm:$0xff]  }
0x2380   : > { %4720 = vmatprep.mubr.msk.bf16.mxu1 %vm4987_vm1, %v4986_v3 }
0x23ff   : > { %v3471_v30 = vpop.f32.mrf.mxu1 }
0x2400   : > { %v3478_v1 = vsel %vm2890_vm15, %v3471_v30, -inf }
0x2401   : > { %v3479_v24 = vrot.slane %v3478_v1, 4  ;;  %v3473_v54 = vpop.f32.mrf.mxu1 }
0x2402   : > { %v3486_v60 = vsel %vm3485_vm2, %v3473_v54, -inf }
0x2403   : > { %v3480_v0 = vmax.f32 %v3478_v1, %v3479_v24  ;;  %v3487_v11 = vrot.slane %v3486_v60, 4  ;;  %v3475_v12 = vpop.f32.mrf.mxu1  ;;  %v4100_v24 = vld [vmem:[%s6238_s25] sm:$0xf] }
0x2404   : > { %v4106_v54 = vsel %vm1030_vm0, %v4100_v24, 0  ;;  %vm4148_vm0 = vcmask 16384  }
0x2405   : > { %v3481_v39 = vrot.slane %v3480_v0, 2  ;;  %v3488_v14 = vmax.f32 %v3486_v60, %v3487_v11  ;;  %v3476_v25 = vpop.f32.mrf.mxu1  ;;  %v4048_v60 = vld [vmem:[%s6237_s24] sm:$0x1] }
0x2407   : > { %v3482_v45 = vmax.f32 %v3480_v0, %v3481_v39  ;;  %v3489_v27 = vrot.slane %v3488_v14, 2 }
0x2409   : > { %v3483_v28 = vrot.slane %v3482_v45, 1  ;;  %v3490_v31 = vmax.f32 %v3488_v14, %v3489_v27 }
0x240b   : > { %v3484_v49 = vmax.f32 %v3482_v45, %v3483_v28  ;;  %v3491_v47 = vrot.slane %v3490_v31, 1 }
0x240d   : > { %v3492_v2 = vmax.f32 %v3490_v31, %v3491_v47  ;;  %v4165_v17 = vsel %vm2890_vm15, %v4163_v32, %v3484_v49 }
0x240f   : > { %v4166_v38 = vsel %vm2890_vm15, %v4164_v35, %v3492_v2  ;;  %v4786_v48 = vpack.i.bf16 %v3492_v2, %v3484_v49 }
0x2410   : > { %v4169_v56 = vcombine.low %v4165_v17, %v4166_v38 }
0x2411   : > { %4787 = vrot.lane.b32.xlu0 %v4786_v48, %s6303_s4  ;;  %s4996_s4 = smov [#allocation3]  }
0x2412   : > { %4174 = vst.msk [vmem:[%s877_s29] sm:$0x77] %vm4173_vm11, %v4169_v56  ;;  %s4176_s29 = scalar_lea.sflag [#allocation4], %s854_s11  ;;  %s4928_s8 = sshll.u32 %s4996_s4, 4  ;;  %s4929_s8 = int_to_ptr.vmem [resolvable:$false] %s4928_s8 }
0x2413   : > { %s4930_s19 = scalar_lea.vmem %s4929_s8, 32  ;;  %p4931_p0 = scmp.lt.s32.totalorder %s4194_s1, %s4929_s8 }
0x2414   : > { %p4932_p1 = scmp.lt.s32.totalorder %s4930_s19, %s4924_s5 }
0x2416   : > { %p4933_p2 = por %p4932_p1, %p4931_p0 }
0x2418   : > { %p4934_p3 = pnand %p4933_p2, %p4927_p13 }
0x243f   : > { %v3878_v18 = vpop.f32.mrf.mxu1 }
0x2441   : > { %v3880_v19 = vpop.f32.mrf.mxu1 }
0x2443   : > { %v3882_v41 = vpop.f32.mrf.mxu1 }
0x2445   : > { %v3883_v52 = vpop.f32.mrf.mxu1 }
0x2483   : > { %v4788_v4 = vpop.permute.xlu0 %4787 }
0x2484   : > { %v4790_v20 = vunpack.i.h.bf16 %v4788_v4  ;;  %v4789_v57 = vunpack.i.l.bf16 %v4788_v4 }
0x2486   : > { %v3508_v58 = vsel %vm1258_vm7, %v4789_v57, %v4790_v20  ;;  %v3512_v10 = vsel %vm1258_vm7, %v3499_v13, %v4789_v57 }
0x2487   : > { %v3515_v61 = vpack.c.bf16 %v3512_v10, %v3512_v10  ;;  %v3516_v50 = vpack.c.bf16 %v3508_v58, %v3508_v58 }
0x2489   : > { %4435 = vmatprep.mubr.msk.bf16.mxu0 %vm1147_vm6, %v3516_v50 }
0x248a   : > { %3918 = vmatmul.mubr.bf16.vlgmr.msra.gmra.mxu0 %v3515_v61 }
0x248b   : > { %4005 = vmatpush1.bf16.msra.mxu0 %v4893_v15 }
0x248c   : > { %4006 = vmatprep.subr.bf16.mxu0 %v4994_v33 }
0x248f   : > { %4007 = vmatpush1.bf16.msra.mxu0 %v4894_v63 }
0x2490   : > { %4008 = vmatprep.subr.bf16.mxu0 %v4994_v33 }
0x2493   : > { %4009 = vmatpush1.bf16.msra.mxu0 %v4895_v8 }
0x2494   : > { %4010 = vmatprep.subr.bf16.mxu0 %v4994_v33 }
0x2497   : > { %4011 = vmatpush1.bf16.msra.mxu0 %v4896_v36 }
0x2498   : > { %4012 = vmatprep.subr.bf16.mxu0 %v4994_v33 }
0x249b   : > { %4013 = vmatpush1.bf16.msra.mxu0 %v4897_v21 }
0x249c   : > { %4014 = vmatprep.subr.bf16.mxu0 %v4994_v33 }
0x249f   : > { %4015 = vmatpush1.bf16.msra.mxu0 %v4898_v16 }
0x24a0   : > { %4016 = vmatprep.subr.bf16.mxu0 %v4994_v33 }
0x24a3   : > { %4017 = vmatpush1.bf16.msra.mxu0 %v4899_v22 }
0x24a4   : > { %4018 = vmatprep.subr.bf16.mxu0 %v4994_v33 }
0x24a7   : > { %4019 = vmatpush1.bf16.msra.mxu0 %v4900_v26 }
0x24a8   : > { %4034 = vmatprep.subr.bf16.mxu0 %v4994_v33  ;;  %v4902_v33 = vld [vmem:[%s6236_s23] sm:$0xff]  }
0x24a9   : > { %4719 = vmatpush3.bf16.msra.mxu1 %v4902_v33 }
0x24aa   : > { %4724 = vmatprep.subr.bf16.mxu1 %v4986_v3 }
0x24ab   : > { %4035 = vmatpush2.bf16.msra.mxu0 %v4901_v5 }
0x254a   : > { %v3919_v6 = vpop.f32.mrf.mxu0 }
0x254b   : > { %v3920_v23 = vadd.f32 %v3919_v6, %v3878_v18 }
0x254c   : > { %v3921_v34 = vpop.f32.mrf.mxu0 }
0x254d   : > { %v3922_v37 = vadd.f32 %v3921_v34, %v3880_v19  ;;  %v3926_v46 = vpack.c.bf16 %v3920_v23, %v3920_v23 }
0x254e   : > { %v3923_v40 = vpop.f32.mrf.mxu0 }
0x254f   : > { %v3927_v43 = vpack.c.bf16 %v3922_v37, %v3922_v37 }
0x2550   : > { %v3924_v51 = vpop.f32.mrf.mxu0 }
0x2551   : > { %4445 = vmatprep.mubr.msk.bf16.mxu0 %vm975_vm3, %v3927_v43 }
0x2552   : > { %4037 = vmatmul.mubr.bf16.vlgmr.msra.gmra.mxu0 %v3926_v46 }
0x2612   : > { %v4038_v55 = vpop.f32.mrf.mxu0 }
0x2613   : > { %v4039_v29 = vadd.f32 %v4038_v55, %v3946_v59 }
0x2614   : > { %v4040_v44 = vpop.f32.mrf.mxu0 }
0x2615   : > { %v4044_v9 = vmax.f32 %v4039_v29, 0.0 }
0x2616   : > { %v4041_v62 = vpop.f32.mrf.mxu0 }
0x2617   : > { %v4045_v30 = vpack.c.bf16 %v4044_v9, %v4044_v9 }
0x2618   : > { %v4042_v1 = vpop.f32.mrf.mxu0 }
0x2619   : > { %4721 = vmatmul.mubr.msk.bf16.vlgmr.msra.gmra.mxu1 %vm975_vm3, %v4045_v30 }
0x261a   : > { %4726 = vmatprep.mubr.msk.bf16.mxu1 %vm4987_vm1, %v4986_v3  ;;  %4725 = vmatpush3.bf16.msra.mxu1 %v4106_v54  ;;  %v4101_v3 = vld [vmem:[%s6239_s26] sm:$0x1] }
0x26d9   : > { %v4092_v0 = vpop.f32.mrf.mxu1 }
0x26da   : > { %v4093_v11 = vadd.f32 %v4092_v0, %v4048_v60 }
0x26db   : > { %v4722_v12 = vpop.f32.mrf.mxu1 }
0x26dc   : > { %v4098_v39 = vmax.f32 %v4093_v11, 0.0 }
0x26dd   : > { %v4095_v14 = vpop.f32.mrf.mxu1 }
0x26de   : > { %v4099_v25 = vpack.c.bf16 %v4098_v39, %v4098_v39 }
0x26df   : > { %v4723_v42 = vpop.f32.mrf.mxu1 }
0x26e0   : > { %4727 = vmatmul.mubr.msk.bf16.vlgmr.msra.gmra.mxu1 %vm1026_vm5, %v4099_v25 }
0x27a0   : > { %v4142_v45 = vpop.f32.mrf.mxu1 }
0x27a1   : > { %v4143_v27 = vadd.f32 %v4142_v45, %v4101_v3 }
0x27a2   : > { %v4728_v7 = vpop.f32.mrf.mxu1 }
0x27a3   : > { %v4149_v28 = vsel %vm4148_vm0, %v4143_v27, -inf }
0x27a4   : > { %4150 = vmax.xlane.f32.xlu0 %v4149_v28  ;;  %v4145_v31 = vpop.f32.mrf.mxu1 }
0x27a6   : > { %v4729_v49 = vpop.f32.mrf.mxu1 }
0x282d   : > { %v4151_v47 = vpop.xlane.xlu0 %4150 }
0x282e   : > { %v4152_v2 = vsub.f32 %v4143_v27, %v4151_v47 }
0x2830   : > { %v4153_v32 = vmul.f32 1.442695, %v4152_v2 }
0x2832   : > { %4919 = vpow2.f32 %v4153_v32 }
0x283f   : > { %v4920_v35 = vpop.eup %4919 }
0x2840   : > { %v4155_v17 = vsel %vm4148_vm0, %v4920_v35, 0.0 }
0x2841   : > { %4156 = vadd.xlane.f32.xlu1 %v4155_v17 }
0x28ca   : > { %v4157_v38 = vpop.xlane.xlu1 %4156 }
0x28cb   : > { %4921 = vlog2.f32 %v4157_v38 }
0x28d8   : > { %v4922_v48 = vpop.eup %4921 }
0x28d9   : > { %v4159_v56 = vmul.f32 0.6931472, %v4922_v48 }
0x28db   : > { %v4160_v18 = vsub.f32 %v4152_v2, %v4159_v56 }
0x28dd   : > { %4161 = vst.msk [vmem:[%s855_s0] sm:$0x1] %vm4148_vm0, %v4160_v18 }
0x28de   : > { %4937 = shalt.err (!%p4934_p3)
}
0x28df   : > { %s4938_s10 = scalar_lea.hbm %s4191_s2, 16  ;;  %s4942_s0 = scalar_lea.hbm %s6240_s27, 32 }
0x28e0   : > { %p4939_p4 = scmp.ne.s32.totalorder %s4191_s2, %s4938_s10  ;;  %p4943_p9 = scmp.lt.s32.totalorder %s4191_s2, %s6240_s27 }
0x28e1   : > { %p4944_p10 = scmp.lt.s32.totalorder %s4942_s0, %s4938_s10 }
0x28e2   : > { %p4940_p7 = pnand %p4939_p4, %p5183_p5 }
0x28e3   : > { %p4945_p11 = por %p4944_p10, %p4943_p9 }
0x28e4   : > { %p4941_p8 = pneg %p4940_p7 }
0x28e6   : > { %p4946_p12 = pnand %p4945_p11, %p4941_p8 }
0x28e8   : > { %4949 = shalt.err (!%p4946_p12)
}
0x28e9   : > { %4730 = dma.vmem_to_hbm [thread:$0]  (%p5183_p5), %s4194_s1, 16, %s4191_s2, %s4176_s29  }
0x28ea PF: > { %s6323_s5 = sld [smem:[#allocation8_spill]] }
0x28eb   : > { %s6324_s4 = sld [smem:[#allocation6_spill]] }
0x28f0   : > { %p4736_p13 = scmp.ge.s32.totalorder %s6323_s5, 2 }
0x28f1   : > { %s4208_s19 = sand.u32 1, %s6324_s4  }
0x28f2   : > { %p4733_p0 = pnand %p4736_p13, %p5187_p6  ;;  %s4209_s11 = scalar_lea.sflag [#allocation4], %s4208_s19 }
0x28f4   : > { %p4734_p1 = pneg %p4733_p0 }
0x28f6   : > { %4967 = dma.done.wait (%p4734_p1), %s4209_s11, 16  }
0x28f7   : > { %4969 = vsyncadd (%p4734_p1), %s4209_s11, 4294967280  ;;  %s6326_s6 = sld [smem:[#allocation9_spill]]  ;;  %s6329_s9 = smov %s4976_s30 }
0x28f8   : > { %s6327_s10 = sld [smem:[#allocation7_spill]] }
0x28f9   : > { %s6328_s3 = sld [smem:[#allocation10_spill]] }
0x28fd   : > { %p41_p2 = scmp.ge.s32.totalorder %s6326_s6, 4  }
0x28fe   : > { %s6330_s30 = smov %s6327_s10 }
0x28ff   :  { %43 = sbr.rel (!%p41_p2) target bundleno = 17 (0x11), region = 178 }
0x2904   :  { %4221 = vsyncpa [#allocation4], 1 }
0x2905   :  { %4223 = vsyncpa [#allocation4 + $0x1], 1 }

</bundles_post_ra>
